<compile_context>
chip_gen: v6e
topology: v6e:2x2x1
jax: 0.10.0
libtpu: 0.0.40
codegen_flags: <defaults>
</compile_context>

<pallas_src>
import functools

import jax
import jax.numpy as jnp
from jax import lax
from jax.experimental import pallas as pl
from jax.experimental.pallas import tpu as pltpu

ALPHA = 0.2  # LeakyReLU slope used inside the GAT attention layers


# ----------------------------------------------------------------------------
# Kernel 1: fused GAT (all heads, all time slices, output head) in one call
# ----------------------------------------------------------------------------
def _gat_fused_kernel(x_ref, w_ref, a1_ref, a2_ref, mask_ref,
                      wo_ref, a1o_ref, a2o_ref, out_ref, hid_ref, *,
                      t_steps, n_nodes, nhid, nheads, alpha):
    mask = mask_ref[...]                         # additive adjacency mask (N, N)

    def attention(wh, a1, a2_row):
        # wh: (N, F) projected features.  e_ij = LeakyReLU(wh_i.a1 + wh_j.a2)
        f1 = jnp.dot(wh, a1, preferred_element_type=jnp.float32)           # (N, 1)
        f2 = lax.dot_general(a2_row, wh,
                             dimension_numbers=(((1,), (1,)), ((), ())),
                             preferred_element_type=jnp.float32)           # (1, N)
        e = f1 + f2                                                        # (N, N)
        e = jnp.where(e > 0, e, alpha * e) + mask        # LeakyReLU + adj mask
        e = e - jnp.max(e, axis=-1, keepdims=True)
        p = jnp.exp(e)
        att = p * pl.reciprocal(jnp.sum(p, axis=-1, keepdims=True), approx=True)
        hp = jnp.dot(att, wh, preferred_element_type=jnp.float32)          # (N, F)
        return jnp.where(hp > 0, hp, jnp.exp(jnp.minimum(hp, 0.0)) - 1.0)  # ELU

    # ---- multi-head hidden layer: one matmul for every head & time slice
    wh_all = jnp.dot(x_ref[...], w_ref[...],
                     preferred_element_type=jnp.float32)   # (T*N, nhid*nheads)
    for t in range(t_steps):
        r0 = t * n_nodes
        for h in range(nheads):
            c0 = h * nhid
            hid_ref[r0:r0 + n_nodes, c0:c0 + nhid] = attention(
                wh_all[r0:r0 + n_nodes, c0:c0 + nhid],
                a1_ref[c0:c0 + nhid, :],
                a2_ref[h:h + 1, :])

    # ---- output head (ELU); single matmul across all time slices
    who_all = jnp.dot(hid_ref[...], wo_ref[...],
                      preferred_element_type=jnp.float32)   # (T*N, nout)
    for t in range(t_steps):
        r0 = t * n_nodes
        out_ref[r0:r0 + n_nodes, :] = attention(
            who_all[r0:r0 + n_nodes, :], a1o_ref[...], a2o_ref[...])
    # TODO(synk): pyGAT's trailing log_softmax is omitted (regression head here).


def gat_fused(x2d, gat_prep, *, t_steps, n_nodes, alpha):
    w_stack, a1_stack, a2_stack, adj_mask, w_o, a1_o, a2_o = gat_prep
    nheads, nhid = a2_stack.shape
    nout = w_o.shape[1]
    tn = t_steps * n_nodes
    kernel = functools.partial(_gat_fused_kernel, t_steps=t_steps,
                               n_nodes=n_nodes, nhid=nhid, nheads=nheads,
                               alpha=alpha)
    return pl.pallas_call(
        kernel,
        out_shape=jax.ShapeDtypeStruct((tn, nout), jnp.float32),
        scratch_shapes=[pltpu.VMEM((tn, nhid * nheads), jnp.float32)],
    )(x2d, w_stack, a1_stack, a2_stack, adj_mask, w_o, a1_o, a2_o)


# ----------------------------------------------------------------------------
# Kernel 2: fused TCN chain (all levels) + attention pooling + final FC
# ----------------------------------------------------------------------------
def _tcn_att_kernel(*refs, dilations):
    nlvl = len(dilations)
    x_ref = refs[0]
    lvl_refs = refs[1:1 + 8 * nlvl]
    wa_ref, ba_ref, wf_ref, bf_ref = refs[1 + 8 * nlvl:5 + 8 * nlvl]
    out_ref = refs[5 + 8 * nlvl]

    def causal_shift(v, d):
        # v[t - d] with zero fill for t < d  (== left-pad + chomp in PyTorch)
        if d == 0:
            return v
        r = pltpu.roll(v, shift=d, axis=0)
        tt = lax.broadcasted_iota(jnp.int32, v.shape, 0)
        return jnp.where(tt >= d, r, jnp.float32(0.0))

    x = x_ref[...]                                   # (L, C), channels-last
    for lvl in range(nlvl):
        w1a, w1b, b1, w2a, w2b, b2, wd, bd = lvl_refs[8 * lvl:8 * lvl + 8]
        d = dilations[lvl]
        xs = causal_shift(x, d)
        h = (jnp.dot(xs, w1a[...], preferred_element_type=jnp.float32)
             + jnp.dot(x, w1b[...], preferred_element_type=jnp.float32)
             + b1[...])
        h = jnp.maximum(h, 0.0)                      # ReLU
        hs = causal_shift(h, d)
        h2 = (jnp.dot(hs, w2a[...], preferred_element_type=jnp.float32)
              + jnp.dot(h, w2b[...], preferred_element_type=jnp.float32)
              + b2[...])
        h2 = jnp.maximum(h2, 0.0)                    # ReLU
        res = jnp.dot(x, wd[...], preferred_element_type=jnp.float32) + bd[...]
        x = jnp.maximum(h2 + res, 0.0)               # ReLU(out + res)

    # ---- attention pooling over time + final FC
    s = jnp.dot(x, wa_ref[...], preferred_element_type=jnp.float32) + ba_ref[...]
    s = s - jnp.max(s, axis=0, keepdims=True)
    p = jnp.exp(s)
    w = p * pl.reciprocal(jnp.sum(p, axis=0, keepdims=True), approx=True)
    ctx = jnp.sum(w * x, axis=0, keepdims=True)                         # (1, H)
    out_ref[...] = (jnp.dot(ctx, wf_ref[...], preferred_element_type=jnp.float32)
                    + bf_ref[...])


def tcn_att_fcn(x, tcn_prep, att_prep, *, pred_len):
    operands = [x]
    for lvl in tcn_prep:
        operands.extend(lvl)
    operands.extend(att_prep)
    dilations = tuple(2 ** i for i in range(len(tcn_prep)))
    kernel = functools.partial(_tcn_att_kernel, dilations=dilations)
    return pl.pallas_call(
        kernel,
        out_shape=jax.ShapeDtypeStruct((1, pred_len), jnp.float32),
    )(*operands)


# ----------------------------------------------------------------------------
# Full GAT_ATCN forward (2 pallas_calls, free reshapes in between)
# ----------------------------------------------------------------------------
def gat_atcn_forward(input_x, prep):
    T, N, _ = input_x.shape
    x2d = input_x.reshape(T * N, -1)                              # free reshape
    x = gat_fused(x2d, prep["gat"], t_steps=T, n_nodes=N, alpha=ALPHA)  # (T*N, nout)
    # view(len, -1).unsqueeze(0).permute(0,2,1): we keep (L, C) channels-last
    x = x.reshape(T, -1)                                          # (L, node_num*nout)
    pred_len = prep["att_fcn"][2].shape[1]
    return tcn_att_fcn(x, prep["tcn"], prep["att_fcn"], pred_len=pred_len)


# ----------------------------------------------------------------------------
# One-time parameter preparation (hoisted transposes / reshapes / stacking)
# ----------------------------------------------------------------------------
def prepare_params(params, adj):
    # GAT: stack per-head weights so the kernel does one projection matmul.
    w_stack = jnp.concatenate([w for (w, _, _) in params["gat_heads"]], axis=1)
    a1_stack = jnp.concatenate([a1 for (_, a1, _) in params["gat_heads"]], axis=0)
    a2_stack = jnp.concatenate([a2 for (_, _, a2) in params["gat_heads"]], axis=0)
    adj_mask = jnp.where(adj > 0, 0.0, -9e15).astype(jnp.float32)
    w_o, a1_o, a2_o = params["gat_out"]
    gat = (w_stack, a1_stack, a2_stack, adj_mask, w_o, a1_o, a2_o)

    # TCN: PyTorch Conv1d weight is (C_out, C_in, K=2); split taps, transpose
    # once to channels-last (C_in, C_out); biases to (1, C_out).
    tcn = []
    for (w1, b1, w2, b2, wd, bd) in params["tcn"]:
        c_out = w1.shape[0]
        tcn.append((jnp.transpose(w1[:, :, 0]), jnp.transpose(w1[:, :, 1]),
                    b1.reshape(1, c_out),
                    jnp.transpose(w2[:, :, 0]), jnp.transpose(w2[:, :, 1]),
                    b2.reshape(1, c_out),
                    jnp.transpose(wd), bd.reshape(1, c_out)))

    wa, ba, wf, bf = params["att_fcn"]
    att = (wa, ba.reshape(1, 1), wf, bf.reshape(1, bf.shape[0]))
    return {"gat": gat, "tcn": tuple(tcn), "att_fcn": att}


# ----------------------------------------------------------------------------
# Deterministic parameter construction
# ----------------------------------------------------------------------------
def make_params(key, *, nfeat, nhid, nout, nheads, node_num, tcn_hid, pred_len):
    def nrm(k, shape, scale=0.1):
        return scale * jax.random.normal(k, shape, dtype=jnp.float32)

    keys = jax.random.split(key, 64)
    ki = iter(keys)

    gat_heads = []
    for _ in range(nheads):
        w = nrm(next(ki), (nfeat, nhid))
        a1 = nrm(next(ki), (nhid, 1))
        a2 = nrm(next(ki), (1, nhid))
        gat_heads.append((w, a1, a2))
    gat_out = (nrm(next(ki), (nhid * nheads, nout)),
               nrm(next(ki), (nout, 1)),
               nrm(next(ki), (1, nout)))

    tcn = []
    c_in = node_num * nout
    for c_out in tcn_hid:
        w1 = nrm(next(ki), (c_out, c_in, 2))
        b1 = nrm(next(ki), (c_out,))
        w2 = nrm(next(ki), (c_out, c_out, 2))
        b2 = nrm(next(ki), (c_out,))
        if c_in != c_out:
            wd = nrm(next(ki), (c_out, c_in))
            bd = nrm(next(ki), (c_out,))
        else:  # no downsample: residual is identity
            wd = jnp.eye(c_in, dtype=jnp.float32)
            bd = jnp.zeros((c_out,), dtype=jnp.float32)
        tcn.append((w1, b1, w2, b2, wd, bd))
        c_in = c_out

    att = (nrm(next(ki), (tcn_hid[-1], 1)),
           nrm(next(ki), (1,)),
           nrm(next(ki), (tcn_hid[-1], pred_len)),
           nrm(next(ki), (pred_len,)))

    return {"gat_heads": gat_heads, "gat_out": gat_out, "tcn": tcn, "att_fcn": att}


if __name__ == "__main__":
    # args: nfeat=4, nhid=8, nout=4, nheads=2, node_num=4,
    #       tcn_hid_layer=[16, 32], pred_len=4, seq len (time steps) = 8
    T, N = 8, 4
    NFEAT, NHID, NOUT, NHEADS = 4, 8, 4, 2
    TCN_HID = [16, 32]
    PRED_LEN = 4

    key = jax.random.PRNGKey(0)
    k_x, k_p = jax.random.split(key)

    input_x = jax.random.normal(k_x, (T, N, NFEAT), dtype=jnp.float32)
    # deterministic adjacency: ring + self loops
    adj = (jnp.eye(N)
           + jnp.roll(jnp.eye(N), 1, axis=1)
           + jnp.roll(jnp.eye(N), -1, axis=1)).astype(jnp.float32)
    adj = jnp.minimum(adj, 1.0)

    params = make_params(k_p, nfeat=NFEAT, nhid=NHID, nout=NOUT, nheads=NHEADS,
                         node_num=N, tcn_hid=TCN_HID, pred_len=PRED_LEN)
    prep = prepare_params(params, adj)        # one-time: transposes / stacking

    fwd = jax.jit(gat_atcn_forward)
    out = fwd(input_x, prep)
    out = jax.block_until_ready(out)
    assert out.shape == (1, PRED_LEN)
    assert bool(jnp.all(jnp.isfinite(out)))
    print("KERNEL_OK")
</pallas_src>

<mosaic_0001>
module attributes {stable_mosaic.version = 11 : i64} {
  func.func @_tcn_att_kernel(%arg0: memref<8x16xf32, #tpu.memory_space<vmem>>, %arg1: memref<16x16xf32, #tpu.memory_space<vmem>>, %arg2: memref<16x16xf32, #tpu.memory_space<vmem>>, %arg3: memref<1x16xf32, #tpu.memory_space<vmem>>, %arg4: memref<16x16xf32, #tpu.memory_space<vmem>>, %arg5: memref<16x16xf32, #tpu.memory_space<vmem>>, %arg6: memref<1x16xf32, #tpu.memory_space<vmem>>, %arg7: memref<16x16xf32, #tpu.memory_space<vmem>>, %arg8: memref<1x16xf32, #tpu.memory_space<vmem>>, %arg9: memref<16x32xf32, #tpu.memory_space<vmem>>, %arg10: memref<16x32xf32, #tpu.memory_space<vmem>>, %arg11: memref<1x32xf32, #tpu.memory_space<vmem>>, %arg12: memref<32x32xf32, #tpu.memory_space<vmem>>, %arg13: memref<32x32xf32, #tpu.memory_space<vmem>>, %arg14: memref<1x32xf32, #tpu.memory_space<vmem>>, %arg15: memref<16x32xf32, #tpu.memory_space<vmem>>, %arg16: memref<1x32xf32, #tpu.memory_space<vmem>>, %arg17: memref<32x1xf32, #tpu.memory_space<vmem>>, %arg18: memref<1x1xf32, #tpu.memory_space<vmem>>, %arg19: memref<32x4xf32, #tpu.memory_space<vmem>>, %arg20: memref<1x4xf32, #tpu.memory_space<vmem>>, %arg21: memref<1x4xf32, #tpu.memory_space<vmem>>) attributes {dimension_semantics = [], scalar_prefetch = 0 : i64, scratch_operands = 0 : i64, tpu.core_type = #tpu.core_type<tc>} {
    %c0 = arith.constant 0 : index
    %c0_0 = arith.constant 0 : index
    %0 = vector.load %arg0[%c0, %c0_0] : memref<8x16xf32, #tpu.memory_space<vmem>>, vector<8x16xf32>
    %c1_i32 = arith.constant 1 : i32
    %1 = tpu.dynamic_rotate %0 by %c1_i32 dim 0 : vector<8x16xf32>, i32 -> vector<8x16xf32>
    %2 = tpu.iota {dimensions = array<i32: 0>} : vector<8x16xi32>
    %c1_i32_1 = arith.constant 1 : i32
    %3 = vector.broadcast %c1_i32_1 : i32 to vector<8x16xi32>
    %4 = arith.cmpi sge, %2, %3 : vector<8x16xi32>
    %cst = arith.constant 0.000000e+00 : f32
    %5 = vector.broadcast %cst : f32 to vector<8x16xf32>
    %6 = arith.select %4, %1, %5 : vector<8x16xi1>, vector<8x16xf32>
    %c0_2 = arith.constant 0 : index
    %c0_3 = arith.constant 0 : index
    %7 = vector.load %arg1[%c0_2, %c0_3] : memref<16x16xf32, #tpu.memory_space<vmem>>, vector<16x16xf32>
    %cst_4 = arith.constant dense<0.000000e+00> : vector<8x16xf32>
    %8 = tpu.matmul %6, %7, %cst_4 {dimension_numbers = #tpu.dot_dimension_numbers<[1], [0], [0], [1], [0, 0, 1, 1], [], []>} : vector<8x16xf32>, vector<16x16xf32>, vector<8x16xf32> -> vector<8x16xf32>
    %c0_5 = arith.constant 0 : index
    %c0_6 = arith.constant 0 : index
    %9 = vector.load %arg2[%c0_5, %c0_6] : memref<16x16xf32, #tpu.memory_space<vmem>>, vector<16x16xf32>
    %cst_7 = arith.constant dense<0.000000e+00> : vector<8x16xf32>
    %10 = tpu.matmul %0, %9, %cst_7 {dimension_numbers = #tpu.dot_dimension_numbers<[1], [0], [0], [1], [0, 0, 1, 1], [], []>} : vector<8x16xf32>, vector<16x16xf32>, vector<8x16xf32> -> vector<8x16xf32>
    %11 = arith.addf %8, %10 : vector<8x16xf32>
    %c0_8 = arith.constant 0 : index
    %c0_9 = arith.constant 0 : index
    %12 = vector.load %arg3[%c0_8, %c0_9] : memref<1x16xf32, #tpu.memory_space<vmem>>, vector<1x16xf32>
    %13 = vector.broadcast %12 : vector<1x16xf32> to vector<8x16xf32>
    %14 = arith.addf %11, %13 : vector<8x16xf32>
    %cst_10 = arith.constant 0.000000e+00 : f32
    %15 = vector.broadcast %cst_10 : f32 to vector<8x16xf32>
    %16 = arith.maximumf %14, %15 : vector<8x16xf32>
    %c1_i32_11 = arith.constant 1 : i32
    %17 = tpu.dynamic_rotate %16 by %c1_i32_11 dim 0 : vector<8x16xf32>, i32 -> vector<8x16xf32>
    %18 = tpu.iota {dimensions = array<i32: 0>} : vector<8x16xi32>
    %c1_i32_12 = arith.constant 1 : i32
    %19 = vector.broadcast %c1_i32_12 : i32 to vector<8x16xi32>
    %20 = arith.cmpi sge, %18, %19 : vector<8x16xi32>
    %cst_13 = arith.constant 0.000000e+00 : f32
    %21 = vector.broadcast %cst_13 : f32 to vector<8x16xf32>
    %22 = arith.select %20, %17, %21 : vector<8x16xi1>, vector<8x16xf32>
    %c0_14 = arith.constant 0 : index
    %c0_15 = arith.constant 0 : index
    %23 = vector.load %arg4[%c0_14, %c0_15] : memref<16x16xf32, #tpu.memory_space<vmem>>, vector<16x16xf32>
    %cst_16 = arith.constant dense<0.000000e+00> : vector<8x16xf32>
    %24 = tpu.matmul %22, %23, %cst_16 {dimension_numbers = #tpu.dot_dimension_numbers<[1], [0], [0], [1], [0, 0, 1, 1], [], []>} : vector<8x16xf32>, vector<16x16xf32>, vector<8x16xf32> -> vector<8x16xf32>
    %c0_17 = arith.constant 0 : index
    %c0_18 = arith.constant 0 : index
    %25 = vector.load %arg5[%c0_17, %c0_18] : memref<16x16xf32, #tpu.memory_space<vmem>>, vector<16x16xf32>
    %cst_19 = arith.constant dense<0.000000e+00> : vector<8x16xf32>
    %26 = tpu.matmul %16, %25, %cst_19 {dimension_numbers = #tpu.dot_dimension_numbers<[1], [0], [0], [1], [0, 0, 1, 1], [], []>} : vector<8x16xf32>, vector<16x16xf32>, vector<8x16xf32> -> vector<8x16xf32>
    %27 = arith.addf %24, %26 : vector<8x16xf32>
    %c0_20 = arith.constant 0 : index
    %c0_21 = arith.constant 0 : index
    %28 = vector.load %arg6[%c0_20, %c0_21] : memref<1x16xf32, #tpu.memory_space<vmem>>, vector<1x16xf32>
    %29 = vector.broadcast %28 : vector<1x16xf32> to vector<8x16xf32>
    %30 = arith.addf %27, %29 : vector<8x16xf32>
    %cst_22 = arith.constant 0.000000e+00 : f32
    %31 = vector.broadcast %cst_22 : f32 to vector<8x16xf32>
    %32 = arith.maximumf %30, %31 : vector<8x16xf32>
    %c0_23 = arith.constant 0 : index
    %c0_24 = arith.constant 0 : index
    %33 = vector.load %arg7[%c0_23, %c0_24] : memref<16x16xf32, #tpu.memory_space<vmem>>, vector<16x16xf32>
    %cst_25 = arith.constant dense<0.000000e+00> : vector<8x16xf32>
    %34 = tpu.matmul %0, %33, %cst_25 {dimension_numbers = #tpu.dot_dimension_numbers<[1], [0], [0], [1], [0, 0, 1, 1], [], []>} : vector<8x16xf32>, vector<16x16xf32>, vector<8x16xf32> -> vector<8x16xf32>
    %c0_26 = arith.constant 0 : index
    %c0_27 = arith.constant 0 : index
    %35 = vector.load %arg8[%c0_26, %c0_27] : memref<1x16xf32, #tpu.memory_space<vmem>>, vector<1x16xf32>
    %36 = vector.broadcast %35 : vector<1x16xf32> to vector<8x16xf32>
    %37 = arith.addf %34, %36 : vector<8x16xf32>
    %38 = arith.addf %32, %37 : vector<8x16xf32>
    %cst_28 = arith.constant 0.000000e+00 : f32
    %39 = vector.broadcast %cst_28 : f32 to vector<8x16xf32>
    %40 = arith.maximumf %38, %39 : vector<8x16xf32>
    %c2_i32 = arith.constant 2 : i32
    %41 = tpu.dynamic_rotate %40 by %c2_i32 dim 0 : vector<8x16xf32>, i32 -> vector<8x16xf32>
    %42 = tpu.iota {dimensions = array<i32: 0>} : vector<8x16xi32>
    %c2_i32_29 = arith.constant 2 : i32
    %43 = vector.broadcast %c2_i32_29 : i32 to vector<8x16xi32>
    %44 = arith.cmpi sge, %42, %43 : vector<8x16xi32>
    %cst_30 = arith.constant 0.000000e+00 : f32
    %45 = vector.broadcast %cst_30 : f32 to vector<8x16xf32>
    %46 = arith.select %44, %41, %45 : vector<8x16xi1>, vector<8x16xf32>
    %c0_31 = arith.constant 0 : index
    %c0_32 = arith.constant 0 : index
    %47 = vector.load %arg9[%c0_31, %c0_32] : memref<16x32xf32, #tpu.memory_space<vmem>>, vector<16x32xf32>
    %cst_33 = arith.constant dense<0.000000e+00> : vector<8x32xf32>
    %48 = tpu.matmul %46, %47, %cst_33 {dimension_numbers = #tpu.dot_dimension_numbers<[1], [0], [0], [1], [0, 0, 1, 1], [], []>} : vector<8x16xf32>, vector<16x32xf32>, vector<8x32xf32> -> vector<8x32xf32>
    %c0_34 = arith.constant 0 : index
    %c0_35 = arith.constant 0 : index
    %49 = vector.load %arg10[%c0_34, %c0_35] : memref<16x32xf32, #tpu.memory_space<vmem>>, vector<16x32xf32>
    %cst_36 = arith.constant dense<0.000000e+00> : vector<8x32xf32>
    %50 = tpu.matmul %40, %49, %cst_36 {dimension_numbers = #tpu.dot_dimension_numbers<[1], [0], [0], [1], [0, 0, 1, 1], [], []>} : vector<8x16xf32>, vector<16x32xf32>, vector<8x32xf32> -> vector<8x32xf32>
    %51 = arith.addf %48, %50 : vector<8x32xf32>
    %c0_37 = arith.constant 0 : index
    %c0_38 = arith.constant 0 : index
    %52 = vector.load %arg11[%c0_37, %c0_38] : memref<1x32xf32, #tpu.memory_space<vmem>>, vector<1x32xf32>
    %53 = vector.broadcast %52 : vector<1x32xf32> to vector<8x32xf32>
    %54 = arith.addf %51, %53 : vector<8x32xf32>
    %cst_39 = arith.constant 0.000000e+00 : f32
    %55 = vector.broadcast %cst_39 : f32 to vector<8x32xf32>
    %56 = arith.maximumf %54, %55 : vector<8x32xf32>
    %c2_i32_40 = arith.constant 2 : i32
    %57 = tpu.dynamic_rotate %56 by %c2_i32_40 dim 0 : vector<8x32xf32>, i32 -> vector<8x32xf32>
    %58 = tpu.iota {dimensions = array<i32: 0>} : vector<8x32xi32>
    %c2_i32_41 = arith.constant 2 : i32
    %59 = vector.broadcast %c2_i32_41 : i32 to vector<8x32xi32>
    %60 = arith.cmpi sge, %58, %59 : vector<8x32xi32>
    %cst_42 = arith.constant 0.000000e+00 : f32
    %61 = vector.broadcast %cst_42 : f32 to vector<8x32xf32>
    %62 = arith.select %60, %57, %61 : vector<8x32xi1>, vector<8x32xf32>
    %c0_43 = arith.constant 0 : index
    %c0_44 = arith.constant 0 : index
    %63 = vector.load %arg12[%c0_43, %c0_44] : memref<32x32xf32, #tpu.memory_space<vmem>>, vector<32x32xf32>
    %cst_45 = arith.constant dense<0.000000e+00> : vector<8x32xf32>
    %64 = tpu.matmul %62, %63, %cst_45 {dimension_numbers = #tpu.dot_dimension_numbers<[1], [0], [0], [1], [0, 0, 1, 1], [], []>} : vector<8x32xf32>, vector<32x32xf32>, vector<8x32xf32> -> vector<8x32xf32>
    %c0_46 = arith.constant 0 : index
    %c0_47 = arith.constant 0 : index
    %65 = vector.load %arg13[%c0_46, %c0_47] : memref<32x32xf32, #tpu.memory_space<vmem>>, vector<32x32xf32>
    %cst_48 = arith.constant dense<0.000000e+00> : vector<8x32xf32>
    %66 = tpu.matmul %56, %65, %cst_48 {dimension_numbers = #tpu.dot_dimension_numbers<[1], [0], [0], [1], [0, 0, 1, 1], [], []>} : vector<8x32xf32>, vector<32x32xf32>, vector<8x32xf32> -> vector<8x32xf32>
    %67 = arith.addf %64, %66 : vector<8x32xf32>
    %c0_49 = arith.constant 0 : index
    %c0_50 = arith.constant 0 : index
    %68 = vector.load %arg14[%c0_49, %c0_50] : memref<1x32xf32, #tpu.memory_space<vmem>>, vector<1x32xf32>
    %69 = vector.broadcast %68 : vector<1x32xf32> to vector<8x32xf32>
    %70 = arith.addf %67, %69 : vector<8x32xf32>
    %cst_51 = arith.constant 0.000000e+00 : f32
    %71 = vector.broadcast %cst_51 : f32 to vector<8x32xf32>
    %72 = arith.maximumf %70, %71 : vector<8x32xf32>
    %c0_52 = arith.constant 0 : index
    %c0_53 = arith.constant 0 : index
    %73 = vector.load %arg15[%c0_52, %c0_53] : memref<16x32xf32, #tpu.memory_space<vmem>>, vector<16x32xf32>
    %cst_54 = arith.constant dense<0.000000e+00> : vector<8x32xf32>
    %74 = tpu.matmul %40, %73, %cst_54 {dimension_numbers = #tpu.dot_dimension_numbers<[1], [0], [0], [1], [0, 0, 1, 1], [], []>} : vector<8x16xf32>, vector<16x32xf32>, vector<8x32xf32> -> vector<8x32xf32>
    %c0_55 = arith.constant 0 : index
    %c0_56 = arith.constant 0 : index
    %75 = vector.load %arg16[%c0_55, %c0_56] : memref<1x32xf32, #tpu.memory_space<vmem>>, vector<1x32xf32>
    %76 = vector.broadcast %75 : vector<1x32xf32> to vector<8x32xf32>
    %77 = arith.addf %74, %76 : vector<8x32xf32>
    %78 = arith.addf %72, %77 : vector<8x32xf32>
    %cst_57 = arith.constant 0.000000e+00 : f32
    %79 = vector.broadcast %cst_57 : f32 to vector<8x32xf32>
    %80 = arith.maximumf %78, %79 : vector<8x32xf32>
    %c0_58 = arith.constant 0 : index
    %c0_59 = arith.constant 0 : index
    %81 = vector.load %arg17[%c0_58, %c0_59] : memref<32x1xf32, #tpu.memory_space<vmem>>, vector<32x1xf32>
    %cst_60 = arith.constant dense<0.000000e+00> : vector<8x1xf32>
    %82 = tpu.matmul %80, %81, %cst_60 {dimension_numbers = #tpu.dot_dimension_numbers<[1], [0], [0], [1], [0, 0, 1, 1], [], []>} : vector<8x32xf32>, vector<32x1xf32>, vector<8x1xf32> -> vector<8x1xf32>
    %c0_61 = arith.constant 0 : index
    %c0_62 = arith.constant 0 : index
    %83 = vector.load %arg18[%c0_61, %c0_62] : memref<1x1xf32, #tpu.memory_space<vmem>>, vector<1x1xf32>
    %84 = vector.broadcast %83 : vector<1x1xf32> to vector<8x1xf32>
    %85 = arith.addf %82, %84 : vector<8x1xf32>
    %cst_63 = arith.constant dense<0xFF800000> : vector<1xf32>
    %86 = vector.multi_reduction <maximumf>, %85, %cst_63 [0] : vector<8x1xf32> to vector<1xf32>
    %87 = vector.shape_cast %86 : vector<1xf32> to vector<1x1xf32>
    %88 = vector.broadcast %87 : vector<1x1xf32> to vector<8x1xf32>
    %89 = arith.subf %85, %88 : vector<8x1xf32>
    %90 = math.exp %89 : vector<8x1xf32>
    %cst_64 = arith.constant dense<0.000000e+00> : vector<1xf32>
    %91 = vector.multi_reduction <add>, %90, %cst_64 [0] : vector<8x1xf32> to vector<1xf32>
    %92 = vector.shape_cast %91 : vector<1xf32> to vector<1x1xf32>
    %93 = tpu.reciprocal %92 {approx = true} : vector<1x1xf32> -> vector<1x1xf32>
    %94 = vector.broadcast %93 : vector<1x1xf32> to vector<8x1xf32>
    %95 = arith.mulf %90, %94 : vector<8x1xf32>
    %96 = vector.broadcast %95 : vector<8x1xf32> to vector<8x32xf32>
    %97 = arith.mulf %96, %80 : vector<8x32xf32>
    %cst_65 = arith.constant dense<0.000000e+00> : vector<32xf32>
    %98 = vector.multi_reduction <add>, %97, %cst_65 [0] : vector<8x32xf32> to vector<32xf32>
    %99 = vector.shape_cast %98 : vector<32xf32> to vector<1x32xf32>
    %c0_66 = arith.constant 0 : index
    %c0_67 = arith.constant 0 : index
    %100 = vector.load %arg19[%c0_66, %c0_67] : memref<32x4xf32, #tpu.memory_space<vmem>>, vector<32x4xf32>
    %cst_68 = arith.constant dense<0.000000e+00> : vector<1x4xf32>
    %101 = tpu.matmul %99, %100, %cst_68 {dimension_numbers = #tpu.dot_dimension_numbers<[1], [0], [0], [1], [0, 0, 1, 1], [], []>} : vector<1x32xf32>, vector<32x4xf32>, vector<1x4xf32> -> vector<1x4xf32>
    %c0_69 = arith.constant 0 : index
    %c0_70 = arith.constant 0 : index
    %102 = vector.load %arg20[%c0_69, %c0_70] : memref<1x4xf32, #tpu.memory_space<vmem>>, vector<1x4xf32>
    %103 = arith.addf %101, %102 : vector<1x4xf32>
    %c0_71 = arith.constant 0 : index
    %c0_72 = arith.constant 0 : index
    %104 = vector.load %arg21[%c0_71, %c0_72] : memref<1x4xf32, #tpu.memory_space<vmem>>, vector<1x4xf32>
    tpu.vector_store %arg21[%c0_71, %c0_72], %103 {strides = array<i32>} : memref<1x4xf32, #tpu.memory_space<vmem>>, vector<1x4xf32>,
    return
  }
}

module attributes {stable_mosaic.version = 11 : i64} {
  func.func @_gat_fused_kernel(%arg0: memref<32x4xf32, #tpu.memory_space<vmem>>, %arg1: memref<4x16xf32, #tpu.memory_space<vmem>>, %arg2: memref<16x1xf32, #tpu.memory_space<vmem>>, %arg3: memref<2x8xf32, #tpu.memory_space<vmem>>, %arg4: memref<4x4xf32, #tpu.memory_space<vmem>>, %arg5: memref<16x4xf32, #tpu.memory_space<vmem>>, %arg6: memref<4x1xf32, #tpu.memory_space<vmem>>, %arg7: memref<1x4xf32, #tpu.memory_space<vmem>>, %arg8: memref<32x4xf32, #tpu.memory_space<vmem>>, %arg9: memref<32x16xf32, #tpu.memory_space<vmem>>) attributes {dimension_semantics = [], scalar_prefetch = 0 : i64, scratch_operands = 1 : i64, tpu.core_type = #tpu.core_type<tc>} {
    %c0 = arith.constant 0 : index
    %c0_0 = arith.constant 0 : index
    %0 = vector.load %arg4[%c0, %c0_0] : memref<4x4xf32, #tpu.memory_space<vmem>>, vector<4x4xf32>
    %c0_1 = arith.constant 0 : index
    %c0_2 = arith.constant 0 : index
    %1 = vector.load %arg0[%c0_1, %c0_2] : memref<32x4xf32, #tpu.memory_space<vmem>>, vector<32x4xf32>
    %c0_3 = arith.constant 0 : index
    %c0_4 = arith.constant 0 : index
    %2 = vector.load %arg1[%c0_3, %c0_4] : memref<4x16xf32, #tpu.memory_space<vmem>>, vector<4x16xf32>
    %cst = arith.constant dense<0.000000e+00> : vector<32x16xf32>
    %3 = tpu.matmul %1, %2, %cst {dimension_numbers = #tpu.dot_dimension_numbers<[1], [0], [0], [1], [0, 0, 1, 1], [], []>} : vector<32x4xf32>, vector<4x16xf32>, vector<32x16xf32> -> vector<32x16xf32>
    %4 = vector.extract_strided_slice %3 {offsets = [0, 0], sizes = [4, 8], strides = [1, 1]} : vector<32x16xf32> to vector<4x8xf32>
    %c0_5 = arith.constant 0 : index
    %c0_6 = arith.constant 0 : index
    %5 = vector.load %arg2[%c0_5, %c0_6] : memref<16x1xf32, #tpu.memory_space<vmem>>, vector<8x1xf32>
    %c0_7 = arith.constant 0 : index
    %c0_8 = arith.constant 0 : index
    %6 = vector.load %arg3[%c0_7, %c0_8] : memref<2x8xf32, #tpu.memory_space<vmem>>, vector<1x8xf32>
    %cst_9 = arith.constant dense<0.000000e+00> : vector<4x1xf32>
    %7 = tpu.matmul %4, %5, %cst_9 {dimension_numbers = #tpu.dot_dimension_numbers<[1], [0], [0], [1], [0, 0, 1, 1], [], []>} : vector<4x8xf32>, vector<8x1xf32>, vector<4x1xf32> -> vector<4x1xf32>
    %cst_10 = arith.constant dense<0.000000e+00> : vector<1x4xf32>
    %8 = tpu.matmul %6, %4, %cst_10 {dimension_numbers = #tpu.dot_dimension_numbers<[1], [1], [0], [0], [0, 0, 1, 0], [], []>} : vector<1x8xf32>, vector<4x8xf32>, vector<1x4xf32> -> vector<1x4xf32>
    %9 = vector.broadcast %7 : vector<4x1xf32> to vector<4x4xf32>
    %10 = vector.broadcast %8 : vector<1x4xf32> to vector<4x4xf32>
    %11 = arith.addf %9, %10 : vector<4x4xf32>
    %cst_11 = arith.constant 0.000000e+00 : f32
    %12 = vector.broadcast %cst_11 : f32 to vector<4x4xf32>
    %13 = arith.cmpf ogt, %11, %12 : vector<4x4xf32>
    %cst_12 = arith.constant 2.000000e-01 : f32
    %14 = vector.broadcast %cst_12 : f32 to vector<4x4xf32>
    %15 = arith.mulf %14, %11 : vector<4x4xf32>
    %16 = arith.select %13, %11, %15 : vector<4x4xi1>, vector<4x4xf32>
    %17 = arith.addf %16, %0 : vector<4x4xf32>
    %cst_13 = arith.constant dense<0xFF800000> : vector<4xf32>
    %18 = vector.multi_reduction <maximumf>, %17, %cst_13 [1] : vector<4x4xf32> to vector<4xf32>
    %19 = vector.shape_cast %18 : vector<4xf32> to vector<4x1xf32>
    %20 = vector.broadcast %19 : vector<4x1xf32> to vector<4x4xf32>
    %21 = arith.subf %17, %20 : vector<4x4xf32>
    %22 = math.exp %21 : vector<4x4xf32>
    %cst_14 = arith.constant dense<0.000000e+00> : vector<4xf32>
    %23 = vector.multi_reduction <add>, %22, %cst_14 [1] : vector<4x4xf32> to vector<4xf32>
    %24 = vector.shape_cast %23 : vector<4xf32> to vector<4x1xf32>
    %25 = tpu.reciprocal %24 {approx = true} : vector<4x1xf32> -> vector<4x1xf32>
    %26 = vector.broadcast %25 : vector<4x1xf32> to vector<4x4xf32>
    %27 = arith.mulf %22, %26 : vector<4x4xf32>
    %cst_15 = arith.constant dense<0.000000e+00> : vector<4x8xf32>
    %28 = tpu.matmul %27, %4, %cst_15 {dimension_numbers = #tpu.dot_dimension_numbers<[1], [0], [0], [1], [0, 0, 1, 1], [], []>} : vector<4x4xf32>, vector<4x8xf32>, vector<4x8xf32> -> vector<4x8xf32>
    %cst_16 = arith.constant 0.000000e+00 : f32
    %29 = vector.broadcast %cst_16 : f32 to vector<4x8xf32>
    %30 = arith.cmpf ogt, %28, %29 : vector<4x8xf32>
    %cst_17 = arith.constant 0.000000e+00 : f32
    %31 = vector.broadcast %cst_17 : f32 to vector<4x8xf32>
    %32 = arith.minimumf %28, %31 : vector<4x8xf32>
    %33 = math.exp %32 : vector<4x8xf32>
    %cst_18 = arith.constant 1.000000e+00 : f32
    %34 = vector.broadcast %cst_18 : f32 to vector<4x8xf32>
    %35 = arith.subf %33, %34 : vector<4x8xf32>
    %36 = arith.select %30, %28, %35 : vector<4x8xi1>, vector<4x8xf32>
    %c0_19 = arith.constant 0 : index
    %c0_20 = arith.constant 0 : index
    %37 = vector.load %arg9[%c0_19, %c0_20] : memref<32x16xf32, #tpu.memory_space<vmem>>, vector<4x8xf32>
    tpu.vector_store %arg9[%c0_19, %c0_20], %36 {strides = array<i32>} : memref<32x16xf32, #tpu.memory_space<vmem>>, vector<4x8xf32>,
    %38 = vector.extract_strided_slice %3 {offsets = [0, 8], sizes = [4, 8], strides = [1, 1]} : vector<32x16xf32> to vector<4x8xf32>
    %c8 = arith.constant 8 : index
    %c0_21 = arith.constant 0 : index
    %39 = vector.load %arg2[%c8, %c0_21] : memref<16x1xf32, #tpu.memory_space<vmem>>, vector<8x1xf32>
    %c1 = arith.constant 1 : index
    %c0_22 = arith.constant 0 : index
    %40 = vector.load %arg3[%c1, %c0_22] : memref<2x8xf32, #tpu.memory_space<vmem>>, vector<1x8xf32>
    %cst_23 = arith.constant dense<0.000000e+00> : vector<4x1xf32>
    %41 = tpu.matmul %38, %39, %cst_23 {dimension_numbers = #tpu.dot_dimension_numbers<[1], [0], [0], [1], [0, 0, 1, 1], [], []>} : vector<4x8xf32>, vector<8x1xf32>, vector<4x1xf32> -> vector<4x1xf32>
    %cst_24 = arith.constant dense<0.000000e+00> : vector<1x4xf32>
    %42 = tpu.matmul %40, %38, %cst_24 {dimension_numbers = #tpu.dot_dimension_numbers<[1], [1], [0], [0], [0, 0, 1, 0], [], []>} : vector<1x8xf32>, vector<4x8xf32>, vector<1x4xf32> -> vector<1x4xf32>
    %43 = vector.broadcast %41 : vector<4x1xf32> to vector<4x4xf32>
    %44 = vector.broadcast %42 : vector<1x4xf32> to vector<4x4xf32>
    %45 = arith.addf %43, %44 : vector<4x4xf32>
    %cst_25 = arith.constant 0.000000e+00 : f32
    %46 = vector.broadcast %cst_25 : f32 to vector<4x4xf32>
    %47 = arith.cmpf ogt, %45, %46 : vector<4x4xf32>
    %cst_26 = arith.constant 2.000000e-01 : f32
    %48 = vector.broadcast %cst_26 : f32 to vector<4x4xf32>
    %49 = arith.mulf %48, %45 : vector<4x4xf32>
    %50 = arith.select %47, %45, %49 : vector<4x4xi1>, vector<4x4xf32>
    %51 = arith.addf %50, %0 : vector<4x4xf32>
    %cst_27 = arith.constant dense<0xFF800000> : vector<4xf32>
    %52 = vector.multi_reduction <maximumf>, %51, %cst_27 [1] : vector<4x4xf32> to vector<4xf32>
    %53 = vector.shape_cast %52 : vector<4xf32> to vector<4x1xf32>
    %54 = vector.broadcast %53 : vector<4x1xf32> to vector<4x4xf32>
    %55 = arith.subf %51, %54 : vector<4x4xf32>
    %56 = math.exp %55 : vector<4x4xf32>
    %cst_28 = arith.constant dense<0.000000e+00> : vector<4xf32>
    %57 = vector.multi_reduction <add>, %56, %cst_28 [1] : vector<4x4xf32> to vector<4xf32>
    %58 = vector.shape_cast %57 : vector<4xf32> to vector<4x1xf32>
    %59 = tpu.reciprocal %58 {approx = true} : vector<4x1xf32> -> vector<4x1xf32>
    %60 = vector.broadcast %59 : vector<4x1xf32> to vector<4x4xf32>
    %61 = arith.mulf %56, %60 : vector<4x4xf32>
    %cst_29 = arith.constant dense<0.000000e+00> : vector<4x8xf32>
    %62 = tpu.matmul %61, %38, %cst_29 {dimension_numbers = #tpu.dot_dimension_numbers<[1], [0], [0], [1], [0, 0, 1, 1], [], []>} : vector<4x4xf32>, vector<4x8xf32>, vector<4x8xf32> -> vector<4x8xf32>
    %cst_30 = arith.constant 0.000000e+00 : f32
    %63 = vector.broadcast %cst_30 : f32 to vector<4x8xf32>
    %64 = arith.cmpf ogt, %62, %63 : vector<4x8xf32>
    %cst_31 = arith.constant 0.000000e+00 : f32
    %65 = vector.broadcast %cst_31 : f32 to vector<4x8xf32>
    %66 = arith.minimumf %62, %65 : vector<4x8xf32>
    %67 = math.exp %66 : vector<4x8xf32>
    %cst_32 = arith.constant 1.000000e+00 : f32
    %68 = vector.broadcast %cst_32 : f32 to vector<4x8xf32>
    %69 = arith.subf %67, %68 : vector<4x8xf32>
    %70 = arith.select %64, %62, %69 : vector<4x8xi1>, vector<4x8xf32>
    %c0_33 = arith.constant 0 : index
    %c8_34 = arith.constant 8 : index
    %71 = vector.load %arg9[%c0_33, %c8_34] : memref<32x16xf32, #tpu.memory_space<vmem>>, vector<4x8xf32>
    tpu.vector_store %arg9[%c0_33, %c8_34], %70 {strides = array<i32>} : memref<32x16xf32, #tpu.memory_space<vmem>>, vector<4x8xf32>,
    %72 = vector.extract_strided_slice %3 {offsets = [4, 0], sizes = [4, 8], strides = [1, 1]} : vector<32x16xf32> to vector<4x8xf32>
    %c0_35 = arith.constant 0 : index
    %c0_36 = arith.constant 0 : index
    %73 = vector.load %arg2[%c0_35, %c0_36] : memref<16x1xf32, #tpu.memory_space<vmem>>, vector<8x1xf32>
    %c0_37 = arith.constant 0 : index
    %c0_38 = arith.constant 0 : index
    %74 = vector.load %arg3[%c0_37, %c0_38] : memref<2x8xf32, #tpu.memory_space<vmem>>, vector<1x8xf32>
    %cst_39 = arith.constant dense<0.000000e+00> : vector<4x1xf32>
    %75 = tpu.matmul %72, %73, %cst_39 {dimension_numbers = #tpu.dot_dimension_numbers<[1], [0], [0], [1], [0, 0, 1, 1], [], []>} : vector<4x8xf32>, vector<8x1xf32>, vector<4x1xf32> -> vector<4x1xf32>
    %cst_40 = arith.constant dense<0.000000e+00> : vector<1x4xf32>
    %76 = tpu.matmul %74, %72, %cst_40 {dimension_numbers = #tpu.dot_dimension_numbers<[1], [1], [0], [0], [0, 0, 1, 0], [], []>} : vector<1x8xf32>, vector<4x8xf32>, vector<1x4xf32> -> vector<1x4xf32>
    %77 = vector.broadcast %75 : vector<4x1xf32> to vector<4x4xf32>
    %78 = vector.broadcast %76 : vector<1x4xf32> to vector<4x4xf32>
    %79 = arith.addf %77, %78 : vector<4x4xf32>
    %cst_41 = arith.constant 0.000000e+00 : f32
    %80 = vector.broadcast %cst_41 : f32 to vector<4x4xf32>
    %81 = arith.cmpf ogt, %79, %80 : vector<4x4xf32>
    %cst_42 = arith.constant 2.000000e-01 : f32
    %82 = vector.broadcast %cst_42 : f32 to vector<4x4xf32>
    %83 = arith.mulf %82, %79 : vector<4x4xf32>
    %84 = arith.select %81, %79, %83 : vector<4x4xi1>, vector<4x4xf32>
    %85 = arith.addf %84, %0 : vector<4x4xf32>
    %cst_43 = arith.constant dense<0xFF800000> : vector<4xf32>
    %86 = vector.multi_reduction <maximumf>, %85, %cst_43 [1] : vector<4x4xf32> to vector<4xf32>
    %87 = vector.shape_cast %86 : vector<4xf32> to vector<4x1xf32>
    %88 = vector.broadcast %87 : vector<4x1xf32> to vector<4x4xf32>
    %89 = arith.subf %85, %88 : vector<4x4xf32>
    %90 = math.exp %89 : vector<4x4xf32>
    %cst_44 = arith.constant dense<0.000000e+00> : vector<4xf32>
    %91 = vector.multi_reduction <add>, %90, %cst_44 [1] : vector<4x4xf32> to vector<4xf32>
    %92 = vector.shape_cast %91 : vector<4xf32> to vector<4x1xf32>
    %93 = tpu.reciprocal %92 {approx = true} : vector<4x1xf32> -> vector<4x1xf32>
    %94 = vector.broadcast %93 : vector<4x1xf32> to vector<4x4xf32>
    %95 = arith.mulf %90, %94 : vector<4x4xf32>
    %cst_45 = arith.constant dense<0.000000e+00> : vector<4x8xf32>
    %96 = tpu.matmul %95, %72, %cst_45 {dimension_numbers = #tpu.dot_dimension_numbers<[1], [0], [0], [1], [0, 0, 1, 1], [], []>} : vector<4x4xf32>, vector<4x8xf32>, vector<4x8xf32> -> vector<4x8xf32>
    %cst_46 = arith.constant 0.000000e+00 : f32
    %97 = vector.broadcast %cst_46 : f32 to vector<4x8xf32>
    %98 = arith.cmpf ogt, %96, %97 : vector<4x8xf32>
    %cst_47 = arith.constant 0.000000e+00 : f32
    %99 = vector.broadcast %cst_47 : f32 to vector<4x8xf32>
    %100 = arith.minimumf %96, %99 : vector<4x8xf32>
    %101 = math.exp %100 : vector<4x8xf32>
    %cst_48 = arith.constant 1.000000e+00 : f32
    %102 = vector.broadcast %cst_48 : f32 to vector<4x8xf32>
    %103 = arith.subf %101, %102 : vector<4x8xf32>
    %104 = arith.select %98, %96, %103 : vector<4x8xi1>, vector<4x8xf32>
    %c4 = arith.constant 4 : index
    %c0_49 = arith.constant 0 : index
    %105 = vector.load %arg9[%c4, %c0_49] : memref<32x16xf32, #tpu.memory_space<vmem>>, vector<4x8xf32>
    tpu.vector_store %arg9[%c4, %c0_49], %104 {strides = array<i32>} : memref<32x16xf32, #tpu.memory_space<vmem>>, vector<4x8xf32>,
    %106 = vector.extract_strided_slice %3 {offsets = [4, 8], sizes = [4, 8], strides = [1, 1]} : vector<32x16xf32> to vector<4x8xf32>
    %c8_50 = arith.constant 8 : index
    %c0_51 = arith.constant 0 : index
    %107 = vector.load %arg2[%c8_50, %c0_51] : memref<16x1xf32, #tpu.memory_space<vmem>>, vector<8x1xf32>
    %c1_52 = arith.constant 1 : index
    %c0_53 = arith.constant 0 : index
    %108 = vector.load %arg3[%c1_52, %c0_53] : memref<2x8xf32, #tpu.memory_space<vmem>>, vector<1x8xf32>
    %cst_54 = arith.constant dense<0.000000e+00> : vector<4x1xf32>
    %109 = tpu.matmul %106, %107, %cst_54 {dimension_numbers = #tpu.dot_dimension_numbers<[1], [0], [0], [1], [0, 0, 1, 1], [], []>} : vector<4x8xf32>, vector<8x1xf32>, vector<4x1xf32> -> vector<4x1xf32>
    %cst_55 = arith.constant dense<0.000000e+00> : vector<1x4xf32>
    %110 = tpu.matmul %108, %106, %cst_55 {dimension_numbers = #tpu.dot_dimension_numbers<[1], [1], [0], [0], [0, 0, 1, 0], [], []>} : vector<1x8xf32>, vector<4x8xf32>, vector<1x4xf32> -> vector<1x4xf32>
    %111 = vector.broadcast %109 : vector<4x1xf32> to vector<4x4xf32>
    %112 = vector.broadcast %110 : vector<1x4xf32> to vector<4x4xf32>
    %113 = arith.addf %111, %112 : vector<4x4xf32>
    %cst_56 = arith.constant 0.000000e+00 : f32
    %114 = vector.broadcast %cst_56 : f32 to vector<4x4xf32>
    %115 = arith.cmpf ogt, %113, %114 : vector<4x4xf32>
    %cst_57 = arith.constant 2.000000e-01 : f32
    %116 = vector.broadcast %cst_57 : f32 to vector<4x4xf32>
    %117 = arith.mulf %116, %113 : vector<4x4xf32>
    %118 = arith.select %115, %113, %117 : vector<4x4xi1>, vector<4x4xf32>
    %119 = arith.addf %118, %0 : vector<4x4xf32>
    %cst_58 = arith.constant dense<0xFF800000> : vector<4xf32>
    %120 = vector.multi_reduction <maximumf>, %119, %cst_58 [1] : vector<4x4xf32> to vector<4xf32>
    %121 = vector.shape_cast %120 : vector<4xf32> to vector<4x1xf32>
    %122 = vector.broadcast %121 : vector<4x1xf32> to vector<4x4xf32>
    %123 = arith.subf %119, %122 : vector<4x4xf32>
    %124 = math.exp %123 : vector<4x4xf32>
    %cst_59 = arith.constant dense<0.000000e+00> : vector<4xf32>
    %125 = vector.multi_reduction <add>, %124, %cst_59 [1] : vector<4x4xf32> to vector<4xf32>
    %126 = vector.shape_cast %125 : vector<4xf32> to vector<4x1xf32>
    %127 = tpu.reciprocal %126 {approx = true} : vector<4x1xf32> -> vector<4x1xf32>
    %128 = vector.broadcast %127 : vector<4x1xf32> to vector<4x4xf32>
    %129 = arith.mulf %124, %128 : vector<4x4xf32>
    %cst_60 = arith.constant dense<0.000000e+00> : vector<4x8xf32>
    %130 = tpu.matmul %129, %106, %cst_60 {dimension_numbers = #tpu.dot_dimension_numbers<[1], [0], [0], [1], [0, 0, 1, 1], [], []>} : vector<4x4xf32>, vector<4x8xf32>, vector<4x8xf32> -> vector<4x8xf32>
    %cst_61 = arith.constant 0.000000e+00 : f32
    %131 = vector.broadcast %cst_61 : f32 to vector<4x8xf32>
    %132 = arith.cmpf ogt, %130, %131 : vector<4x8xf32>
    %cst_62 = arith.constant 0.000000e+00 : f32
    %133 = vector.broadcast %cst_62 : f32 to vector<4x8xf32>
    %134 = arith.minimumf %130, %133 : vector<4x8xf32>
    %135 = math.exp %134 : vector<4x8xf32>
    %cst_63 = arith.constant 1.000000e+00 : f32
    %136 = vector.broadcast %cst_63 : f32 to vector<4x8xf32>
    %137 = arith.subf %135, %136 : vector<4x8xf32>
    %138 = arith.select %132, %130, %137 : vector<4x8xi1>, vector<4x8xf32>
    %c4_64 = arith.constant 4 : index
    %c8_65 = arith.constant 8 : index
    %139 = vector.load %arg9[%c4_64, %c8_65] : memref<32x16xf32, #tpu.memory_space<vmem>>, vector<4x8xf32>
    tpu.vector_store %arg9[%c4_64, %c8_65], %138 {strides = array<i32>} : memref<32x16xf32, #tpu.memory_space<vmem>>, vector<4x8xf32>,
    %140 = vector.extract_strided_slice %3 {offsets = [8, 0], sizes = [4, 8], strides = [1, 1]} : vector<32x16xf32> to vector<4x8xf32>
    %c0_66 = arith.constant 0 : index
    %c0_67 = arith.constant 0 : index
    %141 = vector.load %arg2[%c0_66, %c0_67] : memref<16x1xf32, #tpu.memory_space<vmem>>, vector<8x1xf32>
    %c0_68 = arith.constant 0 : index
    %c0_69 = arith.constant 0 : index
    %142 = vector.load %arg3[%c0_68, %c0_69] : memref<2x8xf32, #tpu.memory_space<vmem>>, vector<1x8xf32>
    %cst_70 = arith.constant dense<0.000000e+00> : vector<4x1xf32>
    %143 = tpu.matmul %140, %141, %cst_70 {dimension_numbers = #tpu.dot_dimension_numbers<[1], [0], [0], [1], [0, 0, 1, 1], [], []>} : vector<4x8xf32>, vector<8x1xf32>, vector<4x1xf32> -> vector<4x1xf32>
    %cst_71 = arith.constant dense<0.000000e+00> : vector<1x4xf32>
    %144 = tpu.matmul %142, %140, %cst_71 {dimension_numbers = #tpu.dot_dimension_numbers<[1], [1], [0], [0], [0, 0, 1, 0], [], []>} : vector<1x8xf32>, vector<4x8xf32>, vector<1x4xf32> -> vector<1x4xf32>
    %145 = vector.broadcast %143 : vector<4x1xf32> to vector<4x4xf32>
    %146 = vector.broadcast %144 : vector<1x4xf32> to vector<4x4xf32>
    %147 = arith.addf %145, %146 : vector<4x4xf32>
    %cst_72 = arith.constant 0.000000e+00 : f32
    %148 = vector.broadcast %cst_72 : f32 to vector<4x4xf32>
    %149 = arith.cmpf ogt, %147, %148 : vector<4x4xf32>
    %cst_73 = arith.constant 2.000000e-01 : f32
    %150 = vector.broadcast %cst_73 : f32 to vector<4x4xf32>
    %151 = arith.mulf %150, %147 : vector<4x4xf32>
    %152 = arith.select %149, %147, %151 : vector<4x4xi1>, vector<4x4xf32>
    %153 = arith.addf %152, %0 : vector<4x4xf32>
    %cst_74 = arith.constant dense<0xFF800000> : vector<4xf32>
    %154 = vector.multi_reduction <maximumf>, %153, %cst_74 [1] : vector<4x4xf32> to vector<4xf32>
    %155 = vector.shape_cast %154 : vector<4xf32> to vector<4x1xf32>
    %156 = vector.broadcast %155 : vector<4x1xf32> to vector<4x4xf32>
    %157 = arith.subf %153, %156 : vector<4x4xf32>
    %158 = math.exp %157 : vector<4x4xf32>
    %cst_75 = arith.constant dense<0.000000e+00> : vector<4xf32>
    %159 = vector.multi_reduction <add>, %158, %cst_75 [1] : vector<4x4xf32> to vector<4xf32>
    %160 = vector.shape_cast %159 : vector<4xf32> to vector<4x1xf32>
    %161 = tpu.reciprocal %160 {approx = true} : vector<4x1xf32> -> vector<4x1xf32>
    %162 = vector.broadcast %161 : vector<4x1xf32> to vector<4x4xf32>
    %163 = arith.mulf %158, %162 : vector<4x4xf32>
    %cst_76 = arith.constant dense<0.000000e+00> : vector<4x8xf32>
    %164 = tpu.matmul %163, %140, %cst_76 {dimension_numbers = #tpu.dot_dimension_numbers<[1], [0], [0], [1], [0, 0, 1, 1], [], []>} : vector<4x4xf32>, vector<4x8xf32>, vector<4x8xf32> -> vector<4x8xf32>
    %cst_77 = arith.constant 0.000000e+00 : f32
    %165 = vector.broadcast %cst_77 : f32 to vector<4x8xf32>
    %166 = arith.cmpf ogt, %164, %165 : vector<4x8xf32>
    %cst_78 = arith.constant 0.000000e+00 : f32
    %167 = vector.broadcast %cst_78 : f32 to vector<4x8xf32>
    %168 = arith.minimumf %164, %167 : vector<4x8xf32>
    %169 = math.exp %168 : vector<4x8xf32>
    %cst_79 = arith.constant 1.000000e+00 : f32
    %170 = vector.broadcast %cst_79 : f32 to vector<4x8xf32>
    %171 = arith.subf %169, %170 : vector<4x8xf32>
    %172 = arith.select %166, %164, %171 : vector<4x8xi1>, vector<4x8xf32>
    %c8_80 = arith.constant 8 : index
    %c0_81 = arith.constant 0 : index
    %173 = vector.load %arg9[%c8_80, %c0_81] : memref<32x16xf32, #tpu.memory_space<vmem>>, vector<4x8xf32>
    tpu.vector_store %arg9[%c8_80, %c0_81], %172 {strides = array<i32>} : memref<32x16xf32, #tpu.memory_space<vmem>>, vector<4x8xf32>,
    %174 = vector.extract_strided_slice %3 {offsets = [8, 8], sizes = [4, 8], strides = [1, 1]} : vector<32x16xf32> to vector<4x8xf32>
    %c8_82 = arith.constant 8 : index
    %c0_83 = arith.constant 0 : index
    %175 = vector.load %arg2[%c8_82, %c0_83] : memref<16x1xf32, #tpu.memory_space<vmem>>, vector<8x1xf32>
    %c1_84 = arith.constant 1 : index
    %c0_85 = arith.constant 0 : index
    %176 = vector.load %arg3[%c1_84, %c0_85] : memref<2x8xf32, #tpu.memory_space<vmem>>, vector<1x8xf32>
    %cst_86 = arith.constant dense<0.000000e+00> : vector<4x1xf32>
    %177 = tpu.matmul %174, %175, %cst_86 {dimension_numbers = #tpu.dot_dimension_numbers<[1], [0], [0], [1], [0, 0, 1, 1], [], []>} : vector<4x8xf32>, vector<8x1xf32>, vector<4x1xf32> -> vector<4x1xf32>
    %cst_87 = arith.constant dense<0.000000e+00> : vector<1x4xf32>
    %178 = tpu.matmul %176, %174, %cst_87 {dimension_numbers = #tpu.dot_dimension_numbers<[1], [1], [0], [0], [0, 0, 1, 0], [], []>} : vector<1x8xf32>, vector<4x8xf32>, vector<1x4xf32> -> vector<1x4xf32>
    %179 = vector.broadcast %177 : vector<4x1xf32> to vector<4x4xf32>
    %180 = vector.broadcast %178 : vector<1x4xf32> to vector<4x4xf32>
    %181 = arith.addf %179, %180 : vector<4x4xf32>
    %cst_88 = arith.constant 0.000000e+00 : f32
    %182 = vector.broadcast %cst_88 : f32 to vector<4x4xf32>
    %183 = arith.cmpf ogt, %181, %182 : vector<4x4xf32>
    %cst_89 = arith.constant 2.000000e-01 : f32
    %184 = vector.broadcast %cst_89 : f32 to vector<4x4xf32>
    %185 = arith.mulf %184, %181 : vector<4x4xf32>
    %186 = arith.select %183, %181, %185 : vector<4x4xi1>, vector<4x4xf32>
    %187 = arith.addf %186, %0 : vector<4x4xf32>
    %cst_90 = arith.constant dense<0xFF800000> : vector<4xf32>
    %188 = vector.multi_reduction <maximumf>, %187, %cst_90 [1] : vector<4x4xf32> to vector<4xf32>
    %189 = vector.shape_cast %188 : vector<4xf32> to vector<4x1xf32>
    %190 = vector.broadcast %189 : vector<4x1xf32> to vector<4x4xf32>
    %191 = arith.subf %187, %190 : vector<4x4xf32>
    %192 = math.exp %191 : vector<4x4xf32>
    %cst_91 = arith.constant dense<0.000000e+00> : vector<4xf32>
    %193 = vector.multi_reduction <add>, %192, %cst_91 [1] : vector<4x4xf32> to vector<4xf32>
    %194 = vector.shape_cast %193 : vector<4xf32> to vector<4x1xf32>
    %195 = tpu.reciprocal %194 {approx = true} : vector<4x1xf32> -> vector<4x1xf32>
    %196 = vector.broadcast %195 : vector<4x1xf32> to vector<4x4xf32>
    %197 = arith.mulf %192, %196 : vector<4x4xf32>
    %cst_92 = arith.constant dense<0.000000e+00> : vector<4x8xf32>
    %198 = tpu.matmul %197, %174, %cst_92 {dimension_numbers = #tpu.dot_dimension_numbers<[1], [0], [0], [1], [0, 0, 1, 1], [], []>} : vector<4x4xf32>, vector<4x8xf32>, vector<4x8xf32> -> vector<4x8xf32>
    %cst_93 = arith.constant 0.000000e+00 : f32
    %199 = vector.broadcast %cst_93 : f32 to vector<4x8xf32>
    %200 = arith.cmpf ogt, %198, %199 : vector<4x8xf32>
    %cst_94 = arith.constant 0.000000e+00 : f32
    %201 = vector.broadcast %cst_94 : f32 to vector<4x8xf32>
    %202 = arith.minimumf %198, %201 : vector<4x8xf32>
    %203 = math.exp %202 : vector<4x8xf32>
    %cst_95 = arith.constant 1.000000e+00 : f32
    %204 = vector.broadcast %cst_95 : f32 to vector<4x8xf32>
    %205 = arith.subf %203, %204 : vector<4x8xf32>
    %206 = arith.select %200, %198, %205 : vector<4x8xi1>, vector<4x8xf32>
    %c8_96 = arith.constant 8 : index
    %c8_97 = arith.constant 8 : index
    %207 = vector.load %arg9[%c8_96, %c8_97] : memref<32x16xf32, #tpu.memory_space<vmem>>, vector<4x8xf32>
    tpu.vector_store %arg9[%c8_96, %c8_97], %206 {strides = array<i32>} : memref<32x16xf32, #tpu.memory_space<vmem>>, vector<4x8xf32>,
    %208 = vector.extract_strided_slice %3 {offsets = [12, 0], sizes = [4, 8], strides = [1, 1]} : vector<32x16xf32> to vector<4x8xf32>
    %c0_98 = arith.constant 0 : index
    %c0_99 = arith.constant 0 : index
    %209 = vector.load %arg2[%c0_98, %c0_99] : memref<16x1xf32, #tpu.memory_space<vmem>>, vector<8x1xf32>
    %c0_100 = arith.constant 0 : index
    %c0_101 = arith.constant 0 : index
    %210 = vector.load %arg3[%c0_100, %c0_101] : memref<2x8xf32, #tpu.memory_space<vmem>>, vector<1x8xf32>
    %cst_102 = arith.constant dense<0.000000e+00> : vector<4x1xf32>
    %211 = tpu.matmul %208, %209, %cst_102 {dimension_numbers = #tpu.dot_dimension_numbers<[1], [0], [0], [1], [0, 0, 1, 1], [], []>} : vector<4x8xf32>, vector<8x1xf32>, vector<4x1xf32> -> vector<4x1xf32>
    %cst_103 = arith.constant dense<0.000000e+00> : vector<1x4xf32>
    %212 = tpu.matmul %210, %208, %cst_103 {dimension_numbers = #tpu.dot_dimension_numbers<[1], [1], [0], [0], [0, 0, 1, 0], [], []>} : vector<1x8xf32>, vector<4x8xf32>, vector<1x4xf32> -> vector<1x4xf32>
    %213 = vector.broadcast %211 : vector<4x1xf32> to vector<4x4xf32>
    %214 = vector.broadcast %212 : vector<1x4xf32> to vector<4x4xf32>
    %215 = arith.addf %213, %214 : vector<4x4xf32>
    %cst_104 = arith.constant 0.000000e+00 : f32
    %216 = vector.broadcast %cst_104 : f32 to vector<4x4xf32>
    %217 = arith.cmpf ogt, %215, %216 : vector<4x4xf32>
    %cst_105 = arith.constant 2.000000e-01 : f32
    %218 = vector.broadcast %cst_105 : f32 to vector<4x4xf32>
    %219 = arith.mulf %218, %215 : vector<4x4xf32>
    %220 = arith.select %217, %215, %219 : vector<4x4xi1>, vector<4x4xf32>
    %221 = arith.addf %220, %0 : vector<4x4xf32>
    %cst_106 = arith.constant dense<0xFF800000> : vector<4xf32>
    %222 = vector.multi_reduction <maximumf>, %221, %cst_106 [1] : vector<4x4xf32> to vector<4xf32>
    %223 = vector.shape_cast %222 : vector<4xf32> to vector<4x1xf32>
    %224 = vector.broadcast %223 : vector<4x1xf32> to vector<4x4xf32>
    %225 = arith.subf %221, %224 : vector<4x4xf32>
    %226 = math.exp %225 : vector<4x4xf32>
    %cst_107 = arith.constant dense<0.000000e+00> : vector<4xf32>
    %227 = vector.multi_reduction <add>, %226, %cst_107 [1] : vector<4x4xf32> to vector<4xf32>
    %228 = vector.shape_cast %227 : vector<4xf32> to vector<4x1xf32>
    %229 = tpu.reciprocal %228 {approx = true} : vector<4x1xf32> -> vector<4x1xf32>
    %230 = vector.broadcast %229 : vector<4x1xf32> to vector<4x4xf32>
    %231 = arith.mulf %226, %230 : vector<4x4xf32>
    %cst_108 = arith.constant dense<0.000000e+00> : vector<4x8xf32>
    %232 = tpu.matmul %231, %208, %cst_108 {dimension_numbers = #tpu.dot_dimension_numbers<[1], [0], [0], [1], [0, 0, 1, 1], [], []>} : vector<4x4xf32>, vector<4x8xf32>, vector<4x8xf32> -> vector<4x8xf32>
    %cst_109 = arith.constant 0.000000e+00 : f32
    %233 = vector.broadcast %cst_109 : f32 to vector<4x8xf32>
    %234 = arith.cmpf ogt, %232, %233 : vector<4x8xf32>
    %cst_110 = arith.constant 0.000000e+00 : f32
    %235 = vector.broadcast %cst_110 : f32 to vector<4x8xf32>
    %236 = arith.minimumf %232, %235 : vector<4x8xf32>
    %237 = math.exp %236 : vector<4x8xf32>
    %cst_111 = arith.constant 1.000000e+00 : f32
    %238 = vector.broadcast %cst_111 : f32 to vector<4x8xf32>
    %239 = arith.subf %237, %238 : vector<4x8xf32>
    %240 = arith.select %234, %232, %239 : vector<4x8xi1>, vector<4x8xf32>
    %c12 = arith.constant 12 : index
    %c0_112 = arith.constant 0 : index
    %241 = vector.load %arg9[%c12, %c0_112] : memref<32x16xf32, #tpu.memory_space<vmem>>, vector<4x8xf32>
    tpu.vector_store %arg9[%c12, %c0_112], %240 {strides = array<i32>} : memref<32x16xf32, #tpu.memory_space<vmem>>, vector<4x8xf32>,
    %242 = vector.extract_strided_slice %3 {offsets = [12, 8], sizes = [4, 8], strides = [1, 1]} : vector<32x16xf32> to vector<4x8xf32>
    %c8_113 = arith.constant 8 : index
    %c0_114 = arith.constant 0 : index
    %243 = vector.load %arg2[%c8_113, %c0_114] : memref<16x1xf32, #tpu.memory_space<vmem>>, vector<8x1xf32>
    %c1_115 = arith.constant 1 : index
    %c0_116 = arith.constant 0 : index
    %244 = vector.load %arg3[%c1_115, %c0_116] : memref<2x8xf32, #tpu.memory_space<vmem>>, vector<1x8xf32>
    %cst_117 = arith.constant dense<0.000000e+00> : vector<4x1xf32>
    %245 = tpu.matmul %242, %243, %cst_117 {dimension_numbers = #tpu.dot_dimension_numbers<[1], [0], [0], [1], [0, 0, 1, 1], [], []>} : vector<4x8xf32>, vector<8x1xf32>, vector<4x1xf32> -> vector<4x1xf32>
    %cst_118 = arith.constant dense<0.000000e+00> : vector<1x4xf32>
    %246 = tpu.matmul %244, %242, %cst_118 {dimension_numbers = #tpu.dot_dimension_numbers<[1], [1], [0], [0], [0, 0, 1, 0], [], []>} : vector<1x8xf32>, vector<4x8xf32>, vector<1x4xf32> -> vector<1x4xf32>
    %247 = vector.broadcast %245 : vector<4x1xf32> to vector<4x4xf32>
    %248 = vector.broadcast %246 : vector<1x4xf32> to vector<4x4xf32>
    %249 = arith.addf %247, %248 : vector<4x4xf32>
    %cst_119 = arith.constant 0.000000e+00 : f32
    %250 = vector.broadcast %cst_119 : f32 to vector<4x4xf32>
    %251 = arith.cmpf ogt, %249, %250 : vector<4x4xf32>
    %cst_120 = arith.constant 2.000000e-01 : f32
    %252 = vector.broadcast %cst_120 : f32 to vector<4x4xf32>
    %253 = arith.mulf %252, %249 : vector<4x4xf32>
    %254 = arith.select %251, %249, %253 : vector<4x4xi1>, vector<4x4xf32>
    %255 = arith.addf %254, %0 : vector<4x4xf32>
    %cst_121 = arith.constant dense<0xFF800000> : vector<4xf32>
    %256 = vector.multi_reduction <maximumf>, %255, %cst_121 [1] : vector<4x4xf32> to vector<4xf32>
    %257 = vector.shape_cast %256 : vector<4xf32> to vector<4x1xf32>
    %258 = vector.broadcast %257 : vector<4x1xf32> to vector<4x4xf32>
    %259 = arith.subf %255, %258 : vector<4x4xf32>
    %260 = math.exp %259 : vector<4x4xf32>
    %cst_122 = arith.constant dense<0.000000e+00> : vector<4xf32>
    %261 = vector.multi_reduction <add>, %260, %cst_122 [1] : vector<4x4xf32> to vector<4xf32>
    %262 = vector.shape_cast %261 : vector<4xf32> to vector<4x1xf32>
    %263 = tpu.reciprocal %262 {approx = true} : vector<4x1xf32> -> vector<4x1xf32>
    %264 = vector.broadcast %263 : vector<4x1xf32> to vector<4x4xf32>
    %265 = arith.mulf %260, %264 : vector<4x4xf32>
    %cst_123 = arith.constant dense<0.000000e+00> : vector<4x8xf32>
    %266 = tpu.matmul %265, %242, %cst_123 {dimension_numbers = #tpu.dot_dimension_numbers<[1], [0], [0], [1], [0, 0, 1, 1], [], []>} : vector<4x4xf32>, vector<4x8xf32>, vector<4x8xf32> -> vector<4x8xf32>
    %cst_124 = arith.constant 0.000000e+00 : f32
    %267 = vector.broadcast %cst_124 : f32 to vector<4x8xf32>
    %268 = arith.cmpf ogt, %266, %267 : vector<4x8xf32>
    %cst_125 = arith.constant 0.000000e+00 : f32
    %269 = vector.broadcast %cst_125 : f32 to vector<4x8xf32>
    %270 = arith.minimumf %266, %269 : vector<4x8xf32>
    %271 = math.exp %270 : vector<4x8xf32>
    %cst_126 = arith.constant 1.000000e+00 : f32
    %272 = vector.broadcast %cst_126 : f32 to vector<4x8xf32>
    %273 = arith.subf %271, %272 : vector<4x8xf32>
    %274 = arith.select %268, %266, %273 : vector<4x8xi1>, vector<4x8xf32>
    %c12_127 = arith.constant 12 : index
    %c8_128 = arith.constant 8 : index
    %275 = vector.load %arg9[%c12_127, %c8_128] : memref<32x16xf32, #tpu.memory_space<vmem>>, vector<4x8xf32>
    tpu.vector_store %arg9[%c12_127, %c8_128], %274 {strides = array<i32>} : memref<32x16xf32, #tpu.memory_space<vmem>>, vector<4x8xf32>,
    %276 = vector.extract_strided_slice %3 {offsets = [16, 0], sizes = [4, 8], strides = [1, 1]} : vector<32x16xf32> to vector<4x8xf32>
    %c0_129 = arith.constant 0 : index
    %c0_130 = arith.constant 0 : index
    %277 = vector.load %arg2[%c0_129, %c0_130] : memref<16x1xf32, #tpu.memory_space<vmem>>, vector<8x1xf32>
    %c0_131 = arith.constant 0 : index
    %c0_132 = arith.constant 0 : index
    %278 = vector.load %arg3[%c0_131, %c0_132] : memref<2x8xf32, #tpu.memory_space<vmem>>, vector<1x8xf32>
    %cst_133 = arith.constant dense<0.000000e+00> : vector<4x1xf32>
    %279 = tpu.matmul %276, %277, %cst_133 {dimension_numbers = #tpu.dot_dimension_numbers<[1], [0], [0], [1], [0, 0, 1, 1], [], []>} : vector<4x8xf32>, vector<8x1xf32>, vector<4x1xf32> -> vector<4x1xf32>
    %cst_134 = arith.constant dense<0.000000e+00> : vector<1x4xf32>
    %280 = tpu.matmul %278, %276, %cst_134 {dimension_numbers = #tpu.dot_dimension_numbers<[1], [1], [0], [0], [0, 0, 1, 0], [], []>} : vector<1x8xf32>, vector<4x8xf32>, vector<1x4xf32> -> vector<1x4xf32>
    %281 = vector.broadcast %279 : vector<4x1xf32> to vector<4x4xf32>
    %282 = vector.broadcast %280 : vector<1x4xf32> to vector<4x4xf32>
    %283 = arith.addf %281, %282 : vector<4x4xf32>
    %cst_135 = arith.constant 0.000000e+00 : f32
    %284 = vector.broadcast %cst_135 : f32 to vector<4x4xf32>
    %285 = arith.cmpf ogt, %283, %284 : vector<4x4xf32>
    %cst_136 = arith.constant 2.000000e-01 : f32
    %286 = vector.broadcast %cst_136 : f32 to vector<4x4xf32>
    %287 = arith.mulf %286, %283 : vector<4x4xf32>
    %288 = arith.select %285, %283, %287 : vector<4x4xi1>, vector<4x4xf32>
    %289 = arith.addf %288, %0 : vector<4x4xf32>
    %cst_137 = arith.constant dense<0xFF800000> : vector<4xf32>
    %290 = vector.multi_reduction <maximumf>, %289, %cst_137 [1] : vector<4x4xf32> to vector<4xf32>
    %291 = vector.shape_cast %290 : vector<4xf32> to vector<4x1xf32>
    %292 = vector.broadcast %291 : vector<4x1xf32> to vector<4x4xf32>
    %293 = arith.subf %289, %292 : vector<4x4xf32>
    %294 = math.exp %293 : vector<4x4xf32>
    %cst_138 = arith.constant dense<0.000000e+00> : vector<4xf32>
    %295 = vector.multi_reduction <add>, %294, %cst_138 [1] : vector<4x4xf32> to vector<4xf32>
    %296 = vector.shape_cast %295 : vector<4xf32> to vector<4x1xf32>
    %297 = tpu.reciprocal %296 {approx = true} : vector<4x1xf32> -> vector<4x1xf32>
    %298 = vector.broadcast %297 : vector<4x1xf32> to vector<4x4xf32>
    %299 = arith.mulf %294, %298 : vector<4x4xf32>
    %cst_139 = arith.constant dense<0.000000e+00> : vector<4x8xf32>
    %300 = tpu.matmul %299, %276, %cst_139 {dimension_numbers = #tpu.dot_dimension_numbers<[1], [0], [0], [1], [0, 0, 1, 1], [], []>} : vector<4x4xf32>, vector<4x8xf32>, vector<4x8xf32> -> vector<4x8xf32>
    %cst_140 = arith.constant 0.000000e+00 : f32
    %301 = vector.broadcast %cst_140 : f32 to vector<4x8xf32>
    %302 = arith.cmpf ogt, %300, %301 : vector<4x8xf32>
    %cst_141 = arith.constant 0.000000e+00 : f32
    %303 = vector.broadcast %cst_141 : f32 to vector<4x8xf32>
    %304 = arith.minimumf %300, %303 : vector<4x8xf32>
    %305 = math.exp %304 : vector<4x8xf32>
    %cst_142 = arith.constant 1.000000e+00 : f32
    %306 = vector.broadcast %cst_142 : f32 to vector<4x8xf32>
    %307 = arith.subf %305, %306 : vector<4x8xf32>
    %308 = arith.select %302, %300, %307 : vector<4x8xi1>, vector<4x8xf32>
    %c16 = arith.constant 16 : index
    %c0_143 = arith.constant 0 : index
    %309 = vector.load %arg9[%c16, %c0_143] : memref<32x16xf32, #tpu.memory_space<vmem>>, vector<4x8xf32>
    tpu.vector_store %arg9[%c16, %c0_143], %308 {strides = array<i32>} : memref<32x16xf32, #tpu.memory_space<vmem>>, vector<4x8xf32>,
    %310 = vector.extract_strided_slice %3 {offsets = [16, 8], sizes = [4, 8], strides = [1, 1]} : vector<32x16xf32> to vector<4x8xf32>
    %c8_144 = arith.constant 8 : index
    %c0_145 = arith.constant 0 : index
    %311 = vector.load %arg2[%c8_144, %c0_145] : memref<16x1xf32, #tpu.memory_space<vmem>>, vector<8x1xf32>
    %c1_146 = arith.constant 1 : index
    %c0_147 = arith.constant 0 : index
    %312 = vector.load %arg3[%c1_146, %c0_147] : memref<2x8xf32, #tpu.memory_space<vmem>>, vector<1x8xf32>
    %cst_148 = arith.constant dense<0.000000e+00> : vector<4x1xf32>
    %313 = tpu.matmul %310, %311, %cst_148 {dimension_numbers = #tpu.dot_dimension_numbers<[1], [0], [0], [1], [0, 0, 1, 1], [], []>} : vector<4x8xf32>, vector<8x1xf32>, vector<4x1xf32> -> vector<4x1xf32>
    %cst_149 = arith.constant dense<0.000000e+00> : vector<1x4xf32>
    %314 = tpu.matmul %312, %310, %cst_149 {dimension_numbers = #tpu.dot_dimension_numbers<[1], [1], [0], [0], [0, 0, 1, 0], [], []>} : vector<1x8xf32>, vector<4x8xf32>, vector<1x4xf32> -> vector<1x4xf32>
    %315 = vector.broadcast %313 : vector<4x1xf32> to vector<4x4xf32>
    %316 = vector.broadcast %314 : vector<1x4xf32> to vector<4x4xf32>
    %317 = arith.addf %315, %316 : vector<4x4xf32>
    %cst_150 = arith.constant 0.000000e+00 : f32
    %318 = vector.broadcast %cst_150 : f32 to vector<4x4xf32>
    %319 = arith.cmpf ogt, %317, %318 : vector<4x4xf32>
    %cst_151 = arith.constant 2.000000e-01 : f32
    %320 = vector.broadcast %cst_151 : f32 to vector<4x4xf32>
    %321 = arith.mulf %320, %317 : vector<4x4xf32>
    %322 = arith.select %319, %317, %321 : vector<4x4xi1>, vector<4x4xf32>
    %323 = arith.addf %322, %0 : vector<4x4xf32>
    %cst_152 = arith.constant dense<0xFF800000> : vector<4xf32>
    %324 = vector.multi_reduction <maximumf>, %323, %cst_152 [1] : vector<4x4xf32> to vector<4xf32>
    %325 = vector.shape_cast %324 : vector<4xf32> to vector<4x1xf32>
    %326 = vector.broadcast %325 : vector<4x1xf32> to vector<4x4xf32>
    %327 = arith.subf %323, %326 : vector<4x4xf32>
    %328 = math.exp %327 : vector<4x4xf32>
    %cst_153 = arith.constant dense<0.000000e+00> : vector<4xf32>
    %329 = vector.multi_reduction <add>, %328, %cst_153 [1] : vector<4x4xf32> to vector<4xf32>
    %330 = vector.shape_cast %329 : vector<4xf32> to vector<4x1xf32>
    %331 = tpu.reciprocal %330 {approx = true} : vector<4x1xf32> -> vector<4x1xf32>
    %332 = vector.broadcast %331 : vector<4x1xf32> to vector<4x4xf32>
    %333 = arith.mulf %328, %332 : vector<4x4xf32>
    %cst_154 = arith.constant dense<0.000000e+00> : vector<4x8xf32>
    %334 = tpu.matmul %333, %310, %cst_154 {dimension_numbers = #tpu.dot_dimension_numbers<[1], [0], [0], [1], [0, 0, 1, 1], [], []>} : vector<4x4xf32>, vector<4x8xf32>, vector<4x8xf32> -> vector<4x8xf32>
    %cst_155 = arith.constant 0.000000e+00 : f32
    %335 = vector.broadcast %cst_155 : f32 to vector<4x8xf32>
    %336 = arith.cmpf ogt, %334, %335 : vector<4x8xf32>
    %cst_156 = arith.constant 0.000000e+00 : f32
    %337 = vector.broadcast %cst_156 : f32 to vector<4x8xf32>
    %338 = arith.minimumf %334, %337 : vector<4x8xf32>
    %339 = math.exp %338 : vector<4x8xf32>
    %cst_157 = arith.constant 1.000000e+00 : f32
    %340 = vector.broadcast %cst_157 : f32 to vector<4x8xf32>
    %341 = arith.subf %339, %340 : vector<4x8xf32>
    %342 = arith.select %336, %334, %341 : vector<4x8xi1>, vector<4x8xf32>
    %c16_158 = arith.constant 16 : index
    %c8_159 = arith.constant 8 : index
    %343 = vector.load %arg9[%c16_158, %c8_159] : memref<32x16xf32, #tpu.memory_space<vmem>>, vector<4x8xf32>
    tpu.vector_store %arg9[%c16_158, %c8_159], %342 {strides = array<i32>} : memref<32x16xf32, #tpu.memory_space<vmem>>, vector<4x8xf32>,
    %344 = vector.extract_strided_slice %3 {offsets = [20, 0], sizes = [4, 8], strides = [1, 1]} : vector<32x16xf32> to vector<4x8xf32>
    %c0_160 = arith.constant 0 : index
    %c0_161 = arith.constant 0 : index
    %345 = vector.load %arg2[%c0_160, %c0_161] : memref<16x1xf32, #tpu.memory_space<vmem>>, vector<8x1xf32>
    %c0_162 = arith.constant 0 : index
    %c0_163 = arith.constant 0 : index
    %346 = vector.load %arg3[%c0_162, %c0_163] : memref<2x8xf32, #tpu.memory_space<vmem>>, vector<1x8xf32>
    %cst_164 = arith.constant dense<0.000000e+00> : vector<4x1xf32>
    %347 = tpu.matmul %344, %345, %cst_164 {dimension_numbers = #tpu.dot_dimension_numbers<[1], [0], [0], [1], [0, 0, 1, 1], [], []>} : vector<4x8xf32>, vector<8x1xf32>, vector<4x1xf32> -> vector<4x1xf32>
    %cst_165 = arith.constant dense<0.000000e+00> : vector<1x4xf32>
    %348 = tpu.matmul %346, %344, %cst_165 {dimension_numbers = #tpu.dot_dimension_numbers<[1], [1], [0], [0], [0, 0, 1, 0], [], []>} : vector<1x8xf32>, vector<4x8xf32>, vector<1x4xf32> -> vector<1x4xf32>
    %349 = vector.broadcast %347 : vector<4x1xf32> to vector<4x4xf32>
    %350 = vector.broadcast %348 : vector<1x4xf32> to vector<4x4xf32>
    %351 = arith.addf %349, %350 : vector<4x4xf32>
    %cst_166 = arith.constant 0.000000e+00 : f32
    %352 = vector.broadcast %cst_166 : f32 to vector<4x4xf32>
    %353 = arith.cmpf ogt, %351, %352 : vector<4x4xf32>
    %cst_167 = arith.constant 2.000000e-01 : f32
    %354 = vector.broadcast %cst_167 : f32 to vector<4x4xf32>
    %355 = arith.mulf %354, %351 : vector<4x4xf32>
    %356 = arith.select %353, %351, %355 : vector<4x4xi1>, vector<4x4xf32>
    %357 = arith.addf %356, %0 : vector<4x4xf32>
    %cst_168 = arith.constant dense<0xFF800000> : vector<4xf32>
    %358 = vector.multi_reduction <maximumf>, %357, %cst_168 [1] : vector<4x4xf32> to vector<4xf32>
    %359 = vector.shape_cast %358 : vector<4xf32> to vector<4x1xf32>
    %360 = vector.broadcast %359 : vector<4x1xf32> to vector<4x4xf32>
    %361 = arith.subf %357, %360 : vector<4x4xf32>
    %362 = math.exp %361 : vector<4x4xf32>
    %cst_169 = arith.constant dense<0.000000e+00> : vector<4xf32>
    %363 = vector.multi_reduction <add>, %362, %cst_169 [1] : vector<4x4xf32> to vector<4xf32>
    %364 = vector.shape_cast %363 : vector<4xf32> to vector<4x1xf32>
    %365 = tpu.reciprocal %364 {approx = true} : vector<4x1xf32> -> vector<4x1xf32>
    %366 = vector.broadcast %365 : vector<4x1xf32> to vector<4x4xf32>
    %367 = arith.mulf %362, %366 : vector<4x4xf32>
    %cst_170 = arith.constant dense<0.000000e+00> : vector<4x8xf32>
    %368 = tpu.matmul %367, %344, %cst_170 {dimension_numbers = #tpu.dot_dimension_numbers<[1], [0], [0], [1], [0, 0, 1, 1], [], []>} : vector<4x4xf32>, vector<4x8xf32>, vector<4x8xf32> -> vector<4x8xf32>
    %cst_171 = arith.constant 0.000000e+00 : f32
    %369 = vector.broadcast %cst_171 : f32 to vector<4x8xf32>
    %370 = arith.cmpf ogt, %368, %369 : vector<4x8xf32>
    %cst_172 = arith.constant 0.000000e+00 : f32
    %371 = vector.broadcast %cst_172 : f32 to vector<4x8xf32>
    %372 = arith.minimumf %368, %371 : vector<4x8xf32>
    %373 = math.exp %372 : vector<4x8xf32>
    %cst_173 = arith.constant 1.000000e+00 : f32
    %374 = vector.broadcast %cst_173 : f32 to vector<4x8xf32>
    %375 = arith.subf %373, %374 : vector<4x8xf32>
    %376 = arith.select %370, %368, %375 : vector<4x8xi1>, vector<4x8xf32>
    %c20 = arith.constant 20 : index
    %c0_174 = arith.constant 0 : index
    %377 = vector.load %arg9[%c20, %c0_174] : memref<32x16xf32, #tpu.memory_space<vmem>>, vector<4x8xf32>
    tpu.vector_store %arg9[%c20, %c0_174], %376 {strides = array<i32>} : memref<32x16xf32, #tpu.memory_space<vmem>>, vector<4x8xf32>,
    %378 = vector.extract_strided_slice %3 {offsets = [20, 8], sizes = [4, 8], strides = [1, 1]} : vector<32x16xf32> to vector<4x8xf32>
    %c8_175 = arith.constant 8 : index
    %c0_176 = arith.constant 0 : index
    %379 = vector.load %arg2[%c8_175, %c0_176] : memref<16x1xf32, #tpu.memory_space<vmem>>, vector<8x1xf32>
    %c1_177 = arith.constant 1 : index
    %c0_178 = arith.constant 0 : index
    %380 = vector.load %arg3[%c1_177, %c0_178] : memref<2x8xf32, #tpu.memory_space<vmem>>, vector<1x8xf32>
    %cst_179 = arith.constant dense<0.000000e+00> : vector<4x1xf32>
    %381 = tpu.matmul %378, %379, %cst_179 {dimension_numbers = #tpu.dot_dimension_numbers<[1], [0], [0], [1], [0, 0, 1, 1], [], []>} : vector<4x8xf32>, vector<8x1xf32>, vector<4x1xf32> -> vector<4x1xf32>
    %cst_180 = arith.constant dense<0.000000e+00> : vector<1x4xf32>
    %382 = tpu.matmul %380, %378, %cst_180 {dimension_numbers = #tpu.dot_dimension_numbers<[1], [1], [0], [0], [0, 0, 1, 0], [], []>} : vector<1x8xf32>, vector<4x8xf32>, vector<1x4xf32> -> vector<1x4xf32>
    %383 = vector.broadcast %381 : vector<4x1xf32> to vector<4x4xf32>
    %384 = vector.broadcast %382 : vector<1x4xf32> to vector<4x4xf32>
    %385 = arith.addf %383, %384 : vector<4x4xf32>
    %cst_181 = arith.constant 0.000000e+00 : f32
    %386 = vector.broadcast %cst_181 : f32 to vector<4x4xf32>
    %387 = arith.cmpf ogt, %385, %386 : vector<4x4xf32>
    %cst_182 = arith.constant 2.000000e-01 : f32
    %388 = vector.broadcast %cst_182 : f32 to vector<4x4xf32>
    %389 = arith.mulf %388, %385 : vector<4x4xf32>
    %390 = arith.select %387, %385, %389 : vector<4x4xi1>, vector<4x4xf32>
    %391 = arith.addf %390, %0 : vector<4x4xf32>
    %cst_183 = arith.constant dense<0xFF800000> : vector<4xf32>
    %392 = vector.multi_reduction <maximumf>, %391, %cst_183 [1] : vector<4x4xf32> to vector<4xf32>
    %393 = vector.shape_cast %392 : vector<4xf32> to vector<4x1xf32>
    %394 = vector.broadcast %393 : vector<4x1xf32> to vector<4x4xf32>
    %395 = arith.subf %391, %394 : vector<4x4xf32>
    %396 = math.exp %395 : vector<4x4xf32>
    %cst_184 = arith.constant dense<0.000000e+00> : vector<4xf32>
    %397 = vector.multi_reduction <add>, %396, %cst_184 [1] : vector<4x4xf32> to vector<4xf32>
    %398 = vector.shape_cast %397 : vector<4xf32> to vector<4x1xf32>
    %399 = tpu.reciprocal %398 {approx = true} : vector<4x1xf32> -> vector<4x1xf32>
    %400 = vector.broadcast %399 : vector<4x1xf32> to vector<4x4xf32>
    %401 = arith.mulf %396, %400 : vector<4x4xf32>
    %cst_185 = arith.constant dense<0.000000e+00> : vector<4x8xf32>
    %402 = tpu.matmul %401, %378, %cst_185 {dimension_numbers = #tpu.dot_dimension_numbers<[1], [0], [0], [1], [0, 0, 1, 1], [], []>} : vector<4x4xf32>, vector<4x8xf32>, vector<4x8xf32> -> vector<4x8xf32>
    %cst_186 = arith.constant 0.000000e+00 : f32
    %403 = vector.broadcast %cst_186 : f32 to vector<4x8xf32>
    %404 = arith.cmpf ogt, %402, %403 : vector<4x8xf32>
    %cst_187 = arith.constant 0.000000e+00 : f32
    %405 = vector.broadcast %cst_187 : f32 to vector<4x8xf32>
    %406 = arith.minimumf %402, %405 : vector<4x8xf32>
    %407 = math.exp %406 : vector<4x8xf32>
    %cst_188 = arith.constant 1.000000e+00 : f32
    %408 = vector.broadcast %cst_188 : f32 to vector<4x8xf32>
    %409 = arith.subf %407, %408 : vector<4x8xf32>
    %410 = arith.select %404, %402, %409 : vector<4x8xi1>, vector<4x8xf32>
    %c20_189 = arith.constant 20 : index
    %c8_190 = arith.constant 8 : index
    %411 = vector.load %arg9[%c20_189, %c8_190] : memref<32x16xf32, #tpu.memory_space<vmem>>, vector<4x8xf32>
    tpu.vector_store %arg9[%c20_189, %c8_190], %410 {strides = array<i32>} : memref<32x16xf32, #tpu.memory_space<vmem>>, vector<4x8xf32>,
    %412 = vector.extract_strided_slice %3 {offsets = [24, 0], sizes = [4, 8], strides = [1, 1]} : vector<32x16xf32> to vector<4x8xf32>
    %c0_191 = arith.constant 0 : index
    %c0_192 = arith.constant 0 : index
    %413 = vector.load %arg2[%c0_191, %c0_192] : memref<16x1xf32, #tpu.memory_space<vmem>>, vector<8x1xf32>
    %c0_193 = arith.constant 0 : index
    %c0_194 = arith.constant 0 : index
    %414 = vector.load %arg3[%c0_193, %c0_194] : memref<2x8xf32, #tpu.memory_space<vmem>>, vector<1x8xf32>
    %cst_195 = arith.constant dense<0.000000e+00> : vector<4x1xf32>
    %415 = tpu.matmul %412, %413, %cst_195 {dimension_numbers = #tpu.dot_dimension_numbers<[1], [0], [0], [1], [0, 0, 1, 1], [], []>} : vector<4x8xf32>, vector<8x1xf32>, vector<4x1xf32> -> vector<4x1xf32>
    %cst_196 = arith.constant dense<0.000000e+00> : vector<1x4xf32>
    %416 = tpu.matmul %414, %412, %cst_196 {dimension_numbers = #tpu.dot_dimension_numbers<[1], [1], [0], [0], [0, 0, 1, 0], [], []>} : vector<1x8xf32>, vector<4x8xf32>, vector<1x4xf32> -> vector<1x4xf32>
    %417 = vector.broadcast %415 : vector<4x1xf32> to vector<4x4xf32>
    %418 = vector.broadcast %416 : vector<1x4xf32> to vector<4x4xf32>
    %419 = arith.addf %417, %418 : vector<4x4xf32>
    %cst_197 = arith.constant 0.000000e+00 : f32
    %420 = vector.broadcast %cst_197 : f32 to vector<4x4xf32>
    %421 = arith.cmpf ogt, %419, %420 : vector<4x4xf32>
    %cst_198 = arith.constant 2.000000e-01 : f32
    %422 = vector.broadcast %cst_198 : f32 to vector<4x4xf32>
    %423 = arith.mulf %422, %419 : vector<4x4xf32>
    %424 = arith.select %421, %419, %423 : vector<4x4xi1>, vector<4x4xf32>
    %425 = arith.addf %424, %0 : vector<4x4xf32>
    %cst_199 = arith.constant dense<0xFF800000> : vector<4xf32>
    %426 = vector.multi_reduction <maximumf>, %425, %cst_199 [1] : vector<4x4xf32> to vector<4xf32>
    %427 = vector.shape_cast %426 : vector<4xf32> to vector<4x1xf32>
    %428 = vector.broadcast %427 : vector<4x1xf32> to vector<4x4xf32>
    %429 = arith.subf %425, %428 : vector<4x4xf32>
    %430 = math.exp %429 : vector<4x4xf32>
    %cst_200 = arith.constant dense<0.000000e+00> : vector<4xf32>
    %431 = vector.multi_reduction <add>, %430, %cst_200 [1] : vector<4x4xf32> to vector<4xf32>
    %432 = vector.shape_cast %431 : vector<4xf32> to vector<4x1xf32>
    %433 = tpu.reciprocal %432 {approx = true} : vector<4x1xf32> -> vector<4x1xf32>
    %434 = vector.broadcast %433 : vector<4x1xf32> to vector<4x4xf32>
    %435 = arith.mulf %430, %434 : vector<4x4xf32>
    %cst_201 = arith.constant dense<0.000000e+00> : vector<4x8xf32>
    %436 = tpu.matmul %435, %412, %cst_201 {dimension_numbers = #tpu.dot_dimension_numbers<[1], [0], [0], [1], [0, 0, 1, 1], [], []>} : vector<4x4xf32>, vector<4x8xf32>, vector<4x8xf32> -> vector<4x8xf32>
    %cst_202 = arith.constant 0.000000e+00 : f32
    %437 = vector.broadcast %cst_202 : f32 to vector<4x8xf32>
    %438 = arith.cmpf ogt, %436, %437 : vector<4x8xf32>
    %cst_203 = arith.constant 0.000000e+00 : f32
    %439 = vector.broadcast %cst_203 : f32 to vector<4x8xf32>
    %440 = arith.minimumf %436, %439 : vector<4x8xf32>
    %441 = math.exp %440 : vector<4x8xf32>
    %cst_204 = arith.constant 1.000000e+00 : f32
    %442 = vector.broadcast %cst_204 : f32 to vector<4x8xf32>
    %443 = arith.subf %441, %442 : vector<4x8xf32>
    %444 = arith.select %438, %436, %443 : vector<4x8xi1>, vector<4x8xf32>
    %c24 = arith.constant 24 : index
    %c0_205 = arith.constant 0 : index
    %445 = vector.load %arg9[%c24, %c0_205] : memref<32x16xf32, #tpu.memory_space<vmem>>, vector<4x8xf32>
    tpu.vector_store %arg9[%c24, %c0_205], %444 {strides = array<i32>} : memref<32x16xf32, #tpu.memory_space<vmem>>, vector<4x8xf32>,
    %446 = vector.extract_strided_slice %3 {offsets = [24, 8], sizes = [4, 8], strides = [1, 1]} : vector<32x16xf32> to vector<4x8xf32>
    %c8_206 = arith.constant 8 : index
    %c0_207 = arith.constant 0 : index
    %447 = vector.load %arg2[%c8_206, %c0_207] : memref<16x1xf32, #tpu.memory_space<vmem>>, vector<8x1xf32>
    %c1_208 = arith.constant 1 : index
    %c0_209 = arith.constant 0 : index
    %448 = vector.load %arg3[%c1_208, %c0_209] : memref<2x8xf32, #tpu.memory_space<vmem>>, vector<1x8xf32>
    %cst_210 = arith.constant dense<0.000000e+00> : vector<4x1xf32>
    %449 = tpu.matmul %446, %447, %cst_210 {dimension_numbers = #tpu.dot_dimension_numbers<[1], [0], [0], [1], [0, 0, 1, 1], [], []>} : vector<4x8xf32>, vector<8x1xf32>, vector<4x1xf32> -> vector<4x1xf32>
    %cst_211 = arith.constant dense<0.000000e+00> : vector<1x4xf32>
    %450 = tpu.matmul %448, %446, %cst_211 {dimension_numbers = #tpu.dot_dimension_numbers<[1], [1], [0], [0], [0, 0, 1, 0], [], []>} : vector<1x8xf32>, vector<4x8xf32>, vector<1x4xf32> -> vector<1x4xf32>
    %451 = vector.broadcast %449 : vector<4x1xf32> to vector<4x4xf32>
    %452 = vector.broadcast %450 : vector<1x4xf32> to vector<4x4xf32>
    %453 = arith.addf %451, %452 : vector<4x4xf32>
    %cst_212 = arith.constant 0.000000e+00 : f32
    %454 = vector.broadcast %cst_212 : f32 to vector<4x4xf32>
    %455 = arith.cmpf ogt, %453, %454 : vector<4x4xf32>
    %cst_213 = arith.constant 2.000000e-01 : f32
    %456 = vector.broadcast %cst_213 : f32 to vector<4x4xf32>
    %457 = arith.mulf %456, %453 : vector<4x4xf32>
    %458 = arith.select %455, %453, %457 : vector<4x4xi1>, vector<4x4xf32>
    %459 = arith.addf %458, %0 : vector<4x4xf32>
    %cst_214 = arith.constant dense<0xFF800000> : vector<4xf32>
    %460 = vector.multi_reduction <maximumf>, %459, %cst_214 [1] : vector<4x4xf32> to vector<4xf32>
    %461 = vector.shape_cast %460 : vector<4xf32> to vector<4x1xf32>
    %462 = vector.broadcast %461 : vector<4x1xf32> to vector<4x4xf32>
    %463 = arith.subf %459, %462 : vector<4x4xf32>
    %464 = math.exp %463 : vector<4x4xf32>
    %cst_215 = arith.constant dense<0.000000e+00> : vector<4xf32>
    %465 = vector.multi_reduction <add>, %464, %cst_215 [1] : vector<4x4xf32> to vector<4xf32>
    %466 = vector.shape_cast %465 : vector<4xf32> to vector<4x1xf32>
    %467 = tpu.reciprocal %466 {approx = true} : vector<4x1xf32> -> vector<4x1xf32>
    %468 = vector.broadcast %467 : vector<4x1xf32> to vector<4x4xf32>
    %469 = arith.mulf %464, %468 : vector<4x4xf32>
    %cst_216 = arith.constant dense<0.000000e+00> : vector<4x8xf32>
    %470 = tpu.matmul %469, %446, %cst_216 {dimension_numbers = #tpu.dot_dimension_numbers<[1], [0], [0], [1], [0, 0, 1, 1], [], []>} : vector<4x4xf32>, vector<4x8xf32>, vector<4x8xf32> -> vector<4x8xf32>
    %cst_217 = arith.constant 0.000000e+00 : f32
    %471 = vector.broadcast %cst_217 : f32 to vector<4x8xf32>
    %472 = arith.cmpf ogt, %470, %471 : vector<4x8xf32>
    %cst_218 = arith.constant 0.000000e+00 : f32
    %473 = vector.broadcast %cst_218 : f32 to vector<4x8xf32>
    %474 = arith.minimumf %470, %473 : vector<4x8xf32>
    %475 = math.exp %474 : vector<4x8xf32>
    %cst_219 = arith.constant 1.000000e+00 : f32
    %476 = vector.broadcast %cst_219 : f32 to vector<4x8xf32>
    %477 = arith.subf %475, %476 : vector<4x8xf32>
    %478 = arith.select %472, %470, %477 : vector<4x8xi1>, vector<4x8xf32>
    %c24_220 = arith.constant 24 : index
    %c8_221 = arith.constant 8 : index
    %479 = vector.load %arg9[%c24_220, %c8_221] : memref<32x16xf32, #tpu.memory_space<vmem>>, vector<4x8xf32>
    tpu.vector_store %arg9[%c24_220, %c8_221], %478 {strides = array<i32>} : memref<32x16xf32, #tpu.memory_space<vmem>>, vector<4x8xf32>,
    %480 = vector.extract_strided_slice %3 {offsets = [28, 0], sizes = [4, 8], strides = [1, 1]} : vector<32x16xf32> to vector<4x8xf32>
    %c0_222 = arith.constant 0 : index
    %c0_223 = arith.constant 0 : index
    %481 = vector.load %arg2[%c0_222, %c0_223] : memref<16x1xf32, #tpu.memory_space<vmem>>, vector<8x1xf32>
    %c0_224 = arith.constant 0 : index
    %c0_225 = arith.constant 0 : index
    %482 = vector.load %arg3[%c0_224, %c0_225] : memref<2x8xf32, #tpu.memory_space<vmem>>, vector<1x8xf32>
    %cst_226 = arith.constant dense<0.000000e+00> : vector<4x1xf32>
    %483 = tpu.matmul %480, %481, %cst_226 {dimension_numbers = #tpu.dot_dimension_numbers<[1], [0], [0], [1], [0, 0, 1, 1], [], []>} : vector<4x8xf32>, vector<8x1xf32>, vector<4x1xf32> -> vector<4x1xf32>
    %cst_227 = arith.constant dense<0.000000e+00> : vector<1x4xf32>
    %484 = tpu.matmul %482, %480, %cst_227 {dimension_numbers = #tpu.dot_dimension_numbers<[1], [1], [0], [0], [0, 0, 1, 0], [], []>} : vector<1x8xf32>, vector<4x8xf32>, vector<1x4xf32> -> vector<1x4xf32>
    %485 = vector.broadcast %483 : vector<4x1xf32> to vector<4x4xf32>
    %486 = vector.broadcast %484 : vector<1x4xf32> to vector<4x4xf32>
    %487 = arith.addf %485, %486 : vector<4x4xf32>
    %cst_228 = arith.constant 0.000000e+00 : f32
    %488 = vector.broadcast %cst_228 : f32 to vector<4x4xf32>
    %489 = arith.cmpf ogt, %487, %488 : vector<4x4xf32>
    %cst_229 = arith.constant 2.000000e-01 : f32
    %490 = vector.broadcast %cst_229 : f32 to vector<4x4xf32>
    %491 = arith.mulf %490, %487 : vector<4x4xf32>
    %492 = arith.select %489, %487, %491 : vector<4x4xi1>, vector<4x4xf32>
    %493 = arith.addf %492, %0 : vector<4x4xf32>
    %cst_230 = arith.constant dense<0xFF800000> : vector<4xf32>
    %494 = vector.multi_reduction <maximumf>, %493, %cst_230 [1] : vector<4x4xf32> to vector<4xf32>
    %495 = vector.shape_cast %494 : vector<4xf32> to vector<4x1xf32>
    %496 = vector.broadcast %495 : vector<4x1xf32> to vector<4x4xf32>
    %497 = arith.subf %493, %496 : vector<4x4xf32>
    %498 = math.exp %497 : vector<4x4xf32>
    %cst_231 = arith.constant dense<0.000000e+00> : vector<4xf32>
    %499 = vector.multi_reduction <add>, %498, %cst_231 [1] : vector<4x4xf32> to vector<4xf32>
    %500 = vector.shape_cast %499 : vector<4xf32> to vector<4x1xf32>
    %501 = tpu.reciprocal %500 {approx = true} : vector<4x1xf32> -> vector<4x1xf32>
    %502 = vector.broadcast %501 : vector<4x1xf32> to vector<4x4xf32>
    %503 = arith.mulf %498, %502 : vector<4x4xf32>
    %cst_232 = arith.constant dense<0.000000e+00> : vector<4x8xf32>
    %504 = tpu.matmul %503, %480, %cst_232 {dimension_numbers = #tpu.dot_dimension_numbers<[1], [0], [0], [1], [0, 0, 1, 1], [], []>} : vector<4x4xf32>, vector<4x8xf32>, vector<4x8xf32> -> vector<4x8xf32>
    %cst_233 = arith.constant 0.000000e+00 : f32
    %505 = vector.broadcast %cst_233 : f32 to vector<4x8xf32>
    %506 = arith.cmpf ogt, %504, %505 : vector<4x8xf32>
    %cst_234 = arith.constant 0.000000e+00 : f32
    %507 = vector.broadcast %cst_234 : f32 to vector<4x8xf32>
    %508 = arith.minimumf %504, %507 : vector<4x8xf32>
    %509 = math.exp %508 : vector<4x8xf32>
    %cst_235 = arith.constant 1.000000e+00 : f32
    %510 = vector.broadcast %cst_235 : f32 to vector<4x8xf32>
    %511 = arith.subf %509, %510 : vector<4x8xf32>
    %512 = arith.select %506, %504, %511 : vector<4x8xi1>, vector<4x8xf32>
    %c28 = arith.constant 28 : index
    %c0_236 = arith.constant 0 : index
    %513 = vector.load %arg9[%c28, %c0_236] : memref<32x16xf32, #tpu.memory_space<vmem>>, vector<4x8xf32>
    tpu.vector_store %arg9[%c28, %c0_236], %512 {strides = array<i32>} : memref<32x16xf32, #tpu.memory_space<vmem>>, vector<4x8xf32>,
    %514 = vector.extract_strided_slice %3 {offsets = [28, 8], sizes = [4, 8], strides = [1, 1]} : vector<32x16xf32> to vector<4x8xf32>
    %c8_237 = arith.constant 8 : index
    %c0_238 = arith.constant 0 : index
    %515 = vector.load %arg2[%c8_237, %c0_238] : memref<16x1xf32, #tpu.memory_space<vmem>>, vector<8x1xf32>
    %c1_239 = arith.constant 1 : index
    %c0_240 = arith.constant 0 : index
    %516 = vector.load %arg3[%c1_239, %c0_240] : memref<2x8xf32, #tpu.memory_space<vmem>>, vector<1x8xf32>
    %cst_241 = arith.constant dense<0.000000e+00> : vector<4x1xf32>
    %517 = tpu.matmul %514, %515, %cst_241 {dimension_numbers = #tpu.dot_dimension_numbers<[1], [0], [0], [1], [0, 0, 1, 1], [], []>} : vector<4x8xf32>, vector<8x1xf32>, vector<4x1xf32> -> vector<4x1xf32>
    %cst_242 = arith.constant dense<0.000000e+00> : vector<1x4xf32>
    %518 = tpu.matmul %516, %514, %cst_242 {dimension_numbers = #tpu.dot_dimension_numbers<[1], [1], [0], [0], [0, 0, 1, 0], [], []>} : vector<1x8xf32>, vector<4x8xf32>, vector<1x4xf32> -> vector<1x4xf32>
    %519 = vector.broadcast %517 : vector<4x1xf32> to vector<4x4xf32>
    %520 = vector.broadcast %518 : vector<1x4xf32> to vector<4x4xf32>
    %521 = arith.addf %519, %520 : vector<4x4xf32>
    %cst_243 = arith.constant 0.000000e+00 : f32
    %522 = vector.broadcast %cst_243 : f32 to vector<4x4xf32>
    %523 = arith.cmpf ogt, %521, %522 : vector<4x4xf32>
    %cst_244 = arith.constant 2.000000e-01 : f32
    %524 = vector.broadcast %cst_244 : f32 to vector<4x4xf32>
    %525 = arith.mulf %524, %521 : vector<4x4xf32>
    %526 = arith.select %523, %521, %525 : vector<4x4xi1>, vector<4x4xf32>
    %527 = arith.addf %526, %0 : vector<4x4xf32>
    %cst_245 = arith.constant dense<0xFF800000> : vector<4xf32>
    %528 = vector.multi_reduction <maximumf>, %527, %cst_245 [1] : vector<4x4xf32> to vector<4xf32>
    %529 = vector.shape_cast %528 : vector<4xf32> to vector<4x1xf32>
    %530 = vector.broadcast %529 : vector<4x1xf32> to vector<4x4xf32>
    %531 = arith.subf %527, %530 : vector<4x4xf32>
    %532 = math.exp %531 : vector<4x4xf32>
    %cst_246 = arith.constant dense<0.000000e+00> : vector<4xf32>
    %533 = vector.multi_reduction <add>, %532, %cst_246 [1] : vector<4x4xf32> to vector<4xf32>
    %534 = vector.shape_cast %533 : vector<4xf32> to vector<4x1xf32>
    %535 = tpu.reciprocal %534 {approx = true} : vector<4x1xf32> -> vector<4x1xf32>
    %536 = vector.broadcast %535 : vector<4x1xf32> to vector<4x4xf32>
    %537 = arith.mulf %532, %536 : vector<4x4xf32>
    %cst_247 = arith.constant dense<0.000000e+00> : vector<4x8xf32>
    %538 = tpu.matmul %537, %514, %cst_247 {dimension_numbers = #tpu.dot_dimension_numbers<[1], [0], [0], [1], [0, 0, 1, 1], [], []>} : vector<4x4xf32>, vector<4x8xf32>, vector<4x8xf32> -> vector<4x8xf32>
    %cst_248 = arith.constant 0.000000e+00 : f32
    %539 = vector.broadcast %cst_248 : f32 to vector<4x8xf32>
    %540 = arith.cmpf ogt, %538, %539 : vector<4x8xf32>
    %cst_249 = arith.constant 0.000000e+00 : f32
    %541 = vector.broadcast %cst_249 : f32 to vector<4x8xf32>
    %542 = arith.minimumf %538, %541 : vector<4x8xf32>
    %543 = math.exp %542 : vector<4x8xf32>
    %cst_250 = arith.constant 1.000000e+00 : f32
    %544 = vector.broadcast %cst_250 : f32 to vector<4x8xf32>
    %545 = arith.subf %543, %544 : vector<4x8xf32>
    %546 = arith.select %540, %538, %545 : vector<4x8xi1>, vector<4x8xf32>
    %c28_251 = arith.constant 28 : index
    %c8_252 = arith.constant 8 : index
    %547 = vector.load %arg9[%c28_251, %c8_252] : memref<32x16xf32, #tpu.memory_space<vmem>>, vector<4x8xf32>
    tpu.vector_store %arg9[%c28_251, %c8_252], %546 {strides = array<i32>} : memref<32x16xf32, #tpu.memory_space<vmem>>, vector<4x8xf32>,
    %c0_253 = arith.constant 0 : index
    %c0_254 = arith.constant 0 : index
    %548 = vector.load %arg9[%c0_253, %c0_254] : memref<32x16xf32, #tpu.memory_space<vmem>>, vector<32x16xf32>
    %c0_255 = arith.constant 0 : index
    %c0_256 = arith.constant 0 : index
    %549 = vector.load %arg5[%c0_255, %c0_256] : memref<16x4xf32, #tpu.memory_space<vmem>>, vector<16x4xf32>
    %cst_257 = arith.constant dense<0.000000e+00> : vector<32x4xf32>
    %550 = tpu.matmul %548, %549, %cst_257 {dimension_numbers = #tpu.dot_dimension_numbers<[1], [0], [0], [1], [0, 0, 1, 1], [], []>} : vector<32x16xf32>, vector<16x4xf32>, vector<32x4xf32> -> vector<32x4xf32>
    %551 = vector.extract_strided_slice %550 {offsets = [0, 0], sizes = [4, 4], strides = [1, 1]} : vector<32x4xf32> to vector<4x4xf32>
    %c0_258 = arith.constant 0 : index
    %c0_259 = arith.constant 0 : index
    %552 = vector.load %arg6[%c0_258, %c0_259] : memref<4x1xf32, #tpu.memory_space<vmem>>, vector<4x1xf32>
    %c0_260 = arith.constant 0 : index
    %c0_261 = arith.constant 0 : index
    %553 = vector.load %arg7[%c0_260, %c0_261] : memref<1x4xf32, #tpu.memory_space<vmem>>, vector<1x4xf32>
    %cst_262 = arith.constant dense<0.000000e+00> : vector<4x1xf32>
    %554 = tpu.matmul %551, %552, %cst_262 {dimension_numbers = #tpu.dot_dimension_numbers<[1], [0], [0], [1], [0, 0, 1, 1], [], []>} : vector<4x4xf32>, vector<4x1xf32>, vector<4x1xf32> -> vector<4x1xf32>
    %cst_263 = arith.constant dense<0.000000e+00> : vector<1x4xf32>
    %555 = tpu.matmul %553, %551, %cst_263 {dimension_numbers = #tpu.dot_dimension_numbers<[1], [1], [0], [0], [0, 0, 1, 0], [], []>} : vector<1x4xf32>, vector<4x4xf32>, vector<1x4xf32> -> vector<1x4xf32>
    %556 = vector.broadcast %554 : vector<4x1xf32> to vector<4x4xf32>
    %557 = vector.broadcast %555 : vector<1x4xf32> to vector<4x4xf32>
    %558 = arith.addf %556, %557 : vector<4x4xf32>
    %cst_264 = arith.constant 0.000000e+00 : f32
    %559 = vector.broadcast %cst_264 : f32 to vector<4x4xf32>
    %560 = arith.cmpf ogt, %558, %559 : vector<4x4xf32>
    %cst_265 = arith.constant 2.000000e-01 : f32
    %561 = vector.broadcast %cst_265 : f32 to vector<4x4xf32>
    %562 = arith.mulf %561, %558 : vector<4x4xf32>
    %563 = arith.select %560, %558, %562 : vector<4x4xi1>, vector<4x4xf32>
    %564 = arith.addf %563, %0 : vector<4x4xf32>
    %cst_266 = arith.constant dense<0xFF800000> : vector<4xf32>
    %565 = vector.multi_reduction <maximumf>, %564, %cst_266 [1] : vector<4x4xf32> to vector<4xf32>
    %566 = vector.shape_cast %565 : vector<4xf32> to vector<4x1xf32>
    %567 = vector.broadcast %566 : vector<4x1xf32> to vector<4x4xf32>
    %568 = arith.subf %564, %567 : vector<4x4xf32>
    %569 = math.exp %568 : vector<4x4xf32>
    %cst_267 = arith.constant dense<0.000000e+00> : vector<4xf32>
    %570 = vector.multi_reduction <add>, %569, %cst_267 [1] : vector<4x4xf32> to vector<4xf32>
    %571 = vector.shape_cast %570 : vector<4xf32> to vector<4x1xf32>
    %572 = tpu.reciprocal %571 {approx = true} : vector<4x1xf32> -> vector<4x1xf32>
    %573 = vector.broadcast %572 : vector<4x1xf32> to vector<4x4xf32>
    %574 = arith.mulf %569, %573 : vector<4x4xf32>
    %cst_268 = arith.constant dense<0.000000e+00> : vector<4x4xf32>
    %575 = tpu.matmul %574, %551, %cst_268 {dimension_numbers = #tpu.dot_dimension_numbers<[1], [0], [0], [1], [0, 0, 1, 1], [], []>} : vector<4x4xf32>, vector<4x4xf32>, vector<4x4xf32> -> vector<4x4xf32>
    %cst_269 = arith.constant 0.000000e+00 : f32
    %576 = vector.broadcast %cst_269 : f32 to vector<4x4xf32>
    %577 = arith.cmpf ogt, %575, %576 : vector<4x4xf32>
    %cst_270 = arith.constant 0.000000e+00 : f32
    %578 = vector.broadcast %cst_270 : f32 to vector<4x4xf32>
    %579 = arith.minimumf %575, %578 : vector<4x4xf32>
    %580 = math.exp %579 : vector<4x4xf32>
    %cst_271 = arith.constant 1.000000e+00 : f32
    %581 = vector.broadcast %cst_271 : f32 to vector<4x4xf32>
    %582 = arith.subf %580, %581 : vector<4x4xf32>
    %583 = arith.select %577, %575, %582 : vector<4x4xi1>, vector<4x4xf32>
    %c0_272 = arith.constant 0 : index
    %c0_273 = arith.constant 0 : index
    %584 = vector.load %arg8[%c0_272, %c0_273] : memref<32x4xf32, #tpu.memory_space<vmem>>, vector<4x4xf32>
    tpu.vector_store %arg8[%c0_272, %c0_273], %583 {strides = array<i32>} : memref<32x4xf32, #tpu.memory_space<vmem>>, vector<4x4xf32>,
    %585 = vector.extract_strided_slice %550 {offsets = [4, 0], sizes = [4, 4], strides = [1, 1]} : vector<32x4xf32> to vector<4x4xf32>
    %c0_274 = arith.constant 0 : index
    %c0_275 = arith.constant 0 : index
    %586 = vector.load %arg6[%c0_274, %c0_275] : memref<4x1xf32, #tpu.memory_space<vmem>>, vector<4x1xf32>
    %c0_276 = arith.constant 0 : index
    %c0_277 = arith.constant 0 : index
    %587 = vector.load %arg7[%c0_276, %c0_277] : memref<1x4xf32, #tpu.memory_space<vmem>>, vector<1x4xf32>
    %cst_278 = arith.constant dense<0.000000e+00> : vector<4x1xf32>
    %588 = tpu.matmul %585, %586, %cst_278 {dimension_numbers = #tpu.dot_dimension_numbers<[1], [0], [0], [1], [0, 0, 1, 1], [], []>} : vector<4x4xf32>, vector<4x1xf32>, vector<4x1xf32> -> vector<4x1xf32>
    %cst_279 = arith.constant dense<0.000000e+00> : vector<1x4xf32>
    %589 = tpu.matmul %587, %585, %cst_279 {dimension_numbers = #tpu.dot_dimension_numbers<[1], [1], [0], [0], [0, 0, 1, 0], [], []>} : vector<1x4xf32>, vector<4x4xf32>, vector<1x4xf32> -> vector<1x4xf32>
    %590 = vector.broadcast %588 : vector<4x1xf32> to vector<4x4xf32>
    %591 = vector.broadcast %589 : vector<1x4xf32> to vector<4x4xf32>
    %592 = arith.addf %590, %591 : vector<4x4xf32>
    %cst_280 = arith.constant 0.000000e+00 : f32
    %593 = vector.broadcast %cst_280 : f32 to vector<4x4xf32>
    %594 = arith.cmpf ogt, %592, %593 : vector<4x4xf32>
    %cst_281 = arith.constant 2.000000e-01 : f32
    %595 = vector.broadcast %cst_281 : f32 to vector<4x4xf32>
    %596 = arith.mulf %595, %592 : vector<4x4xf32>
    %597 = arith.select %594, %592, %596 : vector<4x4xi1>, vector<4x4xf32>
    %598 = arith.addf %597, %0 : vector<4x4xf32>
    %cst_282 = arith.constant dense<0xFF800000> : vector<4xf32>
    %599 = vector.multi_reduction <maximumf>, %598, %cst_282 [1] : vector<4x4xf32> to vector<4xf32>
    %600 = vector.shape_cast %599 : vector<4xf32> to vector<4x1xf32>
    %601 = vector.broadcast %600 : vector<4x1xf32> to vector<4x4xf32>
    %602 = arith.subf %598, %601 : vector<4x4xf32>
    %603 = math.exp %602 : vector<4x4xf32>
    %cst_283 = arith.constant dense<0.000000e+00> : vector<4xf32>
    %604 = vector.multi_reduction <add>, %603, %cst_283 [1] : vector<4x4xf32> to vector<4xf32>
    %605 = vector.shape_cast %604 : vector<4xf32> to vector<4x1xf32>
    %606 = tpu.reciprocal %605 {approx = true} : vector<4x1xf32> -> vector<4x1xf32>
    %607 = vector.broadcast %606 : vector<4x1xf32> to vector<4x4xf32>
    %608 = arith.mulf %603, %607 : vector<4x4xf32>
    %cst_284 = arith.constant dense<0.000000e+00> : vector<4x4xf32>
    %609 = tpu.matmul %608, %585, %cst_284 {dimension_numbers = #tpu.dot_dimension_numbers<[1], [0], [0], [1], [0, 0, 1, 1], [], []>} : vector<4x4xf32>, vector<4x4xf32>, vector<4x4xf32> -> vector<4x4xf32>
    %cst_285 = arith.constant 0.000000e+00 : f32
    %610 = vector.broadcast %cst_285 : f32 to vector<4x4xf32>
    %611 = arith.cmpf ogt, %609, %610 : vector<4x4xf32>
    %cst_286 = arith.constant 0.000000e+00 : f32
    %612 = vector.broadcast %cst_286 : f32 to vector<4x4xf32>
    %613 = arith.minimumf %609, %612 : vector<4x4xf32>
    %614 = math.exp %613 : vector<4x4xf32>
    %cst_287 = arith.constant 1.000000e+00 : f32
    %615 = vector.broadcast %cst_287 : f32 to vector<4x4xf32>
    %616 = arith.subf %614, %615 : vector<4x4xf32>
    %617 = arith.select %611, %609, %616 : vector<4x4xi1>, vector<4x4xf32>
    %c4_288 = arith.constant 4 : index
    %c0_289 = arith.constant 0 : index
    %618 = vector.load %arg8[%c4_288, %c0_289] : memref<32x4xf32, #tpu.memory_space<vmem>>, vector<4x4xf32>
    tpu.vector_store %arg8[%c4_288, %c0_289], %617 {strides = array<i32>} : memref<32x4xf32, #tpu.memory_space<vmem>>, vector<4x4xf32>,
    %619 = vector.extract_strided_slice %550 {offsets = [8, 0], sizes = [4, 4], strides = [1, 1]} : vector<32x4xf32> to vector<4x4xf32>
    %c0_290 = arith.constant 0 : index
    %c0_291 = arith.constant 0 : index
    %620 = vector.load %arg6[%c0_290, %c0_291] : memref<4x1xf32, #tpu.memory_space<vmem>>, vector<4x1xf32>
    %c0_292 = arith.constant 0 : index
    %c0_293 = arith.constant 0 : index
    %621 = vector.load %arg7[%c0_292, %c0_293] : memref<1x4xf32, #tpu.memory_space<vmem>>, vector<1x4xf32>
    %cst_294 = arith.constant dense<0.000000e+00> : vector<4x1xf32>
    %622 = tpu.matmul %619, %620, %cst_294 {dimension_numbers = #tpu.dot_dimension_numbers<[1], [0], [0], [1], [0, 0, 1, 1], [], []>} : vector<4x4xf32>, vector<4x1xf32>, vector<4x1xf32> -> vector<4x1xf32>
    %cst_295 = arith.constant dense<0.000000e+00> : vector<1x4xf32>
    %623 = tpu.matmul %621, %619, %cst_295 {dimension_numbers = #tpu.dot_dimension_numbers<[1], [1], [0], [0], [0, 0, 1, 0], [], []>} : vector<1x4xf32>, vector<4x4xf32>, vector<1x4xf32> -> vector<1x4xf32>
    %624 = vector.broadcast %622 : vector<4x1xf32> to vector<4x4xf32>
    %625 = vector.broadcast %623 : vector<1x4xf32> to vector<4x4xf32>
    %626 = arith.addf %624, %625 : vector<4x4xf32>
    %cst_296 = arith.constant 0.000000e+00 : f32
    %627 = vector.broadcast %cst_296 : f32 to vector<4x4xf32>
    %628 = arith.cmpf ogt, %626, %627 : vector<4x4xf32>
    %cst_297 = arith.constant 2.000000e-01 : f32
    %629 = vector.broadcast %cst_297 : f32 to vector<4x4xf32>
    %630 = arith.mulf %629, %626 : vector<4x4xf32>
    %631 = arith.select %628, %626, %630 : vector<4x4xi1>, vector<4x4xf32>
    %632 = arith.addf %631, %0 : vector<4x4xf32>
    %cst_298 = arith.constant dense<0xFF800000> : vector<4xf32>
    %633 = vector.multi_reduction <maximumf>, %632, %cst_298 [1] : vector<4x4xf32> to vector<4xf32>
    %634 = vector.shape_cast %633 : vector<4xf32> to vector<4x1xf32>
    %635 = vector.broadcast %634 : vector<4x1xf32> to vector<4x4xf32>
    %636 = arith.subf %632, %635 : vector<4x4xf32>
    %637 = math.exp %636 : vector<4x4xf32>
    %cst_299 = arith.constant dense<0.000000e+00> : vector<4xf32>
    %638 = vector.multi_reduction <add>, %637, %cst_299 [1] : vector<4x4xf32> to vector<4xf32>
    %639 = vector.shape_cast %638 : vector<4xf32> to vector<4x1xf32>
    %640 = tpu.reciprocal %639 {approx = true} : vector<4x1xf32> -> vector<4x1xf32>
    %641 = vector.broadcast %640 : vector<4x1xf32> to vector<4x4xf32>
    %642 = arith.mulf %637, %641 : vector<4x4xf32>
    %cst_300 = arith.constant dense<0.000000e+00> : vector<4x4xf32>
    %643 = tpu.matmul %642, %619, %cst_300 {dimension_numbers = #tpu.dot_dimension_numbers<[1], [0], [0], [1], [0, 0, 1, 1], [], []>} : vector<4x4xf32>, vector<4x4xf32>, vector<4x4xf32> -> vector<4x4xf32>
    %cst_301 = arith.constant 0.000000e+00 : f32
    %644 = vector.broadcast %cst_301 : f32 to vector<4x4xf32>
    %645 = arith.cmpf ogt, %643, %644 : vector<4x4xf32>
    %cst_302 = arith.constant 0.000000e+00 : f32
    %646 = vector.broadcast %cst_302 : f32 to vector<4x4xf32>
    %647 = arith.minimumf %643, %646 : vector<4x4xf32>
    %648 = math.exp %647 : vector<4x4xf32>
    %cst_303 = arith.constant 1.000000e+00 : f32
    %649 = vector.broadcast %cst_303 : f32 to vector<4x4xf32>
    %650 = arith.subf %648, %649 : vector<4x4xf32>
    %651 = arith.select %645, %643, %650 : vector<4x4xi1>, vector<4x4xf32>
    %c8_304 = arith.constant 8 : index
    %c0_305 = arith.constant 0 : index
    %652 = vector.load %arg8[%c8_304, %c0_305] : memref<32x4xf32, #tpu.memory_space<vmem>>, vector<4x4xf32>
    tpu.vector_store %arg8[%c8_304, %c0_305], %651 {strides = array<i32>} : memref<32x4xf32, #tpu.memory_space<vmem>>, vector<4x4xf32>,
    %653 = vector.extract_strided_slice %550 {offsets = [12, 0], sizes = [4, 4], strides = [1, 1]} : vector<32x4xf32> to vector<4x4xf32>
    %c0_306 = arith.constant 0 : index
    %c0_307 = arith.constant 0 : index
    %654 = vector.load %arg6[%c0_306, %c0_307] : memref<4x1xf32, #tpu.memory_space<vmem>>, vector<4x1xf32>
    %c0_308 = arith.constant 0 : index
    %c0_309 = arith.constant 0 : index
    %655 = vector.load %arg7[%c0_308, %c0_309] : memref<1x4xf32, #tpu.memory_space<vmem>>, vector<1x4xf32>
    %cst_310 = arith.constant dense<0.000000e+00> : vector<4x1xf32>
    %656 = tpu.matmul %653, %654, %cst_310 {dimension_numbers = #tpu.dot_dimension_numbers<[1], [0], [0], [1], [0, 0, 1, 1], [], []>} : vector<4x4xf32>, vector<4x1xf32>, vector<4x1xf32> -> vector<4x1xf32>
    %cst_311 = arith.constant dense<0.000000e+00> : vector<1x4xf32>
    %657 = tpu.matmul %655, %653, %cst_311 {dimension_numbers = #tpu.dot_dimension_numbers<[1], [1], [0], [0], [0, 0, 1, 0], [], []>} : vector<1x4xf32>, vector<4x4xf32>, vector<1x4xf32> -> vector<1x4xf32>
    %658 = vector.broadcast %656 : vector<4x1xf32> to vector<4x4xf32>
    %659 = vector.broadcast %657 : vector<1x4xf32> to vector<4x4xf32>
    %660 = arith.addf %658, %659 : vector<4x4xf32>
    %cst_312 = arith.constant 0.000000e+00 : f32
    %661 = vector.broadcast %cst_312 : f32 to vector<4x4xf32>
    %662 = arith.cmpf ogt, %660, %661 : vector<4x4xf32>
    %cst_313 = arith.constant 2.000000e-01 : f32
    %663 = vector.broadcast %cst_313 : f32 to vector<4x4xf32>
    %664 = arith.mulf %663, %660 : vector<4x4xf32>
    %665 = arith.select %662, %660, %664 : vector<4x4xi1>, vector<4x4xf32>
    %666 = arith.addf %665, %0 : vector<4x4xf32>
    %cst_314 = arith.constant dense<0xFF800000> : vector<4xf32>
    %667 = vector.multi_reduction <maximumf>, %666, %cst_314 [1] : vector<4x4xf32> to vector<4xf32>
    %668 = vector.shape_cast %667 : vector<4xf32> to vector<4x1xf32>
    %669 = vector.broadcast %668 : vector<4x1xf32> to vector<4x4xf32>
    %670 = arith.subf %666, %669 : vector<4x4xf32>
    %671 = math.exp %670 : vector<4x4xf32>
    %cst_315 = arith.constant dense<0.000000e+00> : vector<4xf32>
    %672 = vector.multi_reduction <add>, %671, %cst_315 [1] : vector<4x4xf32> to vector<4xf32>
    %673 = vector.shape_cast %672 : vector<4xf32> to vector<4x1xf32>
    %674 = tpu.reciprocal %673 {approx = true} : vector<4x1xf32> -> vector<4x1xf32>
    %675 = vector.broadcast %674 : vector<4x1xf32> to vector<4x4xf32>
    %676 = arith.mulf %671, %675 : vector<4x4xf32>
    %cst_316 = arith.constant dense<0.000000e+00> : vector<4x4xf32>
    %677 = tpu.matmul %676, %653, %cst_316 {dimension_numbers = #tpu.dot_dimension_numbers<[1], [0], [0], [1], [0, 0, 1, 1], [], []>} : vector<4x4xf32>, vector<4x4xf32>, vector<4x4xf32> -> vector<4x4xf32>
    %cst_317 = arith.constant 0.000000e+00 : f32
    %678 = vector.broadcast %cst_317 : f32 to vector<4x4xf32>
    %679 = arith.cmpf ogt, %677, %678 : vector<4x4xf32>
    %cst_318 = arith.constant 0.000000e+00 : f32
    %680 = vector.broadcast %cst_318 : f32 to vector<4x4xf32>
    %681 = arith.minimumf %677, %680 : vector<4x4xf32>
    %682 = math.exp %681 : vector<4x4xf32>
    %cst_319 = arith.constant 1.000000e+00 : f32
    %683 = vector.broadcast %cst_319 : f32 to vector<4x4xf32>
    %684 = arith.subf %682, %683 : vector<4x4xf32>
    %685 = arith.select %679, %677, %684 : vector<4x4xi1>, vector<4x4xf32>
    %c12_320 = arith.constant 12 : index
    %c0_321 = arith.constant 0 : index
    %686 = vector.load %arg8[%c12_320, %c0_321] : memref<32x4xf32, #tpu.memory_space<vmem>>, vector<4x4xf32>
    tpu.vector_store %arg8[%c12_320, %c0_321], %685 {strides = array<i32>} : memref<32x4xf32, #tpu.memory_space<vmem>>, vector<4x4xf32>,
    %687 = vector.extract_strided_slice %550 {offsets = [16, 0], sizes = [4, 4], strides = [1, 1]} : vector<32x4xf32> to vector<4x4xf32>
    %c0_322 = arith.constant 0 : index
    %c0_323 = arith.constant 0 : index
    %688 = vector.load %arg6[%c0_322, %c0_323] : memref<4x1xf32, #tpu.memory_space<vmem>>, vector<4x1xf32>
    %c0_324 = arith.constant 0 : index
    %c0_325 = arith.constant 0 : index
    %689 = vector.load %arg7[%c0_324, %c0_325] : memref<1x4xf32, #tpu.memory_space<vmem>>, vector<1x4xf32>
    %cst_326 = arith.constant dense<0.000000e+00> : vector<4x1xf32>
    %690 = tpu.matmul %687, %688, %cst_326 {dimension_numbers = #tpu.dot_dimension_numbers<[1], [0], [0], [1], [0, 0, 1, 1], [], []>} : vector<4x4xf32>, vector<4x1xf32>, vector<4x1xf32> -> vector<4x1xf32>
    %cst_327 = arith.constant dense<0.000000e+00> : vector<1x4xf32>
    %691 = tpu.matmul %689, %687, %cst_327 {dimension_numbers = #tpu.dot_dimension_numbers<[1], [1], [0], [0], [0, 0, 1, 0], [], []>} : vector<1x4xf32>, vector<4x4xf32>, vector<1x4xf32> -> vector<1x4xf32>
    %692 = vector.broadcast %690 : vector<4x1xf32> to vector<4x4xf32>
    %693 = vector.broadcast %691 : vector<1x4xf32> to vector<4x4xf32>
    %694 = arith.addf %692, %693 : vector<4x4xf32>
    %cst_328 = arith.constant 0.000000e+00 : f32
    %695 = vector.broadcast %cst_328 : f32 to vector<4x4xf32>
    %696 = arith.cmpf ogt, %694, %695 : vector<4x4xf32>
    %cst_329 = arith.constant 2.000000e-01 : f32
    %697 = vector.broadcast %cst_329 : f32 to vector<4x4xf32>
    %698 = arith.mulf %697, %694 : vector<4x4xf32>
    %699 = arith.select %696, %694, %698 : vector<4x4xi1>, vector<4x4xf32>
    %700 = arith.addf %699, %0 : vector<4x4xf32>
    %cst_330 = arith.constant dense<0xFF800000> : vector<4xf32>
    %701 = vector.multi_reduction <maximumf>, %700, %cst_330 [1] : vector<4x4xf32> to vector<4xf32>
    %702 = vector.shape_cast %701 : vector<4xf32> to vector<4x1xf32>
    %703 = vector.broadcast %702 : vector<4x1xf32> to vector<4x4xf32>
    %704 = arith.subf %700, %703 : vector<4x4xf32>
    %705 = math.exp %704 : vector<4x4xf32>
    %cst_331 = arith.constant dense<0.000000e+00> : vector<4xf32>
    %706 = vector.multi_reduction <add>, %705, %cst_331 [1] : vector<4x4xf32> to vector<4xf32>
    %707 = vector.shape_cast %706 : vector<4xf32> to vector<4x1xf32>
    %708 = tpu.reciprocal %707 {approx = true} : vector<4x1xf32> -> vector<4x1xf32>
    %709 = vector.broadcast %708 : vector<4x1xf32> to vector<4x4xf32>
    %710 = arith.mulf %705, %709 : vector<4x4xf32>
    %cst_332 = arith.constant dense<0.000000e+00> : vector<4x4xf32>
    %711 = tpu.matmul %710, %687, %cst_332 {dimension_numbers = #tpu.dot_dimension_numbers<[1], [0], [0], [1], [0, 0, 1, 1], [], []>} : vector<4x4xf32>, vector<4x4xf32>, vector<4x4xf32> -> vector<4x4xf32>
    %cst_333 = arith.constant 0.000000e+00 : f32
    %712 = vector.broadcast %cst_333 : f32 to vector<4x4xf32>
    %713 = arith.cmpf ogt, %711, %712 : vector<4x4xf32>
    %cst_334 = arith.constant 0.000000e+00 : f32
    %714 = vector.broadcast %cst_334 : f32 to vector<4x4xf32>
    %715 = arith.minimumf %711, %714 : vector<4x4xf32>
    %716 = math.exp %715 : vector<4x4xf32>
    %cst_335 = arith.constant 1.000000e+00 : f32
    %717 = vector.broadcast %cst_335 : f32 to vector<4x4xf32>
    %718 = arith.subf %716, %717 : vector<4x4xf32>
    %719 = arith.select %713, %711, %718 : vector<4x4xi1>, vector<4x4xf32>
    %c16_336 = arith.constant 16 : index
    %c0_337 = arith.constant 0 : index
    %720 = vector.load %arg8[%c16_336, %c0_337] : memref<32x4xf32, #tpu.memory_space<vmem>>, vector<4x4xf32>
    tpu.vector_store %arg8[%c16_336, %c0_337], %719 {strides = array<i32>} : memref<32x4xf32, #tpu.memory_space<vmem>>, vector<4x4xf32>,
    %721 = vector.extract_strided_slice %550 {offsets = [20, 0], sizes = [4, 4], strides = [1, 1]} : vector<32x4xf32> to vector<4x4xf32>
    %c0_338 = arith.constant 0 : index
    %c0_339 = arith.constant 0 : index
    %722 = vector.load %arg6[%c0_338, %c0_339] : memref<4x1xf32, #tpu.memory_space<vmem>>, vector<4x1xf32>
    %c0_340 = arith.constant 0 : index
    %c0_341 = arith.constant 0 : index
    %723 = vector.load %arg7[%c0_340, %c0_341] : memref<1x4xf32, #tpu.memory_space<vmem>>, vector<1x4xf32>
    %cst_342 = arith.constant dense<0.000000e+00> : vector<4x1xf32>
    %724 = tpu.matmul %721, %722, %cst_342 {dimension_numbers = #tpu.dot_dimension_numbers<[1], [0], [0], [1], [0, 0, 1, 1], [], []>} : vector<4x4xf32>, vector<4x1xf32>, vector<4x1xf32> -> vector<4x1xf32>
    %cst_343 = arith.constant dense<0.000000e+00> : vector<1x4xf32>
    %725 = tpu.matmul %723, %721, %cst_343 {dimension_numbers = #tpu.dot_dimension_numbers<[1], [1], [0], [0], [0, 0, 1, 0], [], []>} : vector<1x4xf32>, vector<4x4xf32>, vector<1x4xf32> -> vector<1x4xf32>
    %726 = vector.broadcast %724 : vector<4x1xf32> to vector<4x4xf32>
    %727 = vector.broadcast %725 : vector<1x4xf32> to vector<4x4xf32>
    %728 = arith.addf %726, %727 : vector<4x4xf32>
    %cst_344 = arith.constant 0.000000e+00 : f32
    %729 = vector.broadcast %cst_344 : f32 to vector<4x4xf32>
    %730 = arith.cmpf ogt, %728, %729 : vector<4x4xf32>
    %cst_345 = arith.constant 2.000000e-01 : f32
    %731 = vector.broadcast %cst_345 : f32 to vector<4x4xf32>
    %732 = arith.mulf %731, %728 : vector<4x4xf32>
    %733 = arith.select %730, %728, %732 : vector<4x4xi1>, vector<4x4xf32>
    %734 = arith.addf %733, %0 : vector<4x4xf32>
    %cst_346 = arith.constant dense<0xFF800000> : vector<4xf32>
    %735 = vector.multi_reduction <maximumf>, %734, %cst_346 [1] : vector<4x4xf32> to vector<4xf32>
    %736 = vector.shape_cast %735 : vector<4xf32> to vector<4x1xf32>
    %737 = vector.broadcast %736 : vector<4x1xf32> to vector<4x4xf32>
    %738 = arith.subf %734, %737 : vector<4x4xf32>
    %739 = math.exp %738 : vector<4x4xf32>
    %cst_347 = arith.constant dense<0.000000e+00> : vector<4xf32>
    %740 = vector.multi_reduction <add>, %739, %cst_347 [1] : vector<4x4xf32> to vector<4xf32>
    %741 = vector.shape_cast %740 : vector<4xf32> to vector<4x1xf32>
    %742 = tpu.reciprocal %741 {approx = true} : vector<4x1xf32> -> vector<4x1xf32>
    %743 = vector.broadcast %742 : vector<4x1xf32> to vector<4x4xf32>
    %744 = arith.mulf %739, %743 : vector<4x4xf32>
    %cst_348 = arith.constant dense<0.000000e+00> : vector<4x4xf32>
    %745 = tpu.matmul %744, %721, %cst_348 {dimension_numbers = #tpu.dot_dimension_numbers<[1], [0], [0], [1], [0, 0, 1, 1], [], []>} : vector<4x4xf32>, vector<4x4xf32>, vector<4x4xf32> -> vector<4x4xf32>
    %cst_349 = arith.constant 0.000000e+00 : f32
    %746 = vector.broadcast %cst_349 : f32 to vector<4x4xf32>
    %747 = arith.cmpf ogt, %745, %746 : vector<4x4xf32>
    %cst_350 = arith.constant 0.000000e+00 : f32
    %748 = vector.broadcast %cst_350 : f32 to vector<4x4xf32>
    %749 = arith.minimumf %745, %748 : vector<4x4xf32>
    %750 = math.exp %749 : vector<4x4xf32>
    %cst_351 = arith.constant 1.000000e+00 : f32
    %751 = vector.broadcast %cst_351 : f32 to vector<4x4xf32>
    %752 = arith.subf %750, %751 : vector<4x4xf32>
    %753 = arith.select %747, %745, %752 : vector<4x4xi1>, vector<4x4xf32>
    %c20_352 = arith.constant 20 : index
    %c0_353 = arith.constant 0 : index
    %754 = vector.load %arg8[%c20_352, %c0_353] : memref<32x4xf32, #tpu.memory_space<vmem>>, vector<4x4xf32>
    tpu.vector_store %arg8[%c20_352, %c0_353], %753 {strides = array<i32>} : memref<32x4xf32, #tpu.memory_space<vmem>>, vector<4x4xf32>,
    %755 = vector.extract_strided_slice %550 {offsets = [24, 0], sizes = [4, 4], strides = [1, 1]} : vector<32x4xf32> to vector<4x4xf32>
    %c0_354 = arith.constant 0 : index
    %c0_355 = arith.constant 0 : index
    %756 = vector.load %arg6[%c0_354, %c0_355] : memref<4x1xf32, #tpu.memory_space<vmem>>, vector<4x1xf32>
    %c0_356 = arith.constant 0 : index
    %c0_357 = arith.constant 0 : index
    %757 = vector.load %arg7[%c0_356, %c0_357] : memref<1x4xf32, #tpu.memory_space<vmem>>, vector<1x4xf32>
    %cst_358 = arith.constant dense<0.000000e+00> : vector<4x1xf32>
    %758 = tpu.matmul %755, %756, %cst_358 {dimension_numbers = #tpu.dot_dimension_numbers<[1], [0], [0], [1], [0, 0, 1, 1], [], []>} : vector<4x4xf32>, vector<4x1xf32>, vector<4x1xf32> -> vector<4x1xf32>
    %cst_359 = arith.constant dense<0.000000e+00> : vector<1x4xf32>
    %759 = tpu.matmul %757, %755, %cst_359 {dimension_numbers = #tpu.dot_dimension_numbers<[1], [1], [0], [0], [0, 0, 1, 0], [], []>} : vector<1x4xf32>, vector<4x4xf32>, vector<1x4xf32> -> vector<1x4xf32>
    %760 = vector.broadcast %758 : vector<4x1xf32> to vector<4x4xf32>
    %761 = vector.broadcast %759 : vector<1x4xf32> to vector<4x4xf32>
    %762 = arith.addf %760, %761 : vector<4x4xf32>
    %cst_360 = arith.constant 0.000000e+00 : f32
    %763 = vector.broadcast %cst_360 : f32 to vector<4x4xf32>
    %764 = arith.cmpf ogt, %762, %763 : vector<4x4xf32>
    %cst_361 = arith.constant 2.000000e-01 : f32
    %765 = vector.broadcast %cst_361 : f32 to vector<4x4xf32>
    %766 = arith.mulf %765, %762 : vector<4x4xf32>
    %767 = arith.select %764, %762, %766 : vector<4x4xi1>, vector<4x4xf32>
    %768 = arith.addf %767, %0 : vector<4x4xf32>
    %cst_362 = arith.constant dense<0xFF800000> : vector<4xf32>
    %769 = vector.multi_reduction <maximumf>, %768, %cst_362 [1] : vector<4x4xf32> to vector<4xf32>
    %770 = vector.shape_cast %769 : vector<4xf32> to vector<4x1xf32>
    %771 = vector.broadcast %770 : vector<4x1xf32> to vector<4x4xf32>
    %772 = arith.subf %768, %771 : vector<4x4xf32>
    %773 = math.exp %772 : vector<4x4xf32>
    %cst_363 = arith.constant dense<0.000000e+00> : vector<4xf32>
    %774 = vector.multi_reduction <add>, %773, %cst_363 [1] : vector<4x4xf32> to vector<4xf32>
    %775 = vector.shape_cast %774 : vector<4xf32> to vector<4x1xf32>
    %776 = tpu.reciprocal %775 {approx = true} : vector<4x1xf32> -> vector<4x1xf32>
    %777 = vector.broadcast %776 : vector<4x1xf32> to vector<4x4xf32>
    %778 = arith.mulf %773, %777 : vector<4x4xf32>
    %cst_364 = arith.constant dense<0.000000e+00> : vector<4x4xf32>
    %779 = tpu.matmul %778, %755, %cst_364 {dimension_numbers = #tpu.dot_dimension_numbers<[1], [0], [0], [1], [0, 0, 1, 1], [], []>} : vector<4x4xf32>, vector<4x4xf32>, vector<4x4xf32> -> vector<4x4xf32>
    %cst_365 = arith.constant 0.000000e+00 : f32
    %780 = vector.broadcast %cst_365 : f32 to vector<4x4xf32>
    %781 = arith.cmpf ogt, %779, %780 : vector<4x4xf32>
    %cst_366 = arith.constant 0.000000e+00 : f32
    %782 = vector.broadcast %cst_366 : f32 to vector<4x4xf32>
    %783 = arith.minimumf %779, %782 : vector<4x4xf32>
    %784 = math.exp %783 : vector<4x4xf32>
    %cst_367 = arith.constant 1.000000e+00 : f32
    %785 = vector.broadcast %cst_367 : f32 to vector<4x4xf32>
    %786 = arith.subf %784, %785 : vector<4x4xf32>
    %787 = arith.select %781, %779, %786 : vector<4x4xi1>, vector<4x4xf32>
    %c24_368 = arith.constant 24 : index
    %c0_369 = arith.constant 0 : index
    %788 = vector.load %arg8[%c24_368, %c0_369] : memref<32x4xf32, #tpu.memory_space<vmem>>, vector<4x4xf32>
    tpu.vector_store %arg8[%c24_368, %c0_369], %787 {strides = array<i32>} : memref<32x4xf32, #tpu.memory_space<vmem>>, vector<4x4xf32>,
    %789 = vector.extract_strided_slice %550 {offsets = [28, 0], sizes = [4, 4], strides = [1, 1]} : vector<32x4xf32> to vector<4x4xf32>
    %c0_370 = arith.constant 0 : index
    %c0_371 = arith.constant 0 : index
    %790 = vector.load %arg6[%c0_370, %c0_371] : memref<4x1xf32, #tpu.memory_space<vmem>>, vector<4x1xf32>
    %c0_372 = arith.constant 0 : index
    %c0_373 = arith.constant 0 : index
    %791 = vector.load %arg7[%c0_372, %c0_373] : memref<1x4xf32, #tpu.memory_space<vmem>>, vector<1x4xf32>
    %cst_374 = arith.constant dense<0.000000e+00> : vector<4x1xf32>
    %792 = tpu.matmul %789, %790, %cst_374 {dimension_numbers = #tpu.dot_dimension_numbers<[1], [0], [0], [1], [0, 0, 1, 1], [], []>} : vector<4x4xf32>, vector<4x1xf32>, vector<4x1xf32> -> vector<4x1xf32>
    %cst_375 = arith.constant dense<0.000000e+00> : vector<1x4xf32>
    %793 = tpu.matmul %791, %789, %cst_375 {dimension_numbers = #tpu.dot_dimension_numbers<[1], [1], [0], [0], [0, 0, 1, 0], [], []>} : vector<1x4xf32>, vector<4x4xf32>, vector<1x4xf32> -> vector<1x4xf32>
    %794 = vector.broadcast %792 : vector<4x1xf32> to vector<4x4xf32>
    %795 = vector.broadcast %793 : vector<1x4xf32> to vector<4x4xf32>
    %796 = arith.addf %794, %795 : vector<4x4xf32>
    %cst_376 = arith.constant 0.000000e+00 : f32
    %797 = vector.broadcast %cst_376 : f32 to vector<4x4xf32>
    %798 = arith.cmpf ogt, %796, %797 : vector<4x4xf32>
    %cst_377 = arith.constant 2.000000e-01 : f32
    %799 = vector.broadcast %cst_377 : f32 to vector<4x4xf32>
    %800 = arith.mulf %799, %796 : vector<4x4xf32>
    %801 = arith.select %798, %796, %800 : vector<4x4xi1>, vector<4x4xf32>
    %802 = arith.addf %801, %0 : vector<4x4xf32>
    %cst_378 = arith.constant dense<0xFF800000> : vector<4xf32>
    %803 = vector.multi_reduction <maximumf>, %802, %cst_378 [1] : vector<4x4xf32> to vector<4xf32>
    %804 = vector.shape_cast %803 : vector<4xf32> to vector<4x1xf32>
    %805 = vector.broadcast %804 : vector<4x1xf32> to vector<4x4xf32>
    %806 = arith.subf %802, %805 : vector<4x4xf32>
    %807 = math.exp %806 : vector<4x4xf32>
    %cst_379 = arith.constant dense<0.000000e+00> : vector<4xf32>
    %808 = vector.multi_reduction <add>, %807, %cst_379 [1] : vector<4x4xf32> to vector<4xf32>
    %809 = vector.shape_cast %808 : vector<4xf32> to vector<4x1xf32>
    %810 = tpu.reciprocal %809 {approx = true} : vector<4x1xf32> -> vector<4x1xf32>
    %811 = vector.broadcast %810 : vector<4x1xf32> to vector<4x4xf32>
    %812 = arith.mulf %807, %811 : vector<4x4xf32>
    %cst_380 = arith.constant dense<0.000000e+00> : vector<4x4xf32>
    %813 = tpu.matmul %812, %789, %cst_380 {dimension_numbers = #tpu.dot_dimension_numbers<[1], [0], [0], [1], [0, 0, 1, 1], [], []>} : vector<4x4xf32>, vector<4x4xf32>, vector<4x4xf32> -> vector<4x4xf32>
    %cst_381 = arith.constant 0.000000e+00 : f32
    %814 = vector.broadcast %cst_381 : f32 to vector<4x4xf32>
    %815 = arith.cmpf ogt, %813, %814 : vector<4x4xf32>
    %cst_382 = arith.constant 0.000000e+00 : f32
    %816 = vector.broadcast %cst_382 : f32 to vector<4x4xf32>
    %817 = arith.minimumf %813, %816 : vector<4x4xf32>
    %818 = math.exp %817 : vector<4x4xf32>
    %cst_383 = arith.constant 1.000000e+00 : f32
    %819 = vector.broadcast %cst_383 : f32 to vector<4x4xf32>
    %820 = arith.subf %818, %819 : vector<4x4xf32>
    %821 = arith.select %815, %813, %820 : vector<4x4xi1>, vector<4x4xf32>
    %c28_384 = arith.constant 28 : index
    %c0_385 = arith.constant 0 : index
    %822 = vector.load %arg8[%c28_384, %c0_385] : memref<32x4xf32, #tpu.memory_space<vmem>>, vector<4x4xf32>
    tpu.vector_store %arg8[%c28_384, %c0_385], %821 {strides = array<i32>} : memref<32x4xf32, #tpu.memory_space<vmem>>, vector<4x4xf32>,
    return
  }
}

</mosaic_0001>

<bundles_post_ra>
// kernel: gat_atcn_forward.3
= control target key start
LH: loop header
LB: loop body
LE: loop exit
PB: predicated region body
PF: predicated region fallthrough
CT: control target
= control target key end

     0   :  { %s1614_s0 = inlined_call_operand.vmem [shape: f32[8,16], index: 0, kind: input, shape index: {}]   ;;  %s1615_s1 = inlined_call_operand.vmem [shape: f32[16,16], index: 1, kind: input, shape index: {}]   ;;  %s1616_s2 = inlined_call_operand.vmem [shape: f32[16,16], index: 2, kind: input, shape index: {}]   ;;  %s1617_s3 = inlined_call_operand.vmem [shape: f32[1,16], index: 3, kind: input, shape index: {}]   ;;  %s1618_s4 = inlined_call_operand.vmem [shape: f32[16,16], index: 4, kind: input, shape index: {}]   ;;  %s1619_s5 = inlined_call_operand.vmem [shape: f32[16,16], index: 5, kind: input, shape index: {}]   ;;  %s1620_s6 = inlined_call_operand.vmem [shape: f32[1,16], index: 6, kind: input, shape index: {}]   ;;  %s1621_s7 = inlined_call_operand.vmem [shape: f32[16,16], index: 7, kind: input, shape index: {}]   ;;  %s1622_s8 = inlined_call_operand.vmem [shape: f32[1,16], index: 8, kind: input, shape index: {}]   ;;  %s1623_s9 = inlined_call_operand.vmem [shape: f32[16,32], index: 9, kind: input, shape index: {}]   ;;  %s1624_s10 = inlined_call_operand.vmem [shape: f32[16,32], index: 10, kind: input, shape index: {}]   ;;  %s1625_s11 = inlined_call_operand.vmem [shape: f32[1,32], index: 11, kind: input, shape index: {}]   ;;  %s1626_s12 = inlined_call_operand.vmem [shape: f32[32,32], index: 12, kind: input, shape index: {}]   ;;  %s1627_s13 = inlined_call_operand.vmem [shape: f32[32,32], index: 13, kind: input, shape index: {}]   ;;  %s1628_s14 = inlined_call_operand.vmem [shape: f32[1,32], index: 14, kind: input, shape index: {}]   ;;  %s1629_s15 = inlined_call_operand.vmem [shape: f32[16,32], index: 15, kind: input, shape index: {}]   ;;  %s1630_s16 = inlined_call_operand.vmem [shape: f32[1,32], index: 16, kind: input, shape index: {}]   ;;  %s1631_s17 = inlined_call_operand.vmem [shape: f32[32,1], index: 17, kind: input, shape index: {}]   ;;  %s1632_s18 = inlined_call_operand.<no memory space> [shape: f32[1,1], index: 18, kind: input, shape index: {}]   ;;  %s1633_s19 = inlined_call_operand.vmem [shape: f32[32,4], index: 19, kind: input, shape index: {}]   ;;  %s1634_s20 = inlined_call_operand.vmem [shape: f32[1,4], index: 20, kind: input, shape index: {}]   ;;  %s1635_s21 = inlined_call_operand.hbm [shape: f32[1,4], index: 21, kind: output, shape index: {}]  }
   0x1   :  { %1640 = sst [smem:[#allocation6_spill]] %s1614_s0  ;;  %v26_v0 = vstv %s1632_s18 }
   0x2   :  { %1641 = sst [smem:[#allocation7_spill]] %s1615_s1  ;;  %27 = vst [vmem:[#allocation2] sm:$0x1] %v26_v0 }
   0x3   :  { %1642 = sst [smem:[#allocation8_spill]] %s1616_s2 }
   0x4   :  { %1643 = sst [smem:[#allocation9_spill]] %s1617_s3 }
   0x5   :  { %1644 = sst [smem:[#allocation10_spill]] %s1618_s4 }
   0x6   :  { %1645 = sst [smem:[#allocation11_spill]] %s1619_s5 }
   0x7   :  { %s1646_s3 = sld [smem:[#allocation8_spill]]  ;;  %v73_v3 = vlaneseq  ;;  %v1293_v4 = vmov 0.0  }
   0x8   :  { %s1647_s0 = sld [smem:[#allocation7_spill]]  ;;  %1162 = vmatprep.subr.mxu0 %v1293_v4  ;;  %1169 = vmatprep.subr.mxu1 %v1293_v4 }
   0x9   :  { %s1648_s22 = sld [smem:[#allocation6_spill]] }
   0xd   :  { %v80_v1 = vld [vmem:[%s1646_s3 + $0x8] sm:$0xff]  ;;  %v79_v5 = vld [vmem:[%s1646_s3] sm:$0xff] }
   0xe   :  { %v78_v2 = vld [vmem:[%s1647_s0 + $0x8] sm:$0xff] }
   0xf   :  { %v71_v6 = vld [vmem:[%s1648_s22] sm:$0xff] }
  0x10   :  { %28 = vsyncpa [#allocation4], 0  ;;  %1163 = vmatpush3.msra.mxu0 %v80_v1  ;;  %1170 = vmatpush3.msra.mxu1 %v78_v2  ;;  %vm81_vm0 = vcmask 130048   ;;  %v77_v7 = vld [vmem:[%s1647_s0] sm:$0xff]  ;;  %v72_v8 = vrot.slane %v71_v6, 7  ;;  %v1427_v9 = vshrl.u32 %v73_v3, 7 }
  0x11   :  { %1164 = vmatprep.subr.mxu0 %v1293_v4  ;;  %vm1294_vm1 = vmmov 0   ;;  %1171 = vmatprep.subr.mxu1 %v1293_v4  ;;  %s1649_s25 = sld [smem:[#allocation11_spill]]  ;;  %v399_v23 = vld [vmem:[%s1621_s7 + $0x8] sm:$0xff]  ;;  %v398_v25 = vld [vmem:[%s1621_s7] sm:$0xff]  ;;  %v650_v47 = vld [vmem:[%s1627_s13 + $0x18] sm:$0xff]  ;;  %vm651_vm4 = vcmask 261120  }
  0x12   :  { %1166 = vmatprep.mubr.msk.f32.mxu0 %vm1294_vm1, %v1293_v4  ;;  %1165 = vmatpush3.msra.mxu0 %v79_v5  ;;  %vm75_vm2 = vcmp.ge.s32.totalorder %v1427_v9, 1  ;;  %s1650_s29 = sld [smem:[#allocation10_spill]]  ;;  %v485_v27 = vld [vmem:[%s1624_s10 + $0x8] sm:$0xff]  ;;  %v484_v28 = vld [vmem:[%s1624_s10] sm:$0xff]  ;;  %vm480_vm3 = vcmp.ge.s32.totalorder %v1427_v9, 2  ;;  %v649_v48 = vld [vmem:[%s1627_s13 + $0x10] sm:$0xff] }
  0x13   :  { %1167 = vmatmul.mubr.msk.f32.vlgmr.msra.gmra.mxu0 %vm81_vm0, %v71_v6  ;;  %1172 = vmatpush3.msra.mxu1 %v77_v7  ;;  %v76_v10 = vsel %vm75_vm2, %v72_v8, 0.0  ;;  %s1651_s5 = sld [smem:[#allocation9_spill]]  ;;  %v483_v29 = vld [vmem:[%s1623_s9 + $0x8] sm:$0xff]  ;;  %v482_v30 = vld [vmem:[%s1623_s9] sm:$0xff]  ;;  %v646_v49 = vld [vmem:[%s1626_s12 + $0x18] sm:$0xff]  ;;  %vm972_vm5 = vcmask 7168  }
  0x14   :  { %1173 = vmatprep.mubr.msk.f32.mxu1 %vm1294_vm1, %v1293_v4  ;;  %1176 = vmatprep.subr.mxu0 %v1293_v4  ;;  %v1104_v34 = vld [vmem:[%s1620_s6] ss:$0 sm:$0xff]  ;;  %v648_v50 = vld [vmem:[%s1627_s13 + $0x8] sm:$0xff]  ;;  %v645_v51 = vld [vmem:[%s1626_s12 + $0x10] sm:$0xff]  ;;  %vm1083_vm6 = vcmask 24576  }
  0x15   :  { %1174 = vmatmul.mubr.msk.f32.vlgmr.msra.gmra.mxu1 %vm81_vm0, %v76_v10  ;;  %1183 = vmatprep.subr.mxu1 %v1293_v4  ;;  %v1105_v35 = vld [vmem:[%s1622_s8] ss:$0 sm:$0xff]  ;;  %v644_v53 = vld [vmem:[%s1626_s12 + $0x8] sm:$0xff]  ;;  %v891_v3 = vld [vmem:[%s1631_s17 + $0x18] sm:$0xff] }
  0x16   :  { %1180 = vmatprep.mubr.msk.f32.mxu0 %vm1294_vm1, %v1293_v4  ;;  %1187 = vmatprep.mubr.msk.f32.mxu1 %vm1294_vm1, %v1293_v4  ;;  %v647_v52 = vld [vmem:[%s1627_s13] sm:$0xff]  ;;  %v808_v63 = vld [vmem:[%s1629_s15 + $0x8] sm:$0xff]  ;;  %v890_v5 = vld [vmem:[%s1631_s17 + $0x10] sm:$0xff]  ;;  %s1296_s13 = smov [#allocation3]  }
  0x17   :  { %v242_v11 = vld [vmem:[%s1649_s25 + $0x8] sm:$0xff]  ;;  %v241_v12 = vld [vmem:[%s1649_s25] sm:$0xff] }
  0x18   :  { %1177 = vmatpush3.msra.mxu0 %v242_v11  ;;  %v240_v13 = vld [vmem:[%s1650_s29 + $0x8] sm:$0xff]  ;;  %v239_v14 = vld [vmem:[%s1650_s29] sm:$0xff]  ;;  %s1091_s29 = sshll.u32 %s1296_s13, 4  ;;  %s1092_s29 = int_to_ptr.vmem [resolvable:$true] %s1091_s29 }
  0x19   :  { %1178 = vmatprep.subr.mxu0 %v1293_v4  ;;  %1184 = vmatpush3.msra.mxu1 %v240_v13  ;;  %v1101_v17 = vld [vmem:[%s1651_s5] ss:$0 sm:$0xff]  ;;  %s1275_s10 = scalar_lea.vmem %s1092_s29, 32  ;;  %p1276_p1 = scmp.lt.s32.totalorder %s1092_s29, %s1092_s29 }
  0x1a   :  { %1179 = vmatpush3.msra.mxu0 %v241_v12  ;;  %1185 = vmatprep.subr.mxu1 %v1293_v4  ;;  %v643_v54 = vld [vmem:[%s1626_s12] sm:$0xff] }
  0x1b   :  { %1190 = vmatprep.subr.mxu0 %v1293_v4  ;;  %1186 = vmatpush3.msra.mxu1 %v239_v14  ;;  %v1109_v58 = vld [vmem:[%s1625_s11] ss:$0 sm:$0xff] }
  0x1c   :  { %1197 = vmatprep.subr.mxu1 %v1293_v4  ;;  %v807_v1 = vld [vmem:[%s1629_s15] sm:$0xff] }
  0x1d   :  { %v888_v7 = vld [vmem:[%s1631_s17] sm:$0xff] }
  0x1e   :  { %v1112_v11 = vld [vmem:[%s1628_s14] ss:$0 sm:$0xff] }
  0x1f   :  { %v1113_v14 = vld [vmem:[%s1630_s16] ss:$0 sm:$0xff] }
  0xd3   :  { %v151_v15 = vpop.f32.mrf.mxu0 }
  0xd5   :  { %v224_v16 = vpop.f32.mrf.mxu1  ;;  %v1168_v18 = vpop.f32.mrf.mxu0 }
  0xd6   :  { %v225_v19 = vadd.f32 %v224_v16, %v151_v15 }
  0xd7   :  { %v1175_v20 = vpop.f32.mrf.mxu1 }
  0xd8   :  { %v235_v21 = vadd.f32 %v1101_v17, %v225_v19 }
  0xda   :  { %v236_v22 = vmax.f32 %v235_v21, 0.0 }
  0xdc   :  { %v237_v24 = vrot.slane %v236_v22, 7  ;;  %1181 = vmatmul.mubr.msk.f32.vlgmr.msra.gmra.mxu0 %vm81_vm0, %v236_v22  ;;  %v1295_v22 = vmov 0  }
  0xdd   :  { %1191 = vmatpush3.msra.mxu0 %v399_v23  ;;  %1194 = vmatprep.mubr.msk.f32.mxu0 %vm1294_vm1, %v1293_v4  ;;  %v1115_v23 = vld [vmem:[#allocation2] ss:$0 sm:$0xff] }
  0xde   :  { %v238_v26 = vsel %vm75_vm2, %v237_v24, 0.0  ;;  %1192 = vmatprep.subr.mxu0 %v1293_v4  ;;  %1266 = vset.pattern.permute.xlu0 %v1295_v22 }
  0xdf   :  { %1188 = vmatmul.mubr.msk.f32.vlgmr.msra.gmra.mxu1 %vm81_vm0, %v238_v26  ;;  %1193 = vmatpush3.msra.mxu0 %v398_v25 }
  0xe0   :  { %1195 = vmatmul.mubr.msk.f32.vlgmr.msra.gmra.mxu0 %vm81_vm0, %v71_v6  ;;  %1204 = vmatprep.subr.mxu0 %v1293_v4  ;;  %v889_v6 = vld [vmem:[%s1631_s17 + $0x8] sm:$0xff] }
  0xe1   :  { %1201 = vmatprep.mubr.msk.f32.mxu1 %vm1294_vm1, %v1293_v4  ;;  %1208 = vmatprep.mubr.msk.f32.mxu0 %vm1294_vm1, %v1293_v4 }
  0xe2   :  { %1198 = vmatpush3.msra.mxu1 %v485_v27  ;;  %1205 = vmatpush3.msra.mxu0 %v483_v29 }
  0xe3   :  { %1199 = vmatprep.subr.mxu1 %v1293_v4  ;;  %1206 = vmatprep.subr.mxu0 %v1293_v4 }
  0xe4   :  { %1200 = vmatpush3.msra.mxu1 %v484_v28  ;;  %1207 = vmatpush3.msra.mxu0 %v482_v30 }
  0xe5   :  { %1211 = vmatprep.subr.mxu1 %v1293_v4  ;;  %1222 = vmatprep.subr.mxu0 %v1293_v4 }
 0x19c   :  { %v312_v31 = vpop.f32.mrf.mxu0 }
 0x19e   :  { %v1182_v32 = vpop.f32.mrf.mxu0 }
 0x19f   :  { %v385_v33 = vpop.f32.mrf.mxu1 }
 0x1a0   :  { %v386_v36 = vadd.f32 %v385_v33, %v312_v31  ;;  %v473_v37 = vpop.f32.mrf.mxu0 }
 0x1a1   :  { %v1189_v38 = vpop.f32.mrf.mxu1  ;;  %v474_v40 = vadd.f32 %v1105_v35, %v473_v37 }
 0x1a2   :  { %v396_v39 = vadd.f32 %v1104_v34, %v386_v36  ;;  %v1196_v41 = vpop.f32.mrf.mxu0 }
 0x1a4   :  { %v397_v42 = vmax.f32 %v396_v39, 0.0 }
 0x1a6   :  { %v477_v43 = vadd.f32 %v474_v40, %v397_v42 }
 0x1a8   :  { %v478_v44 = vmax.f32 %v477_v43, 0.0 }
 0x1aa   :  { %v479_v45 = vrot.slane %v478_v44, 6  ;;  %1202 = vmatmul.mubr.msk.f32.vlgmr.msra.gmra.mxu1 %vm81_vm0, %v478_v44 }
 0x1ab   :  { %1219 = vmatprep.mubr.msk.f32.mxu1 %vm1294_vm1, %v1293_v4  ;;  %1212 = vmatpush3.msra.mxu1 %v650_v47  ;;  %v1007_v47 = vld [vmem:[%s1633_s19 + $0x10] sm:$0xff] }
 0x1ac   :  { %v481_v46 = vsel %vm480_vm3, %v479_v45, 0.0  ;;  %1213 = vmatprep.subr.mxu1 %v1293_v4 }
 0x1ad   :  { %1209 = vmatmul.mubr.msk.f32.vlgmr.msra.gmra.mxu0 %vm81_vm0, %v481_v46  ;;  %1214 = vmatpush3.msra.mxu1 %v649_v48  ;;  %v1008_v46 = vld [vmem:[%s1633_s19 + $0x18] sm:$0xff]  ;;  %v1006_v48 = vld [vmem:[%s1633_s19 + $0x8] sm:$0xff] }
 0x1ae   :  { %1230 = vmatprep.mubr.msk.f32.mxu0 %vm1294_vm1, %v1293_v4  ;;  %1215 = vmatprep.subr.mxu1 %v1293_v4 }
 0x1af   :  { %1223 = vmatpush3.msra.mxu0 %v646_v49  ;;  %1216 = vmatpush3.msra.mxu1 %v648_v50  ;;  %v1005_v49 = vld [vmem:[%s1633_s19] sm:$0xff]  ;;  %s1271_s19 = scalar_lea.vmem %s1092_s29, 16 }
 0x1b0   :  { %1224 = vmatprep.subr.mxu0 %v1293_v4  ;;  %1217 = vmatprep.subr.mxu1 %v1293_v4  ;;  %p1272_p0 = scmp.ne.s32.totalorder %s1092_s29, %s1271_s19  ;;  %p1277_p2 = scmp.lt.s32.totalorder %s1275_s10, %s1271_s19 }
 0x1b1   :  { %1225 = vmatpush3.msra.mxu0 %v645_v51  ;;  %1218 = vmatpush3.msra.mxu1 %v647_v52 }
 0x1b2   :  { %1226 = vmatprep.subr.mxu0 %v1293_v4  ;;  %1233 = vmatprep.subr.mxu1 %v1293_v4  ;;  %p1278_p3 = por %p1277_p2, %p1276_p1 }
 0x1b3   :  { %1227 = vmatpush3.msra.mxu0 %v644_v53 }
 0x1b4   :  { %1228 = vmatprep.subr.mxu0 %v1293_v4  ;;  %p1279_p4 = pnand %p1278_p3, %p1272_p0 }
 0x1b5   :  { %1229 = vmatpush3.msra.mxu0 %v643_v54 }
 0x1b6   :  { %1240 = vmatprep.subr.mxu0 %v1293_v4 }
 0x26a   :  { %v555_v55 = vpop.f32.mrf.mxu1 }
 0x26c   :  { %v1203_v56 = vpop.f32.mrf.mxu1 }
 0x26d   :  { %v628_v57 = vpop.f32.mrf.mxu0 }
 0x26e   :  { %v629_v59 = vadd.f32 %v628_v57, %v555_v55 }
 0x26f   :  { %v1210_v60 = vpop.f32.mrf.mxu0 }
 0x270   :  { %v639_v61 = vadd.f32 %v1109_v58, %v629_v59 }
 0x272   :  { %v640_v62 = vmax.f32 %v639_v61, 0.0 }
 0x274   :  { %v641_v0 = vrot.slane %v640_v62, 6  ;;  %1220 = vmatmul.mubr.msk.f32.vlgmr.msra.gmra.mxu1 %vm651_vm4, %v640_v62 }
 0x275   :  { %1234 = vmatpush3.msra.mxu1 %v808_v63  ;;  %1237 = vmatprep.mubr.msk.f32.mxu1 %vm1294_vm1, %v1293_v4 }
 0x276   :  { %1235 = vmatprep.subr.mxu1 %v1293_v4  ;;  %v642_v2 = vsel %vm480_vm3, %v641_v0, 0.0 }
 0x277   :  { %1231 = vmatmul.mubr.msk.f32.vlgmr.msra.gmra.mxu0 %vm651_vm4, %v642_v2  ;;  %1236 = vmatpush3.msra.mxu1 %v807_v1 }
 0x278   :  { %1238 = vmatmul.mubr.msk.f32.vlgmr.msra.gmra.mxu1 %vm81_vm0, %v478_v44  ;;  %1248 = vmatprep.mubr.msk.f32.mxu0 %vm1294_vm1, %v1293_v4 }
 0x279   :  { %1251 = vmatprep.subr.mxu1 %v1293_v4  ;;  %1259 = vmatprep.mubr.msk.f32.mxu1 %vm1294_vm1, %v1293_v4 }
 0x27a   :  { %1241 = vmatpush3.msra.mxu0 %v891_v3  ;;  %1252 = vmatpush3.msra.mxu1 %v1008_v46 }
 0x27b   :  { %1242 = vmatprep.subr.mxu0 %v1293_v4  ;;  %1253 = vmatprep.subr.mxu1 %v1293_v4 }
 0x27c   :  { %1243 = vmatpush3.msra.mxu0 %v890_v5  ;;  %1254 = vmatpush3.msra.mxu1 %v1007_v47 }
 0x27d   :  { %1244 = vmatprep.subr.mxu0 %v1293_v4  ;;  %1255 = vmatprep.subr.mxu1 %v1293_v4 }
 0x27e   :  { %1245 = vmatpush3.msra.mxu0 %v889_v6  ;;  %1256 = vmatpush3.msra.mxu1 %v1006_v48 }
 0x27f   :  { %1246 = vmatprep.subr.mxu0 %v1293_v4  ;;  %1257 = vmatprep.subr.mxu1 %v1293_v4  ;;  %v1009_v4 = vld [vmem:[%s1634_s20] sm:$0x1] }
 0x280   :  { %1247 = vmatpush3.msra.mxu0 %v888_v7  ;;  %1258 = vmatpush3.msra.mxu1 %v1005_v49 }
 0x334   :  { %v721_v8 = vpop.f32.mrf.mxu1 }
 0x336   :  { %v1221_v9 = vpop.f32.mrf.mxu1 }
 0x337   :  { %v794_v10 = vpop.f32.mrf.mxu0 }
 0x338   :  { %v795_v12 = vadd.f32 %v794_v10, %v721_v8  ;;  %v882_v13 = vpop.f32.mrf.mxu1 }
 0x339   :  { %v1232_v15 = vpop.f32.mrf.mxu0  ;;  %v883_v19 = vadd.f32 %v1113_v14, %v882_v13 }
 0x33a   :  { %v805_v16 = vadd.f32 %v1112_v11, %v795_v12  ;;  %v1239_v17 = vpop.f32.mrf.mxu1 }
 0x33c   :  { %v806_v18 = vmax.f32 %v805_v16, 0.0 }
 0x33e   :  { %v886_v20 = vadd.f32 %v883_v19, %v806_v18 }
 0x340   :  { %v887_v21 = vmax.f32 %v886_v20, 0.0 }
 0x342   :  { %1249 = vmatmul.mubr.msk.f32.vlgmr.msra.gmra.mxu0 %vm651_vm4, %v887_v21 }
 0x402   :  { %v968_v24 = vpop.f32.mrf.mxu0 }
 0x403   :  { %v969_v25 = vadd.f32 %v1115_v23, %v968_v24 }
 0x404   :  { %v1250_v26 = vpop.f32.mrf.mxu0 }
 0x405   :  { %v973_v27 = vsel %vm972_vm5, %v969_v25, -inf }
 0x406   :  { %v974_v28 = vrot.slane %v973_v27, 4 }
 0x408   :  { %v975_v29 = vmax.f32 %v973_v27, %v974_v28 }
 0x40a   :  { %v976_v30 = vrot.slane %v975_v29, 2 }
 0x40c   :  { %v977_v31 = vmax.f32 %v975_v29, %v976_v30 }
 0x40e   :  { %v978_v32 = vrot.slane %v977_v31, 1 }
 0x410   :  { %v979_v33 = vmax.f32 %v977_v31, %v978_v32 }
 0x412   :  { %v980_v34 = vsub.f32 %v969_v25, %v979_v33 }
 0x414   :  { %v981_v35 = vmul.f32 1.442695, %v980_v34 }
 0x416   :  { %1267 = vpow2.f32 %v981_v35 }
 0x423   :  { %v1268_v36 = vpop.eup %1267 }
 0x424   :  { %v983_v37 = vsel %vm972_vm5, %v1268_v36, 0.0 }
 0x425   :  { %v984_v38 = vrot.slane %v983_v37, 4 }
 0x427   :  { %v985_v39 = vadd.f32 %v984_v38, %v983_v37 }
 0x429   :  { %v986_v40 = vrot.slane %v985_v39, 2 }
 0x42b   :  { %v987_v41 = vadd.f32 %v986_v40, %v985_v39 }
 0x42d   :  { %v988_v42 = vrot.slane %v987_v41, 1 }
 0x42f   :  { %v989_v43 = vadd.f32 %v988_v42, %v987_v41 }
 0x431   :  { %1269 = vrcp.f32 %v989_v43 }
 0x43e   :  { %v1270_v44 = vpop.eup %1269 }
 0x43f   :  { %v991_v45 = vmul.f32 %v1270_v44, %v1268_v36 }
 0x441   :  { %994 = vperm.xlu0 %1266, %v991_v45  }
 0x4bc   :  { %v995_v50 = vpop.permute.xlu0 %994 }
 0x4bd   :  { %v997_v51 = vmul.f32 %v995_v50, %v887_v21 }
 0x4bf   :  { %v998_v52 = vsel %vm651_vm4, %v997_v51, 0.0 }
 0x4c0   :  { %v999_v53 = vrot.slane %v998_v52, 4 }
 0x4c2   :  { %v1000_v54 = vadd.f32 %v999_v53, %v998_v52 }
 0x4c4   :  { %v1001_v55 = vrot.slane %v1000_v54, 2 }
 0x4c6   :  { %v1002_v56 = vadd.f32 %v1001_v55, %v1000_v54 }
 0x4c8   :  { %v1003_v57 = vrot.slane %v1002_v56, 1 }
 0x4ca   :  { %v1004_v58 = vadd.f32 %v1003_v57, %v1002_v56 }
 0x4cc   :  { %1260 = vmatmul.mubr.msk.f32.vlgmr.msra.gmra.mxu1 %vm651_vm4, %v1004_v58 }
 0x58c   :  { %v1079_v59 = vpop.f32.mrf.mxu1 }
 0x58d   :  { %v1080_v60 = vadd.f32 %v1079_v59, %v1009_v4 }
 0x58e   :  { %v1261_v61 = vpop.f32.mrf.mxu1 }
 0x58f   :  { %1084 = vst.msk [vmem:[#allocation3] sm:$0x1] %vm1083_vm6, %v1080_v60 }
 0x590   :  { %1282 = shalt.err (!%p1279_p4)
}
 0x591   :  { %1094 = dma.vmem_to_hbm [thread:$0]  %s1092_s29, 16, %s1635_s21, [#allocation4]  }
 0x592   :  { %1291 = dma.done.wait [#allocation4], 16  }
 0x593   :  { %1292 = vsyncadd [#allocation4], 4294967280 }
 0x594   :  { %1098 = vsyncpa [#allocation4], 1 }

// kernel: gat_atcn_forward.2
= control target key start
LH: loop header
LB: loop body
LE: loop exit
PB: predicated region body
PF: predicated region fallthrough
CT: control target
= control target key end

     0   :  { %vm48_vm0 = vcmask 1043456   ;;  %vm35_vm1 = vcmask 31744   ;;  %v7280_v3 = vmov 0.0   ;;  %vm7281_vm2 = vmmov 0   ;;  %s7283_s12 = smov 120   ;;  %s8108_s1 = inlined_call_operand.vmem [shape: f32[4,16], index: 1, kind: input, shape index: {}]   ;;  %s8109_s0 = inlined_call_operand.vmem [shape: f32[32,4], index: 0, kind: input, shape index: {}]   ;;  %s8110_s2 = inlined_call_operand.vmem [shape: f32[16,1], index: 2, kind: input, shape index: {}]   ;;  %s8111_s3 = inlined_call_operand.vmem [shape: f32[2,8], index: 3, kind: input, shape index: {}]   ;;  %s8112_s4 = inlined_call_operand.vmem [shape: f32[4,4], index: 4, kind: input, shape index: {}]   ;;  %s8113_s5 = inlined_call_operand.vmem [shape: f32[16,4], index: 5, kind: input, shape index: {}]   ;;  %s8114_s6 = inlined_call_operand.vmem [shape: f32[4,1], index: 6, kind: input, shape index: {}]   ;;  %s8115_s7 = inlined_call_operand.vmem [shape: f32[1,4], index: 7, kind: input, shape index: {}]   ;;  %s8116_s8 = inlined_call_operand.vmem [shape: f32[32,4], index: 8, kind: output, shape index: {}]  }
   0x1   :  { %v34_v0 = vld [vmem:[%s8108_s1] sm:$0xf]  ;;  %v31_v2 = vld [vmem:[%s8109_s0 + $0x8] sm:$0xff]  ;;  %6757 = vmatprep.subr.mxu1 %v7280_v3  ;;  %6759 = vmatprep.mubr.msk.f32.mxu1 %vm7281_vm2, %v7280_v3  ;;  %v7282_v5 = vmov 0   ;;  %vm139_vm3 = vcmask 64512   ;;  %v291_v15 = vlaneseq  ;;  %vm300_vm5 = vcmask 27648  }
   0x2   :  { %v30_v1 = vld [vmem:[%s8109_s0] sm:$0xff]  ;;  %6749 = vmatprep.subr.msk.mxu0 %vm48_vm0, %v34_v0  ;;  %7132 = vset.pattern.permute.xlu0 %v7282_v5  ;;  %v7375_v9 = vld [vmem:[%s8110_s2 + $0x8] sm:$0xff]  ;;  %v32_v33 = vld [vmem:[%s8109_s0 + $0x10] sm:$0xff]  ;;  %vm393_vm7 = vcmask 60416  }
   0x3   :  { %6751 = vmatprep.mubr.msk.f32.mxu0 %vm35_vm1, %v30_v1  ;;  %6750 = vmatpush3.msk.msra.mxu0 %vm48_vm0, %v34_v0  ;;  %v7347_v4 = vld [vmem:[%s8110_s2] sm:$0xff]  ;;  %v292_v16 = vshrl.u32 %v291_v15, 7  ;;  %v33_v34 = vld [vmem:[%s8109_s0 + $0x18] sm:$0xff] }
   0x4   :  { %6752 = vmatmul.mubr.msk.f32.vlgmr.msra.gmra.mxu0 %vm35_vm1, %v31_v2  ;;  %6767 = vmatprep.subr.mxu0 %v7280_v3  ;;  %v138_v8 = vld [vmem:[%s8111_s3] sm:$0x1]  ;;  %v396_v38 = vld [vmem:[%s8111_s3 + $0x1] sm:$0x1] }
   0x5   :  { %6758 = vmatpush3.msra.mxu1 %v7347_v4  ;;  %7133 = vset.pattern.permute.xlu1 %v7282_v5  ;;  %v7388_v18 = vsub.s32 0, %v292_v16  ;;  %v7394_v24 = vld [vmem:[%s8112_s4] sm:$0xf] }
   0x6   :  { %6762 = vmatprep.subr.mxu1 %v7280_v3  ;;  %6754 = vmatprep.mubr.msk.f32.mxu0 %vm35_vm1, %v32_v33  ;;  %v912_v33 = vld [vmem:[%s8111_s3 + $0x1] sm:$0x1] }
   0x8   :  { %6755 = vmatmul.mubr.msk.f32.gmra.mxu0 %vm35_vm1, %v33_v34 }
   0x9   :  { %6769 = vmatprep.mubr.msk.f32.mxu0 %vm7281_vm2, %v7280_v3 }
  0xc4   :  { %v7354_v6 = vpop.f32.mrf.mxu0 }
  0xc6   :  { %v7356_v7 = vpop.f32.mrf.mxu0 }
  0xc7   :  { %397 = vrot.lane.b32.xlu1 %v7356_v7, %s7283_s12  ;;  %6760 = vmatmul.mubr.msk.f32.vlgmr.msra.gmra.mxu1 %vm139_vm3, %v7356_v7  ;;  %v658_v39 = vrot.slane %v7356_v7, 4 }
  0xc8   :  { %6763 = vmatpush3.xpose.msk.msra.mxu1 %vm139_vm3, %v7356_v7  ;;  %6768 = vmatpush3.msk.msra.mxu0 %vm48_vm0, %v7356_v7  ;;  %v7428_v40 = vpop.f32.mrf.mxu0 }
  0xc9   :  { %6764 = vmatprep.mubr.msk.f32.mxu1 %vm7281_vm2, %v7280_v3  ;;  %6772 = vmatprep.subr.mxu1 %v7280_v3 }
  0xca   :  { %6777 = vmatprep.subr.mxu0 %v7280_v3  ;;  %v7430_v41 = vpop.f32.mrf.mxu0 }
  0xcb   :  { %6765 = vmatmul.mubr.msk.f32.vlgmr.msra.gmra.mxu1 %vm139_vm3, %v138_v8  ;;  %v657_v8 = vld [vmem:[%s8111_s3] sm:$0x1] }
  0xcc   :  { %6773 = vmatpush3.msra.mxu1 %v7375_v9  ;;  %6774 = vmatprep.mubr.msk.f32.mxu1 %vm7281_vm2, %v7280_v3 }
  0xcd   :  { %6782 = vmatprep.subr.mxu1 %v7280_v3 }
 0x139   :  { %v398_v10 = vpop.permute.xlu1 %397 }
 0x13a   :  { %6775 = vmatmul.mubr.msk.f32.vlgmr.msra.gmra.mxu1 %vm139_vm3, %v398_v10 }
 0x13b   :  { %6783 = vmatpush3.msk.msra.mxu1 %vm48_vm0, %v398_v10  ;;  %6784 = vmatprep.mubr.msk.f32.mxu1 %vm7281_vm2, %v7280_v3 }
 0x13c   :  { %6792 = vmatprep.subr.mxu1 %v7280_v3 }
 0x187   :  { %v209_v11 = vpop.f32.mrf.mxu1 }
 0x188   :  { %288 = vperm.xlu0 %7132, %v209_v11  }
 0x189   :  { %v6761_v12 = vpop.f32.mrf.mxu1 }
 0x18b   :  { %v282_v13 = vpop.f32.mrf.mxu1 }
 0x18c   :  { %v294_v20 = vrot.slane %v282_v13, %v7388_v18 }
 0x18d   :  { %v6766_v14 = vpop.f32.mrf.mxu1 }
 0x1fa   :  { %v467_v17 = vpop.f32.mrf.mxu1 }
 0x1fc   :  { %v6776_v19 = vpop.f32.mrf.mxu1 }
 0x203   :  { %v289_v21 = vpop.permute.xlu0 %288 }
 0x204   :  { %v295_v22 = vadd.f32 %v294_v20, %v289_v21 }
 0x206   :  { %vm296_vm4 = vcmp.gt.f32.partialorder %v295_v22, 0.0  ;;  %v297_v23 = vmul.f32 0.2, %v295_v22 }
 0x208   :  { %v298_v25 = vsel %vm296_vm4, %v295_v22, %v297_v23 }
 0x209   :  { %v299_v26 = vadd.f32 %v298_v25, %v7394_v24 }
 0x20b   :  { %v301_v27 = vsel %vm300_vm5, %v299_v26, -inf }
 0x20c   :  { %302 = vmax.xlane.f32.xlu0 %v301_v27 }
 0x222   :  { %546 = vperm.xlu0 %7132, %v467_v17  }
 0x295   :  { %v303_v28 = vpop.xlane.xlu0 %302 }
 0x296   :  { %v304_v29 = vsub.f32 %v299_v26, %v303_v28 }
 0x298   :  { %v305_v30 = vmul.f32 1.442695, %v304_v29 }
 0x29a   :  { %7134 = vpow2.f32 %v305_v30 }
 0x29d   :  { %v547_v48 = vpop.permute.xlu0 %546 }
 0x2a7   :  { %v7135_v31 = vpop.eup %7134 }
 0x2a8   :  { %v307_v32 = vsel %vm300_vm5, %v7135_v31, 0.0 }
 0x2a9   :  { %308 = vadd.xlane.f32.xlu1 %v307_v32 }
 0x332   :  { %v309_v35 = vpop.xlane.xlu1 %308 }
 0x333   :  { %7136 = vrcp.f32 %v309_v35 }
 0x340   :  { %v7137_v36 = vpop.eup %7136 }
 0x341   :  { %v311_v37 = vmul.f32 %v7137_v36, %v7135_v31 }
 0x343   :  { %6770 = vmatmul.mubr.msk.f32.vlgmr.msra.gmra.mxu0 %vm35_vm1, %v311_v37 }
 0x344   :  { %6778 = vmatpush3.xpose.msk.msra.mxu0 %vm139_vm3, %v398_v10  ;;  %6779 = vmatprep.mubr.msk.f32.mxu0 %vm7281_vm2, %v7280_v3 }
 0x345   :  { %6787 = vmatprep.subr.mxu0 %v7280_v3 }
 0x347   :  { %6780 = vmatmul.mubr.msk.f32.vlgmr.msra.gmra.mxu0 %vm139_vm3, %v396_v38 }
 0x348   :  { %6788 = vmatpush3.msra.mxu0 %v7347_v4  ;;  %6789 = vmatprep.mubr.msk.f32.mxu0 %vm7281_vm2, %v7280_v3 }
 0x349   :  { %6797 = vmatprep.subr.mxu0 %v7280_v3 }
 0x34b   :  { %6790 = vmatmul.mubr.msk.f32.vlgmr.msra.gmra.mxu0 %vm139_vm3, %v658_v39 }
 0x34c   :  { %6798 = vmatpush3.msk.msra.mxu0 %vm48_vm0, %v658_v39  ;;  %6799 = vmatprep.mubr.msk.f32.mxu0 %vm7281_vm2, %v7280_v3 }
 0x34d   :  { %6807 = vmatprep.subr.mxu0 %v7280_v3 }
 0x403   :  { %v383_v42 = vpop.f32.mrf.mxu0 }
 0x404   :  { %v388_v43 = vmin.f32 %v383_v42, 0.0  ;;  %vm387_vm8 = vcmp.gt.f32.partialorder %v383_v42, 0.0 }
 0x405   :  { %v6771_v44 = vpop.f32.mrf.mxu0 }
 0x406   :  { %v389_v45 = vmul.f32 1.442695, %v388_v43 }
 0x407   :  { %v540_v46 = vpop.f32.mrf.mxu0 }
 0x408   :  { %7138 = vpow2.f32 %v389_v45  ;;  %v552_v47 = vrot.slane %v540_v46, %v7388_v18 }
 0x409   :  { %v6781_v49 = vpop.f32.mrf.mxu0 }
 0x40a   :  { %v553_v50 = vadd.f32 %v552_v47, %v547_v48 }
 0x40b   :  { %v727_v51 = vpop.f32.mrf.mxu0 }
 0x40c   :  { %v555_v52 = vmul.f32 0.2, %v553_v50  ;;  %vm554_vm6 = vcmp.gt.f32.partialorder %v553_v50, 0.0 }
 0x40d   :  { %v6791_v53 = vpop.f32.mrf.mxu0 }
 0x40e   :  { %v556_v54 = vsel %vm554_vm6, %v553_v50, %v555_v52 }
 0x40f   :  { %v557_v55 = vadd.f32 %v556_v54, %v7394_v24 }
 0x411   :  { %v558_v56 = vsel %vm300_vm5, %v557_v55, -inf }
 0x412   :  { %559 = vmax.xlane.f32.xlu1 %v558_v56 }
 0x415   :  { %v7139_v57 = vpop.eup %7138 }
 0x416   :  { %v6443_v58 = vadd.f32 -1.0, %v7139_v57 }
 0x418   :  { %v392_v59 = vsel %vm387_vm8, %v383_v42, %v6443_v58 }
 0x419   :  { %394 = vst.msk [vmem:[#allocation2] sm:$0xf] %vm393_vm7, %v392_v59 }
 0x49b   :  { %v560_v60 = vpop.xlane.xlu1 %559 }
 0x49c   :  { %v561_v61 = vsub.f32 %v557_v55, %v560_v60 }
 0x49e   :  { %v562_v62 = vmul.f32 1.442695, %v561_v61 }
 0x4a0   :  { %7140 = vpow2.f32 %v562_v62 }
 0x4ad   :  { %v7141_v63 = vpop.eup %7140 }
 0x4ae   :  { %v564_v0 = vsel %vm300_vm5, %v7141_v63, 0.0 }
 0x4af   :  { %565 = vadd.xlane.f32.xlu1 %v564_v0 }
 0x4c0   :  { %806 = vperm.xlu1 %7133, %v727_v51  }
 0x4c4   :  { %913 = vrot.lane.b32.xlu1 %v658_v39, %s7283_s12 }
 0x538   :  { %v566_v1 = vpop.xlane.xlu1 %565 }
 0x539   :  { %7142 = vrcp.f32 %v566_v1 }
 0x53c   :  { %v807_v7 = vpop.permute.xlu1 %806 }
 0x540   :  { %v914_v10 = vpop.permute.xlu1 %913 }
 0x546   :  { %v7143_v2 = vpop.eup %7142 }
 0x547   :  { %v568_v5 = vmul.f32 %v7143_v2, %v7141_v63  ;;  %v1172_v63 = vld [vmem:[%s8111_s3] sm:$0x1] }
 0x549   :  { %6785 = vmatmul.mubr.msk.f32.vlgmr.msra.gmra.mxu1 %vm35_vm1, %v568_v5 }
 0x54a   :  { %6793 = vmatpush3.xpose.msk.msra.mxu1 %vm139_vm3, %v658_v39  ;;  %6794 = vmatprep.mubr.msk.f32.mxu1 %vm7281_vm2, %v7280_v3 }
 0x54b   :  { %6802 = vmatprep.subr.mxu1 %v7280_v3 }
 0x54d   :  { %6795 = vmatmul.mubr.msk.f32.vlgmr.msra.gmra.mxu1 %vm139_vm3, %v657_v8 }
 0x54e   :  { %6803 = vmatpush3.msra.mxu1 %v7375_v9  ;;  %6804 = vmatprep.mubr.msk.f32.mxu1 %vm7281_vm2, %v7280_v3 }
 0x54f   :  { %6812 = vmatprep.subr.mxu1 %v7280_v3 }
 0x551   :  { %6805 = vmatmul.mubr.msk.f32.vlgmr.msra.gmra.mxu1 %vm139_vm3, %v914_v10 }
 0x552   :  { %6813 = vmatpush3.msk.msra.mxu1 %vm48_vm0, %v914_v10  ;;  %6814 = vmatprep.mubr.msk.f32.mxu1 %vm7281_vm2, %v7280_v3 }
 0x553   :  { %6822 = vmatprep.subr.mxu1 %v7280_v3 }
 0x609   :  { %v7456_v11 = vpop.f32.mrf.mxu1 }
 0x60b   :  { %v6786_v12 = vpop.f32.mrf.mxu1 }
 0x60d   :  { %v800_v13 = vpop.f32.mrf.mxu1 }
 0x60e   :  { %v812_v14 = vrot.slane %v800_v13, %v7388_v18 }
 0x60f   :  { %v6796_v15 = vpop.f32.mrf.mxu1 }
 0x610   :  { %v813_v16 = vadd.f32 %v812_v14, %v807_v7 }
 0x611   :  { %v983_v17 = vpop.f32.mrf.mxu1 }
 0x612   :  { %v815_v19 = vmul.f32 0.2, %v813_v16  ;;  %vm814_vm9 = vcmp.gt.f32.partialorder %v813_v16, 0.0 }
 0x613   :  { %v6806_v20 = vpop.f32.mrf.mxu1 }
 0x614   :  { %v816_v21 = vsel %vm814_vm9, %v813_v16, %v815_v19 }
 0x615   :  { %v817_v22 = vadd.f32 %v816_v21, %v7394_v24 }
 0x617   :  { %v818_v23 = vsel %vm300_vm5, %v817_v22, -inf }
 0x618   :  { %819 = vmax.xlane.f32.xlu0 %v818_v23 }
 0x62e   :  { %1062 = vperm.xlu0 %7132, %v983_v17  }
 0x6a1   :  { %v820_v25 = vpop.xlane.xlu0 %819 }
 0x6a2   :  { %v821_v26 = vsub.f32 %v817_v22, %v820_v25 }
 0x6a4   :  { %v822_v27 = vmul.f32 1.442695, %v821_v26 }
 0x6a6   :  { %7144 = vpow2.f32 %v822_v27 }
 0x6a9   :  { %v1063_v42 = vpop.permute.xlu0 %1062 }
 0x6b3   :  { %v7145_v28 = vpop.eup %7144 }
 0x6b4   :  { %v824_v29 = vsel %vm300_vm5, %v7145_v28, 0.0 }
 0x6b5   :  { %825 = vadd.xlane.f32.xlu1 %v824_v29  ;;  %v1688_v29 = vrot.slane %v7354_v6, 4 }
 0x73e   :  { %v826_v30 = vpop.xlane.xlu1 %825 }
 0x73f   :  { %7146 = vrcp.f32 %v826_v30 }
 0x74c   :  { %v7147_v31 = vpop.eup %7146 }
 0x74d   :  { %v828_v32 = vmul.f32 %v7147_v31, %v7145_v28  ;;  %v1427_v28 = vld [vmem:[%s8111_s3 + $0x1] sm:$0x1] }
 0x74f   :  { %6800 = vmatmul.mubr.msk.f32.vlgmr.msra.gmra.mxu0 %vm35_vm1, %v828_v32 }
 0x750   :  { %6808 = vmatpush3.xpose.msk.msra.mxu0 %vm139_vm3, %v914_v10  ;;  %6809 = vmatprep.mubr.msk.f32.mxu0 %vm7281_vm2, %v7280_v3 }
 0x751   :  { %6817 = vmatprep.subr.mxu0 %v7280_v3 }
 0x753   :  { %6810 = vmatmul.mubr.msk.f32.vlgmr.msra.gmra.mxu0 %vm139_vm3, %v912_v33 }
 0x754   :  { %6818 = vmatpush3.msra.mxu0 %v7347_v4  ;;  %6819 = vmatprep.mubr.msk.f32.mxu0 %vm7281_vm2, %v7280_v3 }
 0x755   :  { %6827 = vmatprep.subr.mxu0 %v7280_v3 }
 0x757   :  { %6820 = vmatmul.mubr.msk.f32.vlgmr.msra.gmra.mxu0 %vm139_vm3, %v7354_v6 }
 0x758   :  { %6828 = vmatpush3.msk.msra.mxu0 %vm48_vm0, %v7354_v6  ;;  %6829 = vmatprep.mubr.msk.f32.mxu0 %vm7281_vm2, %v7280_v3 }
 0x759   :  { %6837 = vmatprep.subr.mxu0 %v7280_v3 }
 0x80f   :  { %v900_v34 = vpop.f32.mrf.mxu0 }
 0x810   :  { %v905_v35 = vmin.f32 %v900_v34, 0.0  ;;  %vm904_vm11 = vcmp.gt.f32.partialorder %v900_v34, 0.0 }
 0x811   :  { %v6801_v36 = vpop.f32.mrf.mxu0 }
 0x812   :  { %v906_v37 = vmul.f32 1.442695, %v905_v35 }
 0x813   :  { %v1056_v38 = vpop.f32.mrf.mxu0 }
 0x814   :  { %7148 = vpow2.f32 %v906_v37  ;;  %v1068_v39 = vrot.slane %v1056_v38, %v7388_v18 }
 0x815   :  { %v6811_v43 = vpop.f32.mrf.mxu0 }
 0x816   :  { %v1069_v44 = vadd.f32 %v1068_v39, %v1063_v42 }
 0x817   :  { %v1242_v45 = vpop.f32.mrf.mxu0 }
 0x818   :  { %v1071_v46 = vmul.f32 0.2, %v1069_v44  ;;  %1321 = vperm.xlu0 %7132, %v1242_v45   ;;  %vm1070_vm10 = vcmp.gt.f32.partialorder %v1069_v44, 0.0 }
 0x819   :  { %v6821_v47 = vpop.f32.mrf.mxu0 }
 0x81a   :  { %v1072_v48 = vsel %vm1070_vm10, %v1069_v44, %v1071_v46 }
 0x81b   :  { %v1073_v49 = vadd.f32 %v1072_v48, %v7394_v24 }
 0x81c   :  { %1428 = vrot.lane.b32.xlu0 %v7354_v6, %s7283_s12 }
 0x81d   :  { %v1074_v50 = vsel %vm300_vm5, %v1073_v49, -inf }
 0x81e   :  { %1075 = vmax.xlane.f32.xlu1 %v1074_v50 }
 0x821   :  { %v7149_v51 = vpop.eup %7148 }
 0x822   :  { %v6455_v52 = vadd.f32 -1.0, %v7149_v51 }
 0x824   :  { %v909_v53 = vsel %vm904_vm11, %v900_v34, %v6455_v52 }
 0x825   :  { %910 = vst.msk [vmem:[#allocation2 + $0x4] sm:$0xf] %vm393_vm7, %v909_v53 }
 0x893   :  { %v1322_v62 = vpop.permute.xlu0 %1321 }
 0x897   :  { %v1429_v0 = vpop.permute.xlu0 %1428 }
 0x8a7   :  { %v1076_v54 = vpop.xlane.xlu1 %1075 }
 0x8a8   :  { %v1077_v55 = vsub.f32 %v1073_v49, %v1076_v54 }
 0x8aa   :  { %v1078_v56 = vmul.f32 1.442695, %v1077_v55 }
 0x8ac   :  { %7150 = vpow2.f32 %v1078_v56 }
 0x8b9   :  { %v7151_v57 = vpop.eup %7150 }
 0x8ba   :  { %v1080_v58 = vsel %vm300_vm5, %v7151_v57, 0.0 }
 0x8bb   :  { %1081 = vadd.xlane.f32.xlu1 %v1080_v58 }
 0x944   :  { %v1082_v59 = vpop.xlane.xlu1 %1081 }
 0x945   :  { %7152 = vrcp.f32 %v1082_v59 }
 0x952   :  { %v7153_v60 = vpop.eup %7152 }
 0x953   :  { %v1084_v61 = vmul.f32 %v7153_v60, %v7151_v57  ;;  %v1687_v57 = vld [vmem:[%s8111_s3] sm:$0x1] }
 0x955   :  { %6815 = vmatmul.mubr.msk.f32.vlgmr.msra.gmra.mxu1 %vm35_vm1, %v1084_v61 }
 0x956   :  { %6823 = vmatpush3.xpose.msk.msra.mxu1 %vm139_vm3, %v7354_v6  ;;  %6824 = vmatprep.mubr.msk.f32.mxu1 %vm7281_vm2, %v7280_v3 }
 0x957   :  { %6832 = vmatprep.subr.mxu1 %v7280_v3 }
 0x959   :  { %6825 = vmatmul.mubr.msk.f32.vlgmr.msra.gmra.mxu1 %vm139_vm3, %v1172_v63 }
 0x95a   :  { %6833 = vmatpush3.msra.mxu1 %v7375_v9  ;;  %6834 = vmatprep.mubr.msk.f32.mxu1 %vm7281_vm2, %v7280_v3 }
 0x95b   :  { %6842 = vmatprep.subr.mxu1 %v7280_v3 }
 0x95d   :  { %6835 = vmatmul.mubr.msk.f32.vlgmr.msra.gmra.mxu1 %vm139_vm3, %v1429_v0 }
 0x95e   :  { %6843 = vmatpush3.msk.msra.mxu1 %vm48_vm0, %v1429_v0  ;;  %6844 = vmatprep.mubr.msk.f32.mxu1 %vm7281_vm2, %v7280_v3 }
 0x95f   :  { %6852 = vmatprep.subr.mxu1 %v7280_v3 }
 0xa15   :  { %v7508_v1 = vpop.f32.mrf.mxu1 }
 0xa17   :  { %v6816_v2 = vpop.f32.mrf.mxu1 }
 0xa19   :  { %v1315_v5 = vpop.f32.mrf.mxu1 }
 0xa1a   :  { %v1327_v7 = vrot.slane %v1315_v5, %v7388_v18 }
 0xa1b   :  { %v6826_v8 = vpop.f32.mrf.mxu1 }
 0xa1c   :  { %v1328_v10 = vadd.f32 %v1327_v7, %v1322_v62 }
 0xa1d   :  { %v1498_v12 = vpop.f32.mrf.mxu1 }
 0xa1e   :  { %v1330_v13 = vmul.f32 0.2, %v1328_v10  ;;  %1577 = vperm.xlu0 %7132, %v1498_v12   ;;  %vm1329_vm12 = vcmp.gt.f32.partialorder %v1328_v10, 0.0 }
 0xa1f   :  { %v6836_v14 = vpop.f32.mrf.mxu1 }
 0xa20   :  { %v1331_v15 = vsel %vm1329_vm12, %v1328_v10, %v1330_v13 }
 0xa21   :  { %v1332_v16 = vadd.f32 %v1331_v15, %v7394_v24 }
 0xa23   :  { %v1333_v17 = vsel %vm300_vm5, %v1332_v16, -inf }
 0xa24   :  { %1334 = vmax.xlane.f32.xlu1 %v1333_v17 }
 0xa99   :  { %v1578_v6 = vpop.permute.xlu0 %1577 }
 0xaad   :  { %v1335_v19 = vpop.xlane.xlu1 %1334 }
 0xaae   :  { %v1336_v20 = vsub.f32 %v1332_v16, %v1335_v19 }
 0xab0   :  { %v1337_v21 = vmul.f32 1.442695, %v1336_v20 }
 0xab2   :  { %7154 = vpow2.f32 %v1337_v21 }
 0xabf   :  { %v7155_v22 = vpop.eup %7154 }
 0xac0   :  { %v1339_v23 = vsel %vm300_vm5, %v7155_v22, 0.0 }
 0xac1   :  { %1340 = vadd.xlane.f32.xlu1 %v1339_v23  ;;  %v1942_v23 = vld [vmem:[%s8111_s3 + $0x1] sm:$0x1] }
 0xb4a   :  { %v1341_v25 = vpop.xlane.xlu1 %1340 }
 0xb4b   :  { %7156 = vrcp.f32 %v1341_v25 }
 0xb58   :  { %v7157_v26 = vpop.eup %7156 }
 0xb59   :  { %v1343_v27 = vmul.f32 %v7157_v26, %v7155_v22 }
 0xb5b   :  { %6830 = vmatmul.mubr.msk.f32.vlgmr.msra.gmra.mxu0 %vm35_vm1, %v1343_v27 }
 0xb5c   :  { %6838 = vmatpush3.xpose.msk.msra.mxu0 %vm139_vm3, %v1429_v0  ;;  %6839 = vmatprep.mubr.msk.f32.mxu0 %vm7281_vm2, %v7280_v3 }
 0xb5d   :  { %6847 = vmatprep.subr.mxu0 %v7280_v3 }
 0xb5f   :  { %6840 = vmatmul.mubr.msk.f32.vlgmr.msra.gmra.mxu0 %vm139_vm3, %v1427_v28 }
 0xb60   :  { %6848 = vmatpush3.msra.mxu0 %v7347_v4  ;;  %6849 = vmatprep.mubr.msk.f32.mxu0 %vm7281_vm2, %v7280_v3 }
 0xb61   :  { %6857 = vmatprep.subr.mxu0 %v7280_v3 }
 0xb63   :  { %6850 = vmatmul.mubr.msk.f32.vlgmr.msra.gmra.mxu0 %vm139_vm3, %v1688_v29 }
 0xb64   :  { %6858 = vmatpush3.msk.msra.mxu0 %vm48_vm0, %v1688_v29  ;;  %6859 = vmatprep.mubr.msk.f32.mxu0 %vm7281_vm2, %v7280_v3 }
 0xb65   :  { %6867 = vmatprep.subr.mxu0 %v7280_v3 }
 0xc1b   :  { %v1415_v30 = vpop.f32.mrf.mxu0 }
 0xc1c   :  { %v1420_v31 = vmin.f32 %v1415_v30, 0.0  ;;  %vm1419_vm14 = vcmp.gt.f32.partialorder %v1415_v30, 0.0 }
 0xc1d   :  { %v6831_v32 = vpop.f32.mrf.mxu0 }
 0xc1e   :  { %v1421_v33 = vmul.f32 1.442695, %v1420_v31 }
 0xc1f   :  { %v1571_v34 = vpop.f32.mrf.mxu0 }
 0xc20   :  { %7158 = vpow2.f32 %v1421_v33  ;;  %v1583_v35 = vrot.slane %v1571_v34, %v7388_v18 }
 0xc21   :  { %v6841_v36 = vpop.f32.mrf.mxu0 }
 0xc22   :  { %v1584_v37 = vadd.f32 %v1583_v35, %v1578_v6 }
 0xc23   :  { %v1757_v38 = vpop.f32.mrf.mxu0 }
 0xc24   :  { %v1586_v39 = vmul.f32 0.2, %v1584_v37  ;;  %vm1585_vm13 = vcmp.gt.f32.partialorder %v1584_v37, 0.0 }
 0xc25   :  { %v6851_v42 = vpop.f32.mrf.mxu0 }
 0xc26   :  { %v1587_v43 = vsel %vm1585_vm13, %v1584_v37, %v1586_v39 }
 0xc27   :  { %v1588_v44 = vadd.f32 %v1587_v43, %v7394_v24 }
 0xc29   :  { %v1589_v45 = vsel %vm300_vm5, %v1588_v44, -inf }
 0xc2a   :  { %1590 = vmax.xlane.f32.xlu1 %v1589_v45 }
 0xc2d   :  { %v7159_v46 = vpop.eup %7158 }
 0xc2e   :  { %v6467_v47 = vadd.f32 -1.0, %v7159_v46 }
 0xc30   :  { %v1424_v48 = vsel %vm1419_vm14, %v1415_v30, %v6467_v47 }
 0xc31   :  { %1425 = vst.msk [vmem:[#allocation2 + $0x8] sm:$0xf] %vm393_vm7, %v1424_v48 }
 0xc3b   :  { %1836 = vperm.xlu1 %7133, %v1757_v38  }
 0xcb3   :  { %v1591_v49 = vpop.xlane.xlu1 %1590 }
 0xcb4   :  { %v1592_v50 = vsub.f32 %v1588_v44, %v1591_v49 }
 0xcb6   :  { %v1593_v51 = vmul.f32 1.442695, %v1592_v50 }
 0xcb7   :  { %v1837_v63 = vpop.permute.xlu1 %1836 }
 0xcb8   :  { %7160 = vpow2.f32 %v1593_v51 }
 0xcc5   :  { %v7161_v52 = vpop.eup %7160 }
 0xcc6   :  { %v1595_v53 = vsel %vm300_vm5, %v7161_v52, 0.0 }
 0xcc7   :  { %1596 = vadd.xlane.f32.xlu0 %v1595_v53  ;;  %v2202_v53 = vld [vmem:[%s8111_s3] sm:$0x1] }
 0xcdd   :  { %1943 = vrot.lane.b32.xlu0 %v1688_v29, %s7283_s12 }
 0xd50   :  { %v1597_v54 = vpop.xlane.xlu0 %1596 }
 0xd51   :  { %7162 = vrcp.f32 %v1597_v54 }
 0xd54   :  { %v1944_v58 = vpop.permute.xlu0 %1943 }
 0xd5e   :  { %v7163_v55 = vpop.eup %7162 }
 0xd5f   :  { %v1599_v56 = vmul.f32 %v7163_v55, %v7161_v52 }
 0xd61   :  { %6845 = vmatmul.mubr.msk.f32.vlgmr.msra.gmra.mxu1 %vm35_vm1, %v1599_v56 }
 0xd62   :  { %6853 = vmatpush3.xpose.msk.msra.mxu1 %vm139_vm3, %v1688_v29  ;;  %6854 = vmatprep.mubr.msk.f32.mxu1 %vm7281_vm2, %v7280_v3 }
 0xd63   :  { %6862 = vmatprep.subr.mxu1 %v7280_v3 }
 0xd65   :  { %6855 = vmatmul.mubr.msk.f32.vlgmr.msra.gmra.mxu1 %vm139_vm3, %v1687_v57 }
 0xd66   :  { %6863 = vmatpush3.msra.mxu1 %v7375_v9  ;;  %6864 = vmatprep.mubr.msk.f32.mxu1 %vm7281_vm2, %v7280_v3 }
 0xd67   :  { %6872 = vmatprep.subr.mxu1 %v7280_v3 }
 0xd69   :  { %6865 = vmatmul.mubr.msk.f32.vlgmr.msra.gmra.mxu1 %vm139_vm3, %v1944_v58 }
 0xd6a   :  { %6873 = vmatpush3.msk.msra.mxu1 %vm48_vm0, %v1944_v58  ;;  %6874 = vmatprep.mubr.msk.f32.mxu1 %vm7281_vm2, %v7280_v3 }
 0xd6b   :  { %6882 = vmatprep.subr.mxu1 %v7280_v3 }
 0xe21   :  { %v7557_v59 = vpop.f32.mrf.mxu1 }
 0xe23   :  { %v6846_v60 = vpop.f32.mrf.mxu1 }
 0xe25   :  { %v1830_v61 = vpop.f32.mrf.mxu1 }
 0xe26   :  { %v1842_v62 = vrot.slane %v1830_v61, %v7388_v18 }
 0xe27   :  { %v6856_v0 = vpop.f32.mrf.mxu1 }
 0xe28   :  { %v1843_v2 = vadd.f32 %v1842_v62, %v1837_v63 }
 0xe29   :  { %v2013_v5 = vpop.f32.mrf.mxu1 }
 0xe2a   :  { %v1845_v7 = vmul.f32 0.2, %v1843_v2  ;;  %vm1844_vm15 = vcmp.gt.f32.partialorder %v1843_v2, 0.0 }
 0xe2b   :  { %v6866_v8 = vpop.f32.mrf.mxu1 }
 0xe2c   :  { %v1846_v10 = vsel %vm1844_vm15, %v1843_v2, %v1845_v7 }
 0xe2d   :  { %v1847_v12 = vadd.f32 %v1846_v10, %v7394_v24 }
 0xe2f   :  { %v1848_v13 = vsel %vm300_vm5, %v1847_v12, -inf }
 0xe30   :  { %1849 = vmax.xlane.f32.xlu1 %v1848_v13 }
 0xe41   :  { %2092 = vperm.xlu1 %7133, %v2013_v5  }
 0xeb9   :  { %v1850_v14 = vpop.xlane.xlu1 %1849 }
 0xeba   :  { %v1851_v15 = vsub.f32 %v1847_v12, %v1850_v14 }
 0xebc   :  { %v1852_v16 = vmul.f32 1.442695, %v1851_v15 }
 0xebd   :  { %v2093_v31 = vpop.permute.xlu1 %2092 }
 0xebe   :  { %7164 = vpow2.f32 %v1852_v16 }
 0xecb   :  { %v7165_v17 = vpop.eup %7164 }
 0xecc   :  { %v1854_v19 = vsel %vm300_vm5, %v7165_v17, 0.0 }
 0xecd   :  { %1855 = vadd.xlane.f32.xlu0 %v1854_v19  ;;  %v2457_v19 = vld [vmem:[%s8111_s3 + $0x1] sm:$0x1] }
 0xf56   :  { %v1856_v20 = vpop.xlane.xlu0 %1855 }
 0xf57   :  { %7166 = vrcp.f32 %v1856_v20  ;;  %v2718_v20 = vrot.slane %v7430_v41, 4 }
 0xf64   :  { %v7167_v21 = vpop.eup %7166 }
 0xf65   :  { %v1858_v22 = vmul.f32 %v7167_v21, %v7165_v17 }
 0xf67   :  { %6860 = vmatmul.mubr.msk.f32.vlgmr.msra.gmra.mxu0 %vm35_vm1, %v1858_v22 }
 0xf68   :  { %6868 = vmatpush3.xpose.msk.msra.mxu0 %vm139_vm3, %v1944_v58  ;;  %6869 = vmatprep.mubr.msk.f32.mxu0 %vm7281_vm2, %v7280_v3 }
 0xf69   :  { %6877 = vmatprep.subr.mxu0 %v7280_v3 }
 0xf6b   :  { %6870 = vmatmul.mubr.msk.f32.vlgmr.msra.gmra.mxu0 %vm139_vm3, %v1942_v23 }
 0xf6c   :  { %6878 = vmatpush3.msra.mxu0 %v7347_v4  ;;  %6879 = vmatprep.mubr.msk.f32.mxu0 %vm7281_vm2, %v7280_v3 }
 0xf6d   :  { %6887 = vmatprep.subr.mxu0 %v7280_v3 }
 0xf6f   :  { %6880 = vmatmul.mubr.msk.f32.vlgmr.msra.gmra.mxu0 %vm139_vm3, %v7430_v41 }
 0xf70   :  { %6888 = vmatpush3.msk.msra.mxu0 %vm48_vm0, %v7430_v41  ;;  %6889 = vmatprep.mubr.msk.f32.mxu0 %vm7281_vm2, %v7280_v3 }
 0xf71   :  { %6897 = vmatprep.subr.mxu0 %v7280_v3 }
0x1027   :  { %v1930_v25 = vpop.f32.mrf.mxu0 }
0x1028   :  { %v1935_v26 = vmin.f32 %v1930_v25, 0.0  ;;  %vm1934_vm6 = vcmp.gt.f32.partialorder %v1930_v25, 0.0 }
0x1029   :  { %v6861_v27 = vpop.f32.mrf.mxu0 }
0x102a   :  { %v1936_v28 = vmul.f32 1.442695, %v1935_v26 }
0x102b   :  { %v2086_v29 = vpop.f32.mrf.mxu0 }
0x102c   :  { %7168 = vpow2.f32 %v1936_v28  ;;  %v2098_v30 = vrot.slane %v2086_v29, %v7388_v18 }
0x102d   :  { %v6871_v32 = vpop.f32.mrf.mxu0 }
0x102e   :  { %v2099_v33 = vadd.f32 %v2098_v30, %v2093_v31 }
0x102f   :  { %v2272_v34 = vpop.f32.mrf.mxu0 }
0x1030   :  { %v2101_v35 = vmul.f32 0.2, %v2099_v33  ;;  %vm2100_vm4 = vcmp.gt.f32.partialorder %v2099_v33, 0.0 }
0x1031   :  { %v6881_v6 = vpop.f32.mrf.mxu0 }
0x1032   :  { %v2102_v36 = vsel %vm2100_vm4, %v2099_v33, %v2101_v35 }
0x1033   :  { %v2103_v37 = vadd.f32 %v2102_v36, %v7394_v24 }
0x1035   :  { %v2104_v38 = vsel %vm300_vm5, %v2103_v37, -inf }
0x1036   :  { %2105 = vmax.xlane.f32.xlu1 %v2104_v38 }
0x1039   :  { %v7169_v39 = vpop.eup %7168 }
0x103a   :  { %v6479_v42 = vadd.f32 -1.0, %v7169_v39 }
0x103c   :  { %v1939_v43 = vsel %vm1934_vm6, %v1930_v25, %v6479_v42 }
0x103d   :  { %1940 = vst.msk [vmem:[#allocation2 + $0xc] sm:$0xf] %vm393_vm7, %v1939_v43 }
0x10bf   :  { %v2106_v44 = vpop.xlane.xlu1 %2105 }
0x10c0   :  { %v2107_v45 = vsub.f32 %v2103_v37, %v2106_v44 }
0x10c2   :  { %v2108_v46 = vmul.f32 1.442695, %v2107_v45 }
0x10c4   :  { %7170 = vpow2.f32 %v2108_v46 }
0x10d1   :  { %v7171_v47 = vpop.eup %7170 }
0x10d2   :  { %v2110_v48 = vsel %vm300_vm5, %v7171_v47, 0.0 }
0x10d3   :  { %2111 = vadd.xlane.f32.xlu0 %v2110_v48 }
0x10e9   :  { %2351 = vperm.xlu0 %7132, %v2272_v34  }
0x10ed   :  { %2458 = vrot.lane.b32.xlu0 %v7430_v41, %s7283_s12 }
0x115c   :  { %v2112_v49 = vpop.xlane.xlu0 %2111 }
0x115d   :  { %7172 = vrcp.f32 %v2112_v49 }
0x1164   :  { %v2352_v52 = vpop.permute.xlu0 %2351 }
0x1168   :  { %v2459_v54 = vpop.permute.xlu0 %2458 }
0x116a   :  { %v7173_v50 = vpop.eup %7172 }
0x116b   :  { %v2114_v51 = vmul.f32 %v7173_v50, %v7171_v47  ;;  %v2717_v47 = vld [vmem:[%s8111_s3] sm:$0x1] }
0x116d   :  { %6875 = vmatmul.mubr.msk.f32.vlgmr.msra.gmra.mxu1 %vm35_vm1, %v2114_v51 }
0x116e   :  { %6883 = vmatpush3.xpose.msk.msra.mxu1 %vm139_vm3, %v7430_v41  ;;  %6884 = vmatprep.mubr.msk.f32.mxu1 %vm7281_vm2, %v7280_v3 }
0x116f   :  { %6892 = vmatprep.subr.mxu1 %v7280_v3 }
0x1171   :  { %6885 = vmatmul.mubr.msk.f32.vlgmr.msra.gmra.mxu1 %vm139_vm3, %v2202_v53 }
0x1172   :  { %6893 = vmatpush3.msra.mxu1 %v7375_v9  ;;  %6894 = vmatprep.mubr.msk.f32.mxu1 %vm7281_vm2, %v7280_v3 }
0x1173   :  { %6902 = vmatprep.subr.mxu1 %v7280_v3 }
0x1175   :  { %6895 = vmatmul.mubr.msk.f32.vlgmr.msra.gmra.mxu1 %vm139_vm3, %v2459_v54 }
0x1176   :  { %6903 = vmatpush3.msk.msra.mxu1 %vm48_vm0, %v2459_v54  ;;  %6904 = vmatprep.mubr.msk.f32.mxu1 %vm7281_vm2, %v7280_v3 }
0x1177   :  { %6912 = vmatprep.subr.mxu1 %v7280_v3 }
0x122d   :  { %v7609_v55 = vpop.f32.mrf.mxu1 }
0x122f   :  { %v6876_v56 = vpop.f32.mrf.mxu1 }
0x1231   :  { %v2345_v57 = vpop.f32.mrf.mxu1 }
0x1232   :  { %v2357_v58 = vrot.slane %v2345_v57, %v7388_v18 }
0x1233   :  { %v6886_v60 = vpop.f32.mrf.mxu1 }
0x1234   :  { %v2358_v61 = vadd.f32 %v2357_v58, %v2352_v52 }
0x1235   :  { %v2528_v62 = vpop.f32.mrf.mxu1 }
0x1236   :  { %v2360_v63 = vmul.f32 0.2, %v2358_v61  ;;  %2607 = vperm.xlu0 %7132, %v2528_v62   ;;  %vm2359_vm8 = vcmp.gt.f32.partialorder %v2358_v61, 0.0 }
0x1237   :  { %v6896_v0 = vpop.f32.mrf.mxu1 }
0x1238   :  { %v2361_v2 = vsel %vm2359_vm8, %v2358_v61, %v2360_v63  ;;  %vm644_vm8 = vcmp.gt.f32.partialorder %v7456_v11, 0.0 }
0x1239   :  { %v2362_v5 = vadd.f32 %v2361_v2, %v7394_v24 }
0x123b   :  { %v2363_v7 = vsel %vm300_vm5, %v2362_v5, -inf }
0x123c   :  { %2364 = vmax.xlane.f32.xlu1 %v2363_v7 }
0x12b1   :  { %v2608_v41 = vpop.permute.xlu0 %2607 }
0x12c5   :  { %v2365_v8 = vpop.xlane.xlu1 %2364 }
0x12c6   :  { %v2366_v10 = vsub.f32 %v2362_v5, %v2365_v8 }
0x12c8   :  { %v2367_v12 = vmul.f32 1.442695, %v2366_v10 }
0x12ca   :  { %7174 = vpow2.f32 %v2367_v12 }
0x12d7   :  { %v7175_v13 = vpop.eup %7174 }
0x12d8   :  { %v2369_v14 = vsel %vm300_vm5, %v7175_v13, 0.0 }
0x12d9   :  { %2370 = vadd.xlane.f32.xlu1 %v2369_v14  ;;  %v7675_v14 = vld [vmem:[%s8110_s2] sm:$0xff] }
0x1362   :  { %v2371_v15 = vpop.xlane.xlu1 %2370 }
0x1363   :  { %7176 = vrcp.f32 %v2371_v15 }
0x1370   :  { %v7177_v16 = vpop.eup %7176 }
0x1371   :  { %v2373_v17 = vmul.f32 %v7177_v16, %v7175_v13  ;;  %v2972_v13 = vld [vmem:[%s8111_s3 + $0x1] sm:$0x1] }
0x1373   :  { %6890 = vmatmul.mubr.msk.f32.vlgmr.msra.gmra.mxu0 %vm35_vm1, %v2373_v17 }
0x1374   :  { %6898 = vmatpush3.xpose.msk.msra.mxu0 %vm139_vm3, %v2459_v54  ;;  %6899 = vmatprep.mubr.msk.f32.mxu0 %vm7281_vm2, %v7280_v3 }
0x1375   :  { %6907 = vmatprep.subr.mxu0 %v7280_v3 }
0x1377   :  { %6900 = vmatmul.mubr.msk.f32.vlgmr.msra.gmra.mxu0 %vm139_vm3, %v2457_v19 }
0x1378   :  { %6908 = vmatpush3.msra.mxu0 %v7347_v4  ;;  %6909 = vmatprep.mubr.msk.f32.mxu0 %vm7281_vm2, %v7280_v3 }
0x1379   :  { %6917 = vmatprep.subr.mxu0 %v7280_v3 }
0x137b   :  { %6910 = vmatmul.mubr.msk.f32.vlgmr.msra.gmra.mxu0 %vm139_vm3, %v2718_v20 }
0x137c   :  { %6918 = vmatpush3.msk.msra.mxu0 %vm48_vm0, %v2718_v20  ;;  %6919 = vmatprep.mubr.msk.f32.mxu0 %vm7281_vm2, %v7280_v3 }
0x137d   :  { %6927 = vmatprep.subr.mxu0 %v7280_v3 }
0x1433   :  { %v2445_v21 = vpop.f32.mrf.mxu0 }
0x1434   :  { %v2450_v22 = vmin.f32 %v2445_v21, 0.0  ;;  %vm2449_vm10 = vcmp.gt.f32.partialorder %v2445_v21, 0.0 }
0x1435   :  { %v6891_v23 = vpop.f32.mrf.mxu0 }
0x1436   :  { %v2451_v4 = vmul.f32 1.442695, %v2450_v22 }
0x1437   :  { %v2601_v25 = vpop.f32.mrf.mxu0 }
0x1438   :  { %7178 = vpow2.f32 %v2451_v4  ;;  %v2613_v26 = vrot.slane %v2601_v25, %v7388_v18 }
0x1439   :  { %v6901_v27 = vpop.f32.mrf.mxu0 }
0x143a   :  { %v2614_v28 = vadd.f32 %v2613_v26, %v2608_v41 }
0x143b   :  { %v2787_v29 = vpop.f32.mrf.mxu0 }
0x143c   :  { %v2616_v30 = vmul.f32 0.2, %v2614_v28  ;;  %vm2615_vm9 = vcmp.gt.f32.partialorder %v2614_v28, 0.0 }
0x143d   :  { %v6911_v31 = vpop.f32.mrf.mxu0 }
0x143e   :  { %v2617_v32 = vsel %vm2615_vm9, %v2614_v28, %v2616_v30  ;;  %vm1160_vm9 = vcmp.gt.f32.partialorder %v7508_v1, 0.0 }
0x143f   :  { %v2618_v33 = vadd.f32 %v2617_v32, %v7394_v24 }
0x1441   :  { %v2619_v34 = vsel %vm300_vm5, %v2618_v33, -inf }
0x1442   :  { %2620 = vmax.xlane.f32.xlu1 %v2619_v34 }
0x1445   :  { %v7179_v35 = vpop.eup %7178 }
0x1446   :  { %v6491_v6 = vadd.f32 -1.0, %v7179_v35 }
0x1448   :  { %v2454_v36 = vsel %vm2449_vm10, %v2445_v21, %v6491_v6  ;;  %vm1675_vm10 = vcmp.gt.f32.partialorder %v7557_v59, 0.0 }
0x1449   :  { %2455 = vst.msk [vmem:[#allocation2 + $0x10] sm:$0xf] %vm393_vm7, %v2454_v36 }
0x1453   :  { %2866 = vperm.xlu1 %7133, %v2787_v29  }
0x14cb   :  { %v2621_v37 = vpop.xlane.xlu1 %2620 }
0x14cc   :  { %v2622_v38 = vsub.f32 %v2618_v33, %v2621_v37 }
0x14ce   :  { %v2623_v39 = vmul.f32 1.442695, %v2622_v38 }
0x14cf   :  { %v2867_v52 = vpop.permute.xlu1 %2866 }
0x14d0   :  { %7180 = vpow2.f32 %v2623_v39 }
0x14dd   :  { %v7181_v42 = vpop.eup %7180 }
0x14de   :  { %v2625_v43 = vsel %vm300_vm5, %v7181_v42, 0.0 }
0x14df   :  { %2626 = vadd.xlane.f32.xlu0 %v2625_v43  ;;  %v7708_v43 = vld [vmem:[%s8110_s2 + $0x8] sm:$0xff] }
0x14f5   :  { %2973 = vrot.lane.b32.xlu0 %v2718_v20, %s7283_s12 }
0x1568   :  { %v2627_v44 = vpop.xlane.xlu0 %2626 }
0x1569   :  { %7182 = vrcp.f32 %v2627_v44 }
0x156c   :  { %v2974_v48 = vpop.permute.xlu0 %2973 }
0x1576   :  { %v7183_v45 = vpop.eup %7182 }
0x1577   :  { %v2629_v46 = vmul.f32 %v7183_v45, %v7181_v42  ;;  %v3232_v42 = vld [vmem:[%s8111_s3] sm:$0x1] }
0x1579   :  { %6905 = vmatmul.mubr.msk.f32.vlgmr.msra.gmra.mxu1 %vm35_vm1, %v2629_v46 }
0x157a   :  { %6913 = vmatpush3.xpose.msk.msra.mxu1 %vm139_vm3, %v2718_v20  ;;  %6914 = vmatprep.mubr.msk.f32.mxu1 %vm7281_vm2, %v7280_v3 }
0x157b   :  { %6922 = vmatprep.subr.mxu1 %v7280_v3 }
0x157d   :  { %6915 = vmatmul.mubr.msk.f32.vlgmr.msra.gmra.mxu1 %vm139_vm3, %v2717_v47 }
0x157e   :  { %6923 = vmatpush3.msra.mxu1 %v7375_v9  ;;  %6924 = vmatprep.mubr.msk.f32.mxu1 %vm7281_vm2, %v7280_v3 }
0x157f   :  { %6932 = vmatprep.subr.mxu1 %v7280_v3 }
0x1581   :  { %6925 = vmatmul.mubr.msk.f32.vlgmr.msra.gmra.mxu1 %vm139_vm3, %v2974_v48 }
0x1582   :  { %6933 = vmatpush3.msk.msra.mxu1 %vm48_vm0, %v2974_v48  ;;  %6934 = vmatprep.mubr.msk.f32.mxu1 %vm7281_vm2, %v7280_v3 }
0x1583   :  { %6942 = vmatprep.subr.mxu1 %v7280_v3 }
0x1639   :  { %v7658_v49 = vpop.f32.mrf.mxu1 }
0x163b   :  { %v6906_v50 = vpop.f32.mrf.mxu1 }
0x163d   :  { %v2860_v51 = vpop.f32.mrf.mxu1 }
0x163e   :  { %v2872_v9 = vrot.slane %v2860_v51, %v7388_v18 }
0x163f   :  { %v6916_v53 = vpop.f32.mrf.mxu1 }
0x1640   :  { %v2873_v54 = vadd.f32 %v2872_v9, %v2867_v52 }
0x1641   :  { %v3043_v56 = vpop.f32.mrf.mxu1 }
0x1642   :  { %v2875_v57 = vmul.f32 0.2, %v2873_v54  ;;  %vm2874_vm11 = vcmp.gt.f32.partialorder %v2873_v54, 0.0 }
0x1643   :  { %v6926_v58 = vpop.f32.mrf.mxu1 }
0x1644   :  { %v2876_v60 = vsel %vm2874_vm11, %v2873_v54, %v2875_v57  ;;  %vm2190_vm11 = vcmp.gt.f32.partialorder %v7609_v55, 0.0 }
0x1645   :  { %v2877_v61 = vadd.f32 %v2876_v60, %v7394_v24 }
0x1647   :  { %v2878_v62 = vsel %vm300_vm5, %v2877_v61, -inf }
0x1648   :  { %2879 = vmax.xlane.f32.xlu1 %v2878_v62 }
0x1659   :  { %3122 = vperm.xlu1 %7133, %v3043_v56   ;;  %v7726_v56 = vld [vmem:[%s8112_s4] sm:$0xf] }
0x16d1   :  { %v2880_v63 = vpop.xlane.xlu1 %2879 }
0x16d2   :  { %v2881_v0 = vsub.f32 %v2877_v61, %v2880_v63 }
0x16d4   :  { %v2882_v2 = vmul.f32 1.442695, %v2881_v0 }
0x16d5   :  { %v3123_v22 = vpop.permute.xlu1 %3122 }
0x16d6   :  { %7184 = vpow2.f32 %v2882_v2 }
0x16e3   :  { %v7185_v5 = vpop.eup %7184 }
0x16e4   :  { %v2884_v7 = vsel %vm300_vm5, %v7185_v5, 0.0 }
0x16e5   :  { %2885 = vadd.xlane.f32.xlu0 %v2884_v7 }
0x176e   :  { %v2886_v8 = vpop.xlane.xlu0 %2885 }
0x176f   :  { %7186 = vrcp.f32 %v2886_v8  ;;  %v3487_v8 = vld [vmem:[%s8111_s3 + $0x1] sm:$0x1] }
0x177c   :  { %v7187_v10 = vpop.eup %7186 }
0x177d   :  { %v2888_v12 = vmul.f32 %v7187_v10, %v7185_v5  ;;  %v3748_v10 = vrot.slane %v7428_v40, 4 }
0x177f   :  { %6920 = vmatmul.mubr.msk.f32.vlgmr.msra.gmra.mxu0 %vm35_vm1, %v2888_v12 }
0x1780   :  { %6928 = vmatpush3.xpose.msk.msra.mxu0 %vm139_vm3, %v2974_v48  ;;  %6929 = vmatprep.mubr.msk.f32.mxu0 %vm7281_vm2, %v7280_v3 }
0x1781   :  { %6937 = vmatprep.subr.mxu0 %v7280_v3 }
0x1783   :  { %6930 = vmatmul.mubr.msk.f32.vlgmr.msra.gmra.mxu0 %vm139_vm3, %v2972_v13 }
0x1784   :  { %6938 = vmatpush3.msra.mxu0 %v7675_v14  ;;  %6939 = vmatprep.mubr.msk.f32.mxu0 %vm7281_vm2, %v7280_v3 }
0x1785   :  { %6947 = vmatprep.subr.mxu0 %v7280_v3 }
0x1787   :  { %6940 = vmatmul.mubr.msk.f32.vlgmr.msra.gmra.mxu0 %vm139_vm3, %v7428_v40 }
0x1788   :  { %6948 = vmatpush3.msk.msra.mxu0 %vm48_vm0, %v7428_v40  ;;  %6949 = vmatprep.mubr.msk.f32.mxu0 %vm7281_vm2, %v7280_v3 }
0x1789   :  { %6957 = vmatprep.subr.mxu0 %v7280_v3 }
0x183f   :  { %v2960_v15 = vpop.f32.mrf.mxu0 }
0x1840   :  { %v2965_v16 = vmin.f32 %v2960_v15, 0.0  ;;  %vm2964_vm13 = vcmp.gt.f32.partialorder %v2960_v15, 0.0 }
0x1841   :  { %v6921_v17 = vpop.f32.mrf.mxu0 }
0x1842   :  { %v2966_v19 = vmul.f32 1.442695, %v2965_v16 }
0x1843   :  { %v3116_v20 = vpop.f32.mrf.mxu0 }
0x1844   :  { %7188 = vpow2.f32 %v2966_v19  ;;  %v3128_v21 = vrot.slane %v3116_v20, %v7388_v18 }
0x1845   :  { %v6931_v23 = vpop.f32.mrf.mxu0 }
0x1846   :  { %v3129_v4 = vadd.f32 %v3128_v21, %v3123_v22 }
0x1847   :  { %v3302_v25 = vpop.f32.mrf.mxu0 }
0x1848   :  { %v3131_v26 = vmul.f32 0.2, %v3129_v4  ;;  %vm3130_vm12 = vcmp.gt.f32.partialorder %v3129_v4, 0.0 }
0x1849   :  { %v6941_v41 = vpop.f32.mrf.mxu0 }
0x184a   :  { %v3132_v27 = vsel %vm3130_vm12, %v3129_v4, %v3131_v26  ;;  %vm654_vm12 = vcmask 126016  }
0x184b   :  { %v3133_v28 = vadd.f32 %v3132_v27, %v7394_v24 }
0x184d   :  { %v3134_v29 = vsel %vm300_vm5, %v3133_v28, -inf }
0x184e   :  { %3135 = vmax.xlane.f32.xlu1 %v3134_v29 }
0x1851   :  { %v7189_v30 = vpop.eup %7188 }
0x1852   :  { %v6503_v31 = vadd.f32 -1.0, %v7189_v30 }
0x1854   :  { %v2969_v32 = vsel %vm2964_vm13, %v2960_v15, %v6503_v31  ;;  %vm4267_vm13 = vcmask 130048  }
0x1855   :  { %2970 = vst.msk [vmem:[#allocation2 + $0x14] sm:$0xf] %vm393_vm7, %v2969_v32 }
0x18d7   :  { %v3136_v33 = vpop.xlane.xlu1 %3135 }
0x18d8   :  { %v3137_v34 = vsub.f32 %v3133_v28, %v3136_v33 }
0x18da   :  { %v3138_v35 = vmul.f32 1.442695, %v3137_v34 }
0x18dc   :  { %7190 = vpow2.f32 %v3138_v35 }
0x18e9   :  { %v7191_v6 = vpop.eup %7190 }
0x18ea   :  { %v3140_v36 = vsel %vm300_vm5, %v7191_v6, 0.0 }
0x18eb   :  { %3141 = vadd.xlane.f32.xlu0 %v3140_v36  ;;  %v3747_v36 = vld [vmem:[%s8111_s3] sm:$0x1] }
0x1901   :  { %3381 = vperm.xlu0 %7132, %v3302_v25  }
0x1905   :  { %3488 = vrot.lane.b32.xlu0 %v7428_v40, %s7283_s12 }
0x1974   :  { %v3142_v24 = vpop.xlane.xlu0 %3141 }
0x1975   :  { %7192 = vrcp.f32 %v3142_v24 }
0x197c   :  { %v3382_v39 = vpop.permute.xlu0 %3381 }
0x1980   :  { %v3489_v44 = vpop.permute.xlu0 %3488 }
0x1982   :  { %v7193_v37 = vpop.eup %7192 }
0x1983   :  { %v3144_v38 = vmul.f32 %v7193_v37, %v7191_v6 }
0x1985   :  { %6935 = vmatmul.mubr.msk.f32.vlgmr.msra.gmra.mxu1 %vm35_vm1, %v3144_v38 }
0x1986   :  { %6943 = vmatpush3.xpose.msk.msra.mxu1 %vm139_vm3, %v7428_v40  ;;  %6944 = vmatprep.mubr.msk.f32.mxu1 %vm7281_vm2, %v7280_v3 }
0x1987   :  { %6952 = vmatprep.subr.mxu1 %v7280_v3 }
0x1989   :  { %6945 = vmatmul.mubr.msk.f32.vlgmr.msra.gmra.mxu1 %vm139_vm3, %v3232_v42 }
0x198a   :  { %6953 = vmatpush3.msra.mxu1 %v7708_v43  ;;  %6954 = vmatprep.mubr.msk.f32.mxu1 %vm7281_vm2, %v7280_v3 }
0x198b   :  { %6962 = vmatprep.subr.mxu1 %v7280_v3 }
0x198d   :  { %6955 = vmatmul.mubr.msk.f32.vlgmr.msra.gmra.mxu1 %vm139_vm3, %v3489_v44 }
0x198e   :  { %6963 = vmatpush3.msk.msra.mxu1 %vm48_vm0, %v3489_v44  ;;  %6964 = vmatprep.mubr.msk.f32.mxu1 %vm7281_vm2, %v7280_v3 }
0x198f   :  { %6972 = vmatprep.subr.mxu1 %v7280_v3 }
0x1a45   :  { %v7720_v45 = vpop.f32.mrf.mxu1 }
0x1a47   :  { %v6936_v46 = vpop.f32.mrf.mxu1 }
0x1a49   :  { %v3375_v47 = vpop.f32.mrf.mxu1 }
0x1a4a   :  { %v3387_v48 = vrot.slane %v3375_v47, %v7388_v18 }
0x1a4b   :  { %v6946_v50 = vpop.f32.mrf.mxu1 }
0x1a4c   :  { %v3388_v51 = vadd.f32 %v3387_v48, %v3382_v39  ;;  %v645_v39 = vmin.f32 %v7456_v11, 0.0  ;;  %v1161_v48 = vmin.f32 %v7508_v1, 0.0 }
0x1a4d   :  { %v3558_v9 = vpop.f32.mrf.mxu1 }
0x1a4e   :  { %v3390_v52 = vmul.f32 0.2, %v3388_v51  ;;  %3637 = vperm.xlu0 %7132, %v3558_v9   ;;  %vm3389_vm14 = vcmp.gt.f32.partialorder %v3388_v51, 0.0  ;;  %v646_v47 = vmul.f32 1.442695, %v645_v39 }
0x1a4f   :  { %v6956_v53 = vpop.f32.mrf.mxu1 }
0x1a50   :  { %v3391_v54 = vsel %vm3389_vm14, %v3388_v51, %v3390_v52  ;;  %v1162_v53 = vmul.f32 1.442695, %v1161_v48 }
0x1a51   :  { %v3392_v57 = vadd.f32 %v7726_v56, %v3391_v54  ;;  %v1676_v54 = vmin.f32 %v7557_v59, 0.0 }
0x1a53   :  { %v3393_v58 = vsel %vm300_vm5, %v3392_v57, -inf }
0x1a54   :  { %3394 = vmax.xlane.f32.xlu1 %v3393_v58 }
0x1ac9   :  { %v3638_v40 = vpop.permute.xlu0 %3637 }
0x1add   :  { %v3395_v60 = vpop.xlane.xlu1 %3394 }
0x1ade   :  { %v3396_v61 = vsub.f32 %v3392_v57, %v3395_v60 }
0x1ae0   :  { %v3397_v62 = vmul.f32 1.442695, %v3396_v61  ;;  %v1677_v61 = vmul.f32 1.442695, %v1676_v54 }
0x1ae2   :  { %7194 = vpow2.f32 %v3397_v62  ;;  %v2191_v62 = vmin.f32 %v7609_v55, 0.0 }
0x1aef   :  { %v7195_v63 = vpop.eup %7194 }
0x1af0   :  { %v3399_v0 = vsel %vm300_vm5, %v7195_v63, 0.0 }
0x1af1   :  { %3400 = vadd.xlane.f32.xlu1 %v3399_v0 }
0x1b7a   :  { %v3401_v2 = vpop.xlane.xlu1 %3400 }
0x1b7b   :  { %7196 = vrcp.f32 %v3401_v2 }
0x1b88   :  { %v7197_v5 = vpop.eup %7196 }
0x1b89   :  { %v3403_v7 = vmul.f32 %v7197_v5, %v7195_v63  ;;  %v2192_v63 = vmul.f32 1.442695, %v2191_v62  ;;  %v4366_v62 = vld [vmem:[%s8115_s7] sm:$0x1] }
0x1b8b   :  { %6950 = vmatmul.mubr.msk.f32.vlgmr.msra.gmra.mxu0 %vm35_vm1, %v3403_v7 }
0x1b8c   :  { %6958 = vmatpush3.xpose.msk.msra.mxu0 %vm139_vm3, %v3489_v44  ;;  %6959 = vmatprep.mubr.msk.f32.mxu0 %vm7281_vm2, %v7280_v3 }
0x1b8d   :  { %6967 = vmatprep.subr.mxu0 %v7280_v3 }
0x1b8f   :  { %6960 = vmatmul.mubr.msk.f32.vlgmr.msra.gmra.mxu0 %vm139_vm3, %v3487_v8 }
0x1b90   :  { %6968 = vmatpush3.msra.mxu0 %v7675_v14  ;;  %6969 = vmatprep.mubr.msk.f32.mxu0 %vm7281_vm2, %v7280_v3 }
0x1b91   :  { %6977 = vmatprep.subr.mxu0 %v7280_v3 }
0x1b93   :  { %6970 = vmatmul.mubr.msk.f32.vlgmr.msra.gmra.mxu0 %vm139_vm3, %v3748_v10 }
0x1b94   :  { %6978 = vmatpush3.msk.msra.mxu0 %vm48_vm0, %v3748_v10  ;;  %6979 = vmatprep.mubr.msk.f32.mxu0 %vm7281_vm2, %v7280_v3 }
0x1b95   :  { %6987 = vmatprep.subr.mxu0 %v7280_v3 }
0x1c4b   :  { %v3475_v12 = vpop.f32.mrf.mxu0 }
0x1c4c   :  { %v3480_v13 = vmin.f32 %v3475_v12, 0.0  ;;  %vm3479_vm4 = vcmp.gt.f32.partialorder %v3475_v12, 0.0 }
0x1c4d   :  { %v6951_v15 = vpop.f32.mrf.mxu0 }
0x1c4e   :  { %v3481_v14 = vmul.f32 1.442695, %v3480_v13 }
0x1c4f   :  { %v3631_v16 = vpop.f32.mrf.mxu0 }
0x1c50   :  { %7198 = vpow2.f32 %v3481_v14  ;;  %v3643_v17 = vrot.slane %v3631_v16, %v7388_v18 }
0x1c51   :  { %v6961_v19 = vpop.f32.mrf.mxu0 }
0x1c52   :  { %v3644_v20 = vadd.f32 %v3643_v17, %v3638_v40 }
0x1c53   :  { %v3817_v21 = vpop.f32.mrf.mxu0 }
0x1c54   :  { %v3646_v22 = vmul.f32 0.2, %v3644_v20  ;;  %vm3645_vm15 = vcmp.gt.f32.partialorder %v3644_v20, 0.0 }
0x1c55   :  { %v6971_v23 = vpop.f32.mrf.mxu0 }
0x1c56   :  { %v3647_v4 = vsel %vm3645_vm15, %v3644_v20, %v3646_v22  ;;  %vm2705_vm15 = vcmp.gt.f32.partialorder %v7658_v49, 0.0 }
0x1c57   :  { %v3648_v25 = vadd.f32 %v7726_v56, %v3647_v4 }
0x1c59   :  { %v3649_v26 = vsel %vm300_vm5, %v3648_v25, -inf }
0x1c5a   :  { %3650 = vmax.xlane.f32.xlu1 %v3649_v26  ;;  %v4266_v26 = vld [vmem:[%s8113_s5 + $0x8] sm:$0xff] }
0x1c5d   :  { %v7199_v41 = vpop.eup %7198 }
0x1c5e   :  { %v6515_v27 = vadd.f32 -1.0, %v7199_v41  ;;  %v4002_v41 = vld [vmem:[%s8111_s3 + $0x1] sm:$0x1] }
0x1c60   :  { %v3484_v28 = vsel %vm3479_vm4, %v3475_v12, %v6515_v27  ;;  %v4265_v27 = vld [vmem:[%s8113_s5] sm:$0xff]  ;;  %vm3220_vm4 = vcmp.gt.f32.partialorder %v7720_v45, 0.0 }
0x1c61   :  { %3485 = vst.msk [vmem:[#allocation2 + $0x18] sm:$0xf] %vm393_vm7, %v3484_v28 }
0x1c6b   :  { %3896 = vperm.xlu1 %7133, %v3817_v21  }
0x1ce3   :  { %v3651_v29 = vpop.xlane.xlu1 %3650 }
0x1ce4   :  { %v3652_v30 = vsub.f32 %v3648_v25, %v3651_v29 }
0x1ce6   :  { %v3653_v31 = vmul.f32 1.442695, %v3652_v30 }
0x1ce7   :  { %v3897_v44 = vpop.permute.xlu1 %3896 }
0x1ce8   :  { %7200 = vpow2.f32 %v3653_v31 }
0x1cf5   :  { %v7201_v32 = vpop.eup %7200 }
0x1cf6   :  { %v3655_v33 = vsel %vm300_vm5, %v7201_v32, 0.0 }
0x1cf7   :  { %3656 = vadd.xlane.f32.xlu0 %v3655_v33 }
0x1d0d   :  { %4003 = vrot.lane.b32.xlu0 %v3748_v10, %s7283_s12  ;;  %s7284_s12 = smov 8  }
0x1d80   :  { %v3657_v34 = vpop.xlane.xlu0 %3656 }
0x1d81   :  { %7202 = vrcp.f32 %v3657_v34 }
0x1d82   :  { %7204 = vpow2.f32 %v646_v47 }
0x1d83   :  { %7206 = vpow2.f32 %v1162_v53 }
0x1d84   :  { %v7769_v24 = vpop.permute.xlu0 %4003  ;;  %7208 = vpow2.f32 %v1677_v61  ;;  %v4365_v61 = vld [vmem:[%s8114_s6] sm:$0xf] }
0x1d85   :  { %7210 = vpow2.f32 %v2192_v63  ;;  %v4623_v63 = vld [vmem:[%s8114_s6] sm:$0xf] }
0x1d8e   :  { %v7203_v35 = vpop.eup %7202 }
0x1d8f   :  { %v3659_v6 = vmul.f32 %v7203_v35, %v7201_v32  ;;  %v7205_v0 = vpop.eup %7204 }
0x1d90   :  { %v6449_v2 = vadd.f32 -1.0, %v7205_v0  ;;  %v7207_v5 = vpop.eup %7206 }
0x1d91   :  { %6965 = vmatmul.mubr.msk.f32.vlgmr.msra.gmra.mxu1 %vm35_vm1, %v3659_v6  ;;  %v6461_v8 = vadd.f32 -1.0, %v7207_v5 }
0x1d92   :  { %6973 = vmatpush3.xpose.msk.msra.mxu1 %vm139_vm3, %v3748_v10  ;;  %6974 = vmatprep.mubr.msk.f32.mxu1 %vm7281_vm2, %v7280_v3  ;;  %v649_v7 = vsel %vm644_vm8, %v7456_v11, %v6449_v2  ;;  %v7209_v10 = vpop.eup %7208 }
0x1d93   :  { %6982 = vmatprep.subr.mxu1 %v7280_v3  ;;  %v1165_v12 = vsel %vm1160_vm9, %v7508_v1, %v6461_v8  ;;  %v6473_v13 = vadd.f32 -1.0, %v7209_v10  ;;  %v7211_v15 = vpop.eup %7210 }
0x1d94   :  { %v6485_v16 = vadd.f32 -1.0, %v7211_v15 }
0x1d95   :  { %6975 = vmatmul.mubr.msk.f32.vlgmr.msra.gmra.mxu1 %vm139_vm3, %v3747_v36  ;;  %v1680_v14 = vsel %vm1675_vm10, %v7557_v59, %v6473_v13 }
0x1d96   :  { %6983 = vmatpush3.msra.mxu1 %v7708_v43  ;;  %6984 = vmatprep.mubr.msk.f32.mxu1 %vm7281_vm2, %v7280_v3  ;;  %v2195_v11 = vsel %vm2190_vm11, %v7609_v55, %v6485_v16 }
0x1d97   :  { %6992 = vmatprep.subr.mxu1 %v7280_v3 }
0x1d99   :  { %6985 = vmatmul.mubr.msk.f32.vlgmr.msra.gmra.mxu1 %vm139_vm3, %v7769_v24 }
0x1d9a   :  { %6993 = vmatpush3.msk.msra.mxu1 %vm48_vm0, %v7769_v24  ;;  %6994 = vmatprep.mubr.msk.f32.mxu1 %vm7281_vm2, %v7280_v3 }
0x1d9b   :  { %7007 = vmatprep.subr.mxu1 %v7280_v3 }
0x1e51   :  { %v7778_v37 = vpop.f32.mrf.mxu1 }
0x1e53   :  { %v6966_v38 = vpop.f32.mrf.mxu1 }
0x1e55   :  { %v3890_v42 = vpop.f32.mrf.mxu1 }
0x1e56   :  { %v3902_v43 = vrot.slane %v3890_v42, %v7388_v18 }
0x1e57   :  { %v6976_v46 = vpop.f32.mrf.mxu1 }
0x1e58   :  { %v3903_v50 = vadd.f32 %v3902_v43, %v3897_v44 }
0x1e59   :  { %v4073_v51 = vpop.f32.mrf.mxu1 }
0x1e5a   :  { %v3905_v9 = vmul.f32 0.2, %v3903_v50  ;;  %vm3904_vm6 = vcmp.gt.f32.partialorder %v3903_v50, 0.0 }
0x1e5b   :  { %v6986_v52 = vpop.f32.mrf.mxu1 }
0x1e5c   :  { %v3906_v57 = vsel %vm3904_vm6, %v3903_v50, %v3905_v9  ;;  %vm3735_vm6 = vcmp.gt.f32.partialorder %v7778_v37, 0.0 }
0x1e5d   :  { %v3907_v58 = vadd.f32 %v7726_v56, %v3906_v57 }
0x1e5f   :  { %v3908_v60 = vsel %vm300_vm5, %v3907_v58, -inf }
0x1e60   :  { %3909 = vmax.xlane.f32.xlu1 %v3908_v60 }
0x1e71   :  { %651 = vrot.lane.b32.xlu1 %v649_v7, %s7284_s12 }
0x1e75   :  { %1167 = vrot.lane.b32.xlu1 %v1165_v12, %s7284_s12 }
0x1e79   :  { %1682 = vrot.lane.b32.xlu1 %v1680_v14, %s7284_s12 }
0x1e7d   :  { %2197 = vrot.lane.b32.xlu1 %v2195_v11, %s7284_s12 }
0x1ee9   :  { %v3910_v17 = vpop.xlane.xlu1 %3909 }
0x1eea   :  { %v3911_v40 = vsub.f32 %v3907_v58, %v3910_v17  ;;  %v2706_v17 = vmin.f32 %v7658_v49, 0.0 }
0x1eec   :  { %v3912_v1 = vmul.f32 1.442695, %v3911_v40 }
0x1eed   :  { %v652_v19 = vpop.permute.xlu1 %651 }
0x1eee   :  { %7212 = vpow2.f32 %v3912_v1  ;;  %655 = vst.msk [vmem:[#allocation2] sm:$0xf] %vm654_vm12, %v652_v19  ;;  %v2707_v19 = vmul.f32 1.442695, %v2706_v17 }
0x1ef1   :  { %v1168_v20 = vpop.permute.xlu1 %1167 }
0x1ef2   :  { %1170 = vst.msk [vmem:[#allocation2 + $0x4] sm:$0xf] %vm654_vm12, %v1168_v20  ;;  %v3221_v20 = vmin.f32 %v7720_v45, 0.0 }
0x1ef5   :  { %v1683_v59 = vpop.permute.xlu1 %1682 }
0x1ef6   :  { %1685 = vst.msk [vmem:[#allocation2 + $0x8] sm:$0xf] %vm654_vm12, %v1683_v59 }
0x1ef9   :  { %v2198_v21 = vpop.permute.xlu1 %2197  ;;  %v4261_v28 = vld [vmem:[#allocation2] sm:$0xff] }
0x1efa   :  { %2200 = vst.msk [vmem:[#allocation2 + $0xc] sm:$0xf] %vm654_vm12, %v2198_v21 }
0x1efb   :  { %v7213_v55 = vpop.eup %7212 }
0x1efc   :  { %v3914_v22 = vsel %vm300_vm5, %v7213_v55, 0.0 }
0x1efd   :  { %3915 = vadd.xlane.f32.xlu0 %v3914_v22  ;;  %v3736_v22 = vmin.f32 %v7778_v37, 0.0 }
0x1f01   :  { %v4262_v29 = vld [vmem:[#allocation2 + $0x8] sm:$0xff] }
0x1f13   :  { %4152 = vperm.xlu0 %7132, %v4073_v51  }
0x1f86   :  { %v3916_v23 = vpop.xlane.xlu0 %3915 }
0x1f87   :  { %7214 = vrcp.f32 %v3916_v23  ;;  %v3737_v23 = vmul.f32 1.442695, %v3736_v22  ;;  %v4882_v22 = vld [vmem:[%s8115_s7] sm:$0x1] }
0x1f8e   :  { %v4153_v6 = vpop.permute.xlu0 %4152 }
0x1f94   :  { %v7215_v4 = vpop.eup %7214 }
0x1f95   :  { %v3918_v25 = vmul.f32 %v7215_v4, %v7213_v55  ;;  %v3222_v55 = vmul.f32 1.442695, %v3221_v20 }
0x1f97   :  { %6980 = vmatmul.mubr.msk.f32.vlgmr.msra.gmra.mxu0 %vm35_vm1, %v3918_v25 }
0x1f98   :  { %6988 = vmatpush3.xpose.msk.msra.mxu0 %vm139_vm3, %v7769_v24  ;;  %6989 = vmatprep.mubr.msk.f32.mxu0 %vm7281_vm2, %v7280_v3 }
0x1f99   :  { %6997 = vmatprep.subr.mxu0 %v4266_v26 }
0x1f9b   :  { %6990 = vmatmul.mubr.msk.f32.vlgmr.msra.gmra.mxu0 %vm139_vm3, %v4002_v41 }
0x1f9c   :  { %6998 = vmatpush3.msra.mxu0 %v4266_v26  ;;  %7001 = vmatprep.mubr.msk.f32.mxu0 %vm4267_vm13, %v4261_v28 }
0x1f9d   :  { %6999 = vmatprep.subr.mxu0 %v4265_v27 }
0x1f9e   :  { %7000 = vmatpush3.msra.mxu0 %v4265_v27 }
0x1f9f   :  { %7002 = vmatmul.mubr.msk.f32.vlgmr.msra.gmra.mxu0 %vm4267_vm13, %v4262_v29  ;;  %7017 = vmatprep.subr.mxu0 %v7280_v3 }
0x2057   :  { %v3990_v30 = vpop.f32.mrf.mxu0 }
0x2058   :  { %v3995_v31 = vmin.f32 %v3990_v30, 0.0  ;;  %vm3994_vm14 = vcmp.gt.f32.partialorder %v3990_v30, 0.0 }
0x2059   :  { %v6981_v32 = vpop.f32.mrf.mxu0 }
0x205a   :  { %v3996_v33 = vmul.f32 1.442695, %v3995_v31 }
0x205b   :  { %v4146_v34 = vpop.f32.mrf.mxu0 }
0x205c   :  { %7216 = vpow2.f32 %v3996_v33  ;;  %v4158_v35 = vrot.slane %v4146_v34, %v7388_v18 }
0x205d   :  { %v6991_v36 = vpop.f32.mrf.mxu0 }
0x205e   :  { %v4159_v24 = vadd.f32 %v4158_v35, %v4153_v6 }
0x205f   :  { %v7823_v38 = vpop.f32.mrf.mxu0 }
0x2060   :  { %v4161_v39 = vmul.f32 0.2, %v4159_v24  ;;  %vm4160_vm3 = vcmp.gt.f32.partialorder %v4159_v24, 0.0 }
0x2061   :  { %v4346_v42 = vpop.f32.mrf.mxu0 }
0x2062   :  { %7018 = vmatpush3.msk.msra.mxu0 %vm48_vm0, %v4346_v42  ;;  %v4162_v43 = vsel %vm4160_vm3, %v4159_v24, %v4161_v39  ;;  %v7854_v0 = vrot.slane %v4346_v42, 4 }
0x2063   :  { %v4163_v44 = vadd.f32 %v7726_v56, %v4162_v43  ;;  %7027 = vmatprep.subr.mxu0 %v7280_v3 }
0x2065   :  { %v4164_v46 = vsel %vm300_vm5, %v4163_v44, -inf }
0x2066   :  { %4165 = vmax.xlane.f32.xlu1 %v4164_v46 }
0x2069   :  { %v7217_v47 = vpop.eup %7216 }
0x206a   :  { %v6527_v48 = vadd.f32 -1.0, %v7217_v47 }
0x206c   :  { %v3999_v50 = vsel %vm3994_vm14, %v3990_v30, %v6527_v48 }
0x206d   :  { %4000 = vst.msk [vmem:[#allocation2 + $0x1c] sm:$0xf] %vm393_vm7, %v3999_v50 }
0x20ef   :  { %v4166_v51 = vpop.xlane.xlu1 %4165 }
0x20f0   :  { %v4167_v9 = vsub.f32 %v4163_v44, %v4166_v51 }
0x20f2   :  { %v4168_v52 = vmul.f32 1.442695, %v4167_v9  ;;  %v4624_v9 = vld [vmem:[%s8115_s7] sm:$0x1] }
0x20f4   :  { %7218 = vpow2.f32 %v4168_v52  ;;  %v4881_v52 = vld [vmem:[%s8114_s6] sm:$0xf] }
0x2101   :  { %v7219_v53 = vpop.eup %7218 }
0x2102   :  { %v4170_v54 = vsel %vm300_vm5, %v7219_v53, 0.0 }
0x2103   :  { %4171 = vadd.xlane.f32.xlu0 %v4170_v54 }
0x218c   :  { %v4172_v57 = vpop.xlane.xlu0 %4171 }
0x218d   :  { %7220 = vrcp.f32 %v4172_v57 }
0x218e   :  { %7222 = vpow2.f32 %v2707_v19 }
0x218f   :  { %7224 = vpow2.f32 %v3222_v55 }
0x2190   :  { %7226 = vpow2.f32 %v3737_v23  ;;  %v5139_v23 = vld [vmem:[%s8114_s6] sm:$0xf] }
0x219a   :  { %v7221_v58 = vpop.eup %7220 }
0x219b   :  { %v4174_v60 = vmul.f32 %v7221_v58, %v7219_v53  ;;  %v7223_v26 = vpop.eup %7222 }
0x219c   :  { %v6497_v41 = vadd.f32 -1.0, %v7223_v26  ;;  %v7225_v27 = vpop.eup %7224 }
0x219d   :  { %6995 = vmatmul.mubr.msk.f32.vlgmr.msra.gmra.mxu1 %vm35_vm1, %v4174_v60  ;;  %v6509_v29 = vadd.f32 -1.0, %v7225_v27  ;;  %v7227_v30 = vpop.eup %7226 }
0x219e   :  { %7008 = vmatpush3.msk.msra.mxu1 %vm48_vm0, %v4365_v61  ;;  %7009 = vmatprep.mubr.msk.f32.mxu1 %vm7281_vm2, %v7280_v3  ;;  %v2710_v28 = vsel %vm2705_vm15, %v7658_v49, %v6497_v41  ;;  %v6521_v32 = vadd.f32 -1.0, %v7227_v30 }
0x219f   :  { %7012 = vmatprep.subr.mxu1 %v7280_v3  ;;  %v3225_v31 = vsel %vm3220_vm4, %v7720_v45, %v6509_v29 }
0x21a0   :  { %v3740_v34 = vsel %vm3735_vm6, %v7778_v37, %v6521_v32 }
0x21a1   :  { %7010 = vmatmul.mubr.msk.f32.vlgmr.msra.gmra.mxu1 %vm35_vm1, %v4346_v42 }
0x21a2   :  { %7013 = vmatpush3.xpose.msk.msra.mxu1 %vm35_vm1, %v4346_v42  ;;  %7014 = vmatprep.mubr.msk.f32.mxu1 %vm7281_vm2, %v7280_v3 }
0x21a3   :  { %7022 = vmatprep.subr.mxu1 %v7280_v3 }
0x21a5   :  { %7015 = vmatmul.mubr.msk.f32.vlgmr.msra.gmra.mxu1 %vm35_vm1, %v4366_v62 }
0x21a6   :  { %7023 = vmatpush3.msk.msra.mxu1 %vm48_vm0, %v4623_v63  ;;  %7024 = vmatprep.mubr.msk.f32.mxu1 %vm7281_vm2, %v7280_v3 }
0x21a7   :  { %7032 = vmatprep.subr.mxu1 %v7280_v3 }
0x21a9   :  { %7025 = vmatmul.mubr.msk.f32.vlgmr.msra.gmra.mxu1 %vm35_vm1, %v7854_v0 }
0x21aa   :  { %7033 = vmatpush3.msk.msra.mxu1 %vm48_vm0, %v7854_v0  ;;  %7034 = vmatprep.mubr.msk.f32.mxu1 %vm7281_vm2, %v7280_v3 }
0x21ab   :  { %7042 = vmatprep.subr.mxu1 %v7280_v3 }
0x225d   :  { %v4246_v2 = vpop.f32.mrf.mxu1 }
0x225e   :  { %v4251_v4 = vmin.f32 %v4246_v2, 0.0  ;;  %vm4250_vm8 = vcmp.gt.f32.partialorder %v4246_v2, 0.0 }
0x225f   :  { %v6996_v5 = vpop.f32.mrf.mxu1 }
0x2260   :  { %v4252_v25 = vmul.f32 1.442695, %v4251_v4  ;;  %v5141_v4 = vrot.slane %v7823_v38, 4 }
0x2261   :  { %v4439_v7 = vpop.f32.mrf.mxu1 }
0x2262   :  { %4518 = vperm.xlu1 %7133, %v4439_v7   ;;  %7228 = vpow2.f32 %v4252_v25 }
0x2263   :  { %v7011_v8 = vpop.f32.mrf.mxu1 }
0x2265   :  { %v4512_v10 = vpop.f32.mrf.mxu1 }
0x2266   :  { %v4524_v14 = vrot.slane %v4512_v10, %v7388_v18 }
0x2267   :  { %v7016_v12 = vpop.f32.mrf.mxu1 }
0x2269   :  { %v7864_v13 = vpop.f32.mrf.mxu1 }
0x226b   :  { %v7026_v15 = vpop.f32.mrf.mxu1 }
0x226f   :  { %v7229_v33 = vpop.eup %7228 }
0x2270   :  { %v6533_v35 = vadd.f32 -1.0, %v7229_v33 }
0x2272   :  { %v4255_v49 = vsel %vm4250_vm8, %v4246_v2, %v6533_v35 }
0x22dd   :  { %v4519_v16 = vpop.permute.xlu1 %4518 }
0x22de   :  { %v4525_v11 = vadd.f32 %v4524_v14, %v4519_v16 }
0x22e0   :  { %vm4526_vm7 = vcmp.gt.f32.partialorder %v4525_v11, 0.0  ;;  %v4527_v40 = vmul.f32 0.2, %v4525_v11 }
0x22e2   :  { %v4528_v1 = vsel %vm4526_vm7, %v4525_v11, %v4527_v40 }
0x22e3   :  { %v4529_v59 = vadd.f32 %v7726_v56, %v4528_v1 }
0x22e5   :  { %v4530_v21 = vsel %vm300_vm5, %v4529_v59, -inf }
0x22e6   :  { %4531 = vmax.xlane.f32.xlu0 %v4530_v21 }
0x22fc   :  { %2712 = vrot.lane.b32.xlu0 %v2710_v28, %s7284_s12 }
0x2300   :  { %3227 = vrot.lane.b32.xlu0 %v3225_v31, %s7284_s12 }
0x2304   :  { %3742 = vrot.lane.b32.xlu0 %v3740_v34, %s7284_s12 }
0x2308   :  { %4257 = vrot.lane.b32.xlu0 %v4255_v49, %s7284_s12 }
0x236f   :  { %v4532_v6 = vpop.xlane.xlu0 %4531 }
0x2370   :  { %v4533_v36 = vsub.f32 %v4529_v59, %v4532_v6 }
0x2372   :  { %v4534_v24 = vmul.f32 1.442695, %v4533_v36 }
0x2373   :  { %v2713_v39 = vpop.permute.xlu0 %2712 }
0x2374   :  { %7230 = vpow2.f32 %v4534_v24  ;;  %2715 = vst.msk [vmem:[#allocation2 + $0x10] sm:$0xf] %vm654_vm12, %v2713_v39 }
0x2377   :  { %v3228_v45 = vpop.permute.xlu0 %3227 }
0x2378   :  { %3230 = vst.msk [vmem:[#allocation2 + $0x14] sm:$0xf] %vm654_vm12, %v3228_v45 }
0x237b   :  { %v3743_v42 = vpop.permute.xlu0 %3742 }
0x237c   :  { %3745 = vst.msk [vmem:[#allocation2 + $0x18] sm:$0xf] %vm654_vm12, %v3743_v42 }
0x237f   :  { %v4258_v37 = vpop.permute.xlu0 %4257  ;;  %v4263_v43 = vld [vmem:[#allocation2 + $0x10] sm:$0xff] }
0x2380   :  { %4260 = vst.msk [vmem:[#allocation2 + $0x1c] sm:$0xf] %vm654_vm12, %v4258_v37  ;;  %7004 = vmatprep.mubr.msk.f32.mxu0 %vm4267_vm13, %v4263_v43 }
0x2381   :  { %v7231_v44 = vpop.eup %7230 }
0x2382   :  { %v4536_v46 = vsel %vm300_vm5, %v7231_v44, 0.0 }
0x2383   :  { %4537 = vadd.xlane.f32.xlu1 %v4536_v46 }
0x2387   :  { %v4264_v47 = vld [vmem:[#allocation2 + $0x18] sm:$0xff] }
0x2388   :  { %7005 = vmatmul.mubr.msk.f32.gmra.mxu0 %vm4267_vm13, %v4264_v47 }
0x2389   :  { %7019 = vmatprep.mubr.msk.f32.mxu0 %vm7281_vm2, %v7280_v3 }
0x2394   :  { %4776 = vperm.xlu1 %7133, %v7864_v13  }
0x240c   :  { %v4538_v48 = vpop.xlane.xlu1 %4537 }
0x240d   :  { %7232 = vrcp.f32 %v4538_v48 }
0x241a   :  { %v7233_v50 = vpop.eup %7232 }
0x241b   :  { %v4540_v51 = vmul.f32 %v7233_v50, %v7231_v44  ;;  %v5140_v50 = vld [vmem:[%s8115_s7] sm:$0x1] }
0x241d   :  { %7020 = vmatmul.mubr.msk.f32.vlgmr.msra.gmra.mxu0 %vm35_vm1, %v4540_v51  ;;  %v5397_v51 = vld [vmem:[%s8114_s6] sm:$0xf] }
0x241e   :  { %7028 = vmatpush3.xpose.msk.msra.mxu0 %vm35_vm1, %v7854_v0  ;;  %7029 = vmatprep.mubr.msk.f32.mxu0 %vm7281_vm2, %v7280_v3  ;;  %v4777_v0 = vpop.permute.xlu1 %4776 }
0x241f   :  { %7037 = vmatprep.subr.mxu0 %v7280_v3 }
0x2421   :  { %7030 = vmatmul.mubr.msk.f32.vlgmr.msra.gmra.mxu0 %vm35_vm1, %v4624_v9 }
0x2422   :  { %7038 = vmatpush3.msk.msra.mxu0 %vm48_vm0, %v4881_v52  ;;  %7039 = vmatprep.mubr.msk.f32.mxu0 %vm7281_vm2, %v7280_v3 }
0x2423   :  { %7047 = vmatprep.subr.mxu0 %v7280_v3 }
0x2425   :  { %7040 = vmatmul.mubr.msk.f32.vlgmr.msra.gmra.mxu0 %vm35_vm1, %v7823_v38 }
0x2426   :  { %7048 = vmatpush3.msk.msra.mxu0 %vm48_vm0, %v7823_v38  ;;  %7049 = vmatprep.mubr.msk.f32.mxu0 %vm7281_vm2, %v7280_v3 }
0x2427   :  { %7057 = vmatprep.subr.mxu0 %v7280_v3 }
0x2448   :  { %v7916_v53 = vpop.f32.mrf.mxu0 }
0x244a   :  { %v7918_v54 = vpop.f32.mrf.mxu0 }
0x24dd   :  { %v4612_v57 = vpop.f32.mrf.mxu0 }
0x24de   :  { %v4617_v58 = vmin.f32 %v4612_v57, 0.0  ;;  %vm4616_vm10 = vcmp.gt.f32.partialorder %v4612_v57, 0.0 }
0x24df   :  { %v7021_v60 = vpop.f32.mrf.mxu0 }
0x24e0   :  { %v4618_v61 = vmul.f32 1.442695, %v4617_v58 }
0x24e1   :  { %v4770_v62 = vpop.f32.mrf.mxu0 }
0x24e2   :  { %7234 = vpow2.f32 %v4618_v61  ;;  %v4782_v63 = vrot.slane %v4770_v62, %v7388_v18 }
0x24e3   :  { %v7031_v2 = vpop.f32.mrf.mxu0 }
0x24e4   :  { %v4783_v5 = vadd.f32 %v4782_v63, %v4777_v0 }
0x24e5   :  { %v4955_v7 = vpop.f32.mrf.mxu0 }
0x24e6   :  { %v4785_v8 = vmul.f32 0.2, %v4783_v5  ;;  %vm4784_vm9 = vcmp.gt.f32.partialorder %v4783_v5, 0.0 }
0x24e7   :  { %v7041_v10 = vpop.f32.mrf.mxu0 }
0x24e8   :  { %v4786_v12 = vsel %vm4784_vm9, %v4783_v5, %v4785_v8 }
0x24e9   :  { %v4787_v13 = vadd.f32 %v7726_v56, %v4786_v12 }
0x24eb   :  { %v4788_v15 = vsel %vm300_vm5, %v4787_v13, -inf }
0x24ec   :  { %4789 = vmax.xlane.f32.xlu0 %v4788_v15 }
0x24ef   :  { %v7235_v14 = vpop.eup %7234 }
0x24f0   :  { %v6544_v16 = vadd.f32 -1.0, %v7235_v14 }
0x24f2   :  { %v4621_v11 = vsel %vm4616_vm10, %v4612_v57, %v6544_v16 }
0x24f3   :  { %4622 = vst.msk [vmem:[%s8116_s8] sm:$0xf] %vm300_vm5, %v4621_v11 }
0x2502   :  { %5034 = vperm.xlu0 %7132, %v4955_v7  }
0x2575   :  { %v4790_v17 = vpop.xlane.xlu0 %4789 }
0x2576   :  { %v4791_v40 = vsub.f32 %v4787_v13, %v4790_v17 }
0x2578   :  { %v4792_v1 = vmul.f32 1.442695, %v4791_v40 }
0x257a   :  { %7236 = vpow2.f32 %v4792_v1 }
0x2587   :  { %v7237_v19 = vpop.eup %7236 }
0x2588   :  { %v4794_v20 = vsel %vm300_vm5, %v7237_v19, 0.0 }
0x2589   :  { %4795 = vadd.xlane.f32.xlu1 %v4794_v20 }
0x2612   :  { %v4796_v59 = vpop.xlane.xlu1 %4795 }
0x2613   :  { %7238 = vrcp.f32 %v4796_v59 }
0x2620   :  { %v7239_v21 = vpop.eup %7238 }
0x2621   :  { %v4798_v55 = vmul.f32 %v7239_v21, %v7237_v19  ;;  %v5398_v21 = vld [vmem:[%s8115_s7] sm:$0x1] }
0x2623   :  { %7035 = vmatmul.mubr.msk.f32.vlgmr.msra.gmra.mxu1 %vm35_vm1, %v4798_v55  ;;  %v5655_v55 = vld [vmem:[%s8114_s6] sm:$0xf] }
0x2624   :  { %7043 = vmatpush3.xpose.msk.msra.mxu1 %vm35_vm1, %v7823_v38  ;;  %7044 = vmatprep.mubr.msk.f32.mxu1 %vm7281_vm2, %v7280_v3  ;;  %v5035_v38 = vpop.permute.xlu0 %5034 }
0x2625   :  { %7052 = vmatprep.subr.mxu1 %v7280_v3 }
0x2627   :  { %7045 = vmatmul.mubr.msk.f32.vlgmr.msra.gmra.mxu1 %vm35_vm1, %v4882_v22  ;;  %v5657_v22 = vrot.slane %v7918_v54, 4 }
0x2628   :  { %7053 = vmatpush3.msk.msra.mxu1 %vm48_vm0, %v5139_v23  ;;  %7054 = vmatprep.mubr.msk.f32.mxu1 %vm7281_vm2, %v7280_v3 }
0x2629   :  { %7062 = vmatprep.subr.mxu1 %v7280_v3 }
0x262b   :  { %7055 = vmatmul.mubr.msk.f32.vlgmr.msra.gmra.mxu1 %vm35_vm1, %v5141_v4 }
0x262c   :  { %7063 = vmatpush3.msk.msra.mxu1 %vm48_vm0, %v5141_v4  ;;  %7064 = vmatprep.mubr.msk.f32.mxu1 %vm7281_vm2, %v7280_v3 }
0x262d   :  { %7072 = vmatprep.subr.mxu1 %v7280_v3 }
0x26e3   :  { %v4870_v25 = vpop.f32.mrf.mxu1 }
0x26e4   :  { %v4875_v26 = vmin.f32 %v4870_v25, 0.0  ;;  %vm4874_vm12 = vcmp.gt.f32.partialorder %v4870_v25, 0.0 }
0x26e5   :  { %v7036_v41 = vpop.f32.mrf.mxu1 }
0x26e6   :  { %v4876_v27 = vmul.f32 1.442695, %v4875_v26 }
0x26e7   :  { %v5028_v28 = vpop.f32.mrf.mxu1 }
0x26e8   :  { %7240 = vpow2.f32 %v4876_v27  ;;  %v5040_v29 = vrot.slane %v5028_v28, %v7388_v18 }
0x26e9   :  { %v7046_v30 = vpop.f32.mrf.mxu1 }
0x26ea   :  { %v5041_v31 = vadd.f32 %v5040_v29, %v5035_v38 }
0x26eb   :  { %v5213_v32 = vpop.f32.mrf.mxu1 }
0x26ec   :  { %v5043_v33 = vmul.f32 0.2, %v5041_v31  ;;  %vm5042_vm11 = vcmp.gt.f32.partialorder %v5041_v31, 0.0 }
0x26ed   :  { %v7056_v34 = vpop.f32.mrf.mxu1 }
0x26ee   :  { %v5044_v35 = vsel %vm5042_vm11, %v5041_v31, %v5043_v33 }
0x26ef   :  { %v5045_v49 = vadd.f32 %v7726_v56, %v5044_v35 }
0x26f1   :  { %v5046_v6 = vsel %vm300_vm5, %v5045_v49, -inf }
0x26f2   :  { %5047 = vmax.xlane.f32.xlu1 %v5046_v6 }
0x26f5   :  { %v7241_v36 = vpop.eup %7240 }
0x26f6   :  { %v6551_v24 = vadd.f32 -1.0, %v7241_v36 }
0x26f8   :  { %v4879_v39 = vsel %vm4874_vm12, %v4870_v25, %v6551_v24 }
0x26f9   :  { %4880 = vst.msk [vmem:[%s8116_s8 + $0x4] sm:$0xf] %vm300_vm5, %v4879_v39 }
0x2703   :  { %5292 = vperm.xlu1 %7133, %v5213_v32  }
0x277b   :  { %v5048_v45 = vpop.xlane.xlu1 %5047 }
0x277c   :  { %v5049_v42 = vsub.f32 %v5045_v49, %v5048_v45 }
0x277e   :  { %v5050_v37 = vmul.f32 1.442695, %v5049_v42 }
0x277f   :  { %v5293_v62 = vpop.permute.xlu1 %5292 }
0x2780   :  { %7242 = vpow2.f32 %v5050_v37 }
0x278d   :  { %v7243_v43 = vpop.eup %7242 }
0x278e   :  { %v5052_v44 = vsel %vm300_vm5, %v7243_v43, 0.0 }
0x278f   :  { %5053 = vadd.xlane.f32.xlu0 %v5052_v44  ;;  %v5656_v44 = vld [vmem:[%s8115_s7] sm:$0x1] }
0x2818   :  { %v5054_v46 = vpop.xlane.xlu0 %5053 }
0x2819   :  { %7244 = vrcp.f32 %v5054_v46  ;;  %v5913_v46 = vld [vmem:[%s8114_s6] sm:$0xf] }
0x2826   :  { %v7245_v47 = vpop.eup %7244 }
0x2827   :  { %v5056_v48 = vmul.f32 %v7245_v47, %v7243_v43 }
0x2829   :  { %7050 = vmatmul.mubr.msk.f32.vlgmr.msra.gmra.mxu0 %vm35_vm1, %v5056_v48 }
0x282a   :  { %7058 = vmatpush3.xpose.msk.msra.mxu0 %vm35_vm1, %v5141_v4  ;;  %7059 = vmatprep.mubr.msk.f32.mxu0 %vm7281_vm2, %v7280_v3 }
0x282b   :  { %7067 = vmatprep.subr.mxu0 %v7280_v3 }
0x282d   :  { %7060 = vmatmul.mubr.msk.f32.vlgmr.msra.gmra.mxu0 %vm35_vm1, %v5140_v50 }
0x282e   :  { %7068 = vmatpush3.msk.msra.mxu0 %vm48_vm0, %v5397_v51  ;;  %7069 = vmatprep.mubr.msk.f32.mxu0 %vm7281_vm2, %v7280_v3 }
0x282f   :  { %7077 = vmatprep.subr.mxu0 %v7280_v3 }
0x2831   :  { %7070 = vmatmul.mubr.msk.f32.vlgmr.msra.gmra.mxu0 %vm35_vm1, %v7918_v54 }
0x2832   :  { %7078 = vmatpush3.msk.msra.mxu0 %vm48_vm0, %v7918_v54  ;;  %7079 = vmatprep.mubr.msk.f32.mxu0 %vm7281_vm2, %v7280_v3 }
0x2833   :  { %7087 = vmatprep.subr.mxu0 %v7280_v3 }
0x28e9   :  { %v5128_v9 = vpop.f32.mrf.mxu0 }
0x28ea   :  { %v5133_v52 = vmin.f32 %v5128_v9, 0.0  ;;  %vm5132_vm3 = vcmp.gt.f32.partialorder %v5128_v9, 0.0 }
0x28eb   :  { %v7051_v57 = vpop.f32.mrf.mxu0 }
0x28ec   :  { %v5134_v58 = vmul.f32 1.442695, %v5133_v52 }
0x28ed   :  { %v5286_v60 = vpop.f32.mrf.mxu0 }
0x28ee   :  { %7246 = vpow2.f32 %v5134_v58  ;;  %v5298_v61 = vrot.slane %v5286_v60, %v7388_v18 }
0x28ef   :  { %v7061_v63 = vpop.f32.mrf.mxu0 }
0x28f0   :  { %v5299_v0 = vadd.f32 %v5298_v61, %v5293_v62 }
0x28f1   :  { %v5471_v2 = vpop.f32.mrf.mxu0 }
0x28f2   :  { %v5301_v5 = vmul.f32 0.2, %v5299_v0  ;;  %vm5300_vm13 = vcmp.gt.f32.partialorder %v5299_v0, 0.0 }
0x28f3   :  { %v7071_v7 = vpop.f32.mrf.mxu0 }
0x28f4   :  { %v5302_v8 = vsel %vm5300_vm13, %v5299_v0, %v5301_v5 }
0x28f5   :  { %v5303_v10 = vadd.f32 %v7726_v56, %v5302_v8 }
0x28f7   :  { %v5304_v12 = vsel %vm300_vm5, %v5303_v10, -inf }
0x28f8   :  { %5305 = vmax.xlane.f32.xlu1 %v5304_v12 }
0x28fb   :  { %v7247_v13 = vpop.eup %7246 }
0x28fc   :  { %v6558_v15 = vadd.f32 -1.0, %v7247_v13 }
0x28fe   :  { %v5137_v14 = vsel %vm5132_vm3, %v5128_v9, %v6558_v15 }
0x28ff   :  { %5138 = vst.msk [vmem:[%s8116_s8 + $0x8] sm:$0xf] %vm300_vm5, %v5137_v14 }
0x2981   :  { %v5306_v16 = vpop.xlane.xlu1 %5305 }
0x2982   :  { %v5307_v11 = vsub.f32 %v5303_v10, %v5306_v16 }
0x2984   :  { %v5308_v17 = vmul.f32 1.442695, %v5307_v11 }
0x2986   :  { %7248 = vpow2.f32 %v5308_v17 }
0x2993   :  { %v7249_v40 = vpop.eup %7248 }
0x2994   :  { %v5310_v1 = vsel %vm300_vm5, %v7249_v40, 0.0 }
0x2995   :  { %5311 = vadd.xlane.f32.xlu0 %v5310_v1 }
0x29ab   :  { %5550 = vperm.xlu0 %7132, %v5471_v2   ;;  %v8048_v2 = vld [vmem:[%s8112_s4] sm:$0xf] }
0x2a1e   :  { %v5312_v19 = vpop.xlane.xlu0 %5311 }
0x2a1f   :  { %7250 = vrcp.f32 %v5312_v19  ;;  %v5914_v19 = vld [vmem:[%s8115_s7] sm:$0x1] }
0x2a2c   :  { %v7251_v20 = vpop.eup %7250 }
0x2a2d   :  { %v5314_v59 = vmul.f32 %v7251_v20, %v7249_v40  ;;  %v6171_v20 = vld [vmem:[%s8114_s6] sm:$0xf] }
0x2a2f   :  { %7065 = vmatmul.mubr.msk.f32.vlgmr.msra.gmra.mxu1 %vm35_vm1, %v5314_v59  ;;  %v6173_v59 = vrot.slane %v7916_v53, 4 }
0x2a30   :  { %7073 = vmatpush3.xpose.msk.msra.mxu1 %vm35_vm1, %v7918_v54  ;;  %7074 = vmatprep.mubr.msk.f32.mxu1 %vm7281_vm2, %v7280_v3  ;;  %v5551_v54 = vpop.permute.xlu0 %5550 }
0x2a31   :  { %7082 = vmatprep.subr.mxu1 %v7280_v3 }
0x2a33   :  { %7075 = vmatmul.mubr.msk.f32.vlgmr.msra.gmra.mxu1 %vm35_vm1, %v5398_v21 }
0x2a34   :  { %7083 = vmatpush3.msk.msra.mxu1 %vm48_vm0, %v5655_v55  ;;  %7084 = vmatprep.mubr.msk.f32.mxu1 %vm7281_vm2, %v7280_v3 }
0x2a35   :  { %7092 = vmatprep.subr.mxu1 %v7280_v3 }
0x2a37   :  { %7085 = vmatmul.mubr.msk.f32.vlgmr.msra.gmra.mxu1 %vm35_vm1, %v5657_v22 }
0x2a38   :  { %7093 = vmatpush3.msk.msra.mxu1 %vm48_vm0, %v5657_v22  ;;  %7094 = vmatprep.mubr.msk.f32.mxu1 %vm7281_vm2, %v7280_v3 }
0x2a39   :  { %7102 = vmatprep.subr.mxu1 %v7280_v3 }
0x2aef   :  { %v5386_v23 = vpop.f32.mrf.mxu1 }
0x2af0   :  { %v5391_v4 = vmin.f32 %v5386_v23, 0.0  ;;  %vm5390_vm7 = vcmp.gt.f32.partialorder %v5386_v23, 0.0 }
0x2af1   :  { %v7066_v25 = vpop.f32.mrf.mxu1 }
0x2af2   :  { %v5392_v26 = vmul.f32 1.442695, %v5391_v4 }
0x2af3   :  { %v5544_v41 = vpop.f32.mrf.mxu1 }
0x2af4   :  { %7252 = vpow2.f32 %v5392_v26  ;;  %v5556_v27 = vrot.slane %v5544_v41, %v7388_v18 }
0x2af5   :  { %v7076_v28 = vpop.f32.mrf.mxu1 }
0x2af6   :  { %v5557_v29 = vadd.f32 %v5556_v27, %v5551_v54 }
0x2af7   :  { %v5729_v38 = vpop.f32.mrf.mxu1 }
0x2af8   :  { %v5559_v30 = vmul.f32 0.2, %v5557_v29  ;;  %vm5558_vm14 = vcmp.gt.f32.partialorder %v5557_v29, 0.0 }
0x2af9   :  { %v7086_v31 = vpop.f32.mrf.mxu1 }
0x2afa   :  { %v5560_v32 = vsel %vm5558_vm14, %v5557_v29, %v5559_v30 }
0x2afb   :  { %v5561_v33 = vadd.f32 %v7726_v56, %v5560_v32 }
0x2afd   :  { %v5562_v34 = vsel %vm300_vm5, %v5561_v33, -inf }
0x2afe   :  { %5563 = vmax.xlane.f32.xlu1 %v5562_v34 }
0x2b01   :  { %v7253_v35 = vpop.eup %7252 }
0x2b02   :  { %v6565_v49 = vadd.f32 -1.0, %v7253_v35 }
0x2b04   :  { %v5395_v6 = vsel %vm5390_vm7, %v5386_v23, %v6565_v49 }
0x2b05   :  { %5396 = vst.msk [vmem:[%s8116_s8 + $0xc] sm:$0xf] %vm300_vm5, %v5395_v6 }
0x2b0f   :  { %5808 = vperm.xlu1 %7133, %v5729_v38  }
0x2b87   :  { %v5564_v36 = vpop.xlane.xlu1 %5563 }
0x2b88   :  { %v5565_v24 = vsub.f32 %v5561_v33, %v5564_v36 }
0x2b8a   :  { %v5566_v39 = vmul.f32 1.442695, %v5565_v24 }
0x2b8b   :  { %v5809_v57 = vpop.permute.xlu1 %5808 }
0x2b8c   :  { %7254 = vpow2.f32 %v5566_v39 }
0x2b99   :  { %v7255_v45 = vpop.eup %7254 }
0x2b9a   :  { %v5568_v56 = vsel %vm300_vm5, %v7255_v45, 0.0 }
0x2b9b   :  { %5569 = vadd.xlane.f32.xlu0 %v5568_v56  ;;  %v6172_v56 = vld [vmem:[%s8115_s7] sm:$0x1] }
0x2c24   :  { %v5570_v42 = vpop.xlane.xlu0 %5569 }
0x2c25   :  { %7256 = vrcp.f32 %v5570_v42 }
0x2c32   :  { %v7257_v37 = vpop.eup %7256 }
0x2c33   :  { %v5572_v43 = vmul.f32 %v7257_v37, %v7255_v45 }
0x2c35   :  { %7080 = vmatmul.mubr.msk.f32.vlgmr.msra.gmra.mxu0 %vm35_vm1, %v5572_v43 }
0x2c36   :  { %7088 = vmatpush3.xpose.msk.msra.mxu0 %vm35_vm1, %v5657_v22  ;;  %7089 = vmatprep.mubr.msk.f32.mxu0 %vm7281_vm2, %v7280_v3 }
0x2c37   :  { %7097 = vmatprep.subr.mxu0 %v7280_v3 }
0x2c39   :  { %7090 = vmatmul.mubr.msk.f32.vlgmr.msra.gmra.mxu0 %vm35_vm1, %v5656_v44 }
0x2c3a   :  { %7098 = vmatpush3.msk.msra.mxu0 %vm48_vm0, %v5913_v46  ;;  %7099 = vmatprep.mubr.msk.f32.mxu0 %vm7281_vm2, %v7280_v3 }
0x2c3b   :  { %7107 = vmatprep.subr.mxu0 %v7280_v3 }
0x2c3d   :  { %7100 = vmatmul.mubr.msk.f32.vlgmr.msra.gmra.mxu0 %vm35_vm1, %v7916_v53 }
0x2c3e   :  { %7108 = vmatpush3.msk.msra.mxu0 %vm48_vm0, %v7916_v53  ;;  %7109 = vmatprep.mubr.msk.f32.mxu0 %vm7281_vm2, %v7280_v3 }
0x2c3f   :  { %7117 = vmatprep.subr.mxu0 %v7280_v3 }
0x2cf5   :  { %v5644_v47 = vpop.f32.mrf.mxu0 }
0x2cf6   :  { %v5649_v48 = vmin.f32 %v5644_v47, 0.0  ;;  %vm5648_vm4 = vcmp.gt.f32.partialorder %v5644_v47, 0.0 }
0x2cf7   :  { %v7081_v50 = vpop.f32.mrf.mxu0 }
0x2cf8   :  { %v5650_v51 = vmul.f32 1.442695, %v5649_v48 }
0x2cf9   :  { %v5802_v9 = vpop.f32.mrf.mxu0 }
0x2cfa   :  { %7258 = vpow2.f32 %v5650_v51  ;;  %v5814_v52 = vrot.slane %v5802_v9, %v7388_v18 }
0x2cfb   :  { %v7091_v58 = vpop.f32.mrf.mxu0 }
0x2cfc   :  { %v5815_v60 = vadd.f32 %v5814_v52, %v5809_v57 }
0x2cfd   :  { %v5987_v61 = vpop.f32.mrf.mxu0 }
0x2cfe   :  { %v5817_v62 = vmul.f32 0.2, %v5815_v60  ;;  %vm5816_vm15 = vcmp.gt.f32.partialorder %v5815_v60, 0.0 }
0x2cff   :  { %v7101_v63 = vpop.f32.mrf.mxu0 }
0x2d00   :  { %v5818_v0 = vsel %vm5816_vm15, %v5815_v60, %v5817_v62 }
0x2d01   :  { %v5819_v5 = vadd.f32 %v8048_v2, %v5818_v0 }
0x2d03   :  { %v5820_v7 = vsel %vm300_vm5, %v5819_v5, -inf }
0x2d04   :  { %5821 = vmax.xlane.f32.xlu1 %v5820_v7 }
0x2d07   :  { %v7259_v8 = vpop.eup %7258 }
0x2d08   :  { %v6572_v10 = vadd.f32 -1.0, %v7259_v8 }
0x2d0a   :  { %v5653_v12 = vsel %vm5648_vm4, %v5644_v47, %v6572_v10 }
0x2d0b   :  { %5654 = vst.msk [vmem:[%s8116_s8 + $0x10] sm:$0xf] %vm300_vm5, %v5653_v12 }
0x2d8d   :  { %v5822_v13 = vpop.xlane.xlu1 %5821 }
0x2d8e   :  { %v5823_v15 = vsub.f32 %v5819_v5, %v5822_v13 }
0x2d90   :  { %v5824_v14 = vmul.f32 1.442695, %v5823_v15 }
0x2d92   :  { %7260 = vpow2.f32 %v5824_v14 }
0x2d9f   :  { %v7261_v16 = vpop.eup %7260 }
0x2da0   :  { %v5826_v11 = vsel %vm300_vm5, %v7261_v16, 0.0 }
0x2da1   :  { %5827 = vadd.xlane.f32.xlu0 %v5826_v11 }
0x2db7   :  { %6066 = vperm.xlu0 %7132, %v5987_v61  }
0x2e2a   :  { %v5828_v17 = vpop.xlane.xlu0 %5827 }
0x2e2b   :  { %7262 = vrcp.f32 %v5828_v17 }
0x2e32   :  { %v6067_v26 = vpop.permute.xlu0 %6066 }
0x2e38   :  { %v7263_v40 = vpop.eup %7262 }
0x2e39   :  { %v5830_v1 = vmul.f32 %v7263_v40, %v7261_v16 }
0x2e3b   :  { %7095 = vmatmul.mubr.msk.f32.vlgmr.msra.gmra.mxu1 %vm35_vm1, %v5830_v1 }
0x2e3c   :  { %7103 = vmatpush3.xpose.msk.msra.mxu1 %vm35_vm1, %v7916_v53  ;;  %7104 = vmatprep.mubr.msk.f32.mxu1 %vm7281_vm2, %v7280_v3 }
0x2e3d   :  { %7112 = vmatprep.subr.mxu1 %v7280_v3 }
0x2e3f   :  { %7105 = vmatmul.mubr.msk.f32.vlgmr.msra.gmra.mxu1 %vm35_vm1, %v5914_v19 }
0x2e40   :  { %7113 = vmatpush3.msk.msra.mxu1 %vm48_vm0, %v6171_v20  ;;  %7114 = vmatprep.mubr.msk.f32.mxu1 %vm7281_vm2, %v7280_v3 }
0x2e41   :  { %7122 = vmatprep.subr.mxu1 %v7280_v3 }
0x2e43   :  { %7115 = vmatmul.mubr.msk.f32.vlgmr.msra.gmra.mxu1 %vm35_vm1, %v6173_v59 }
0x2e44   :  { %7123 = vmatpush3.msk.msra.mxu1 %vm48_vm0, %v6173_v59  ;;  %7124 = vmatprep.mubr.msk.f32.mxu1 %vm7281_vm2, %v7280_v3 }
0x2efb   :  { %v5902_v21 = vpop.f32.mrf.mxu1 }
0x2efc   :  { %v5907_v55 = vmin.f32 %v5902_v21, 0.0  ;;  %vm5906_vm0 = vcmp.gt.f32.partialorder %v5902_v21, 0.0 }
0x2efd   :  { %v7096_v22 = vpop.f32.mrf.mxu1 }
0x2efe   :  { %v5908_v23 = vmul.f32 1.442695, %v5907_v55 }
0x2eff   :  { %v6060_v4 = vpop.f32.mrf.mxu1 }
0x2f00   :  { %7264 = vpow2.f32 %v5908_v23  ;;  %v6072_v25 = vrot.slane %v6060_v4, %v7388_v18 }
0x2f01   :  { %v7106_v41 = vpop.f32.mrf.mxu1 }
0x2f02   :  { %v6073_v53 = vadd.f32 %v6072_v25, %v6067_v26 }
0x2f03   :  { %v6245_v27 = vpop.f32.mrf.mxu1 }
0x2f04   :  { %v6075_v54 = vmul.f32 0.2, %v6073_v53  ;;  %vm6074_vm6 = vcmp.gt.f32.partialorder %v6073_v53, 0.0 }
0x2f05   :  { %v7116_v28 = vpop.f32.mrf.mxu1 }
0x2f06   :  { %v6076_v29 = vsel %vm6074_vm6, %v6073_v53, %v6075_v54 }
0x2f07   :  { %v6077_v38 = vadd.f32 %v8048_v2, %v6076_v29 }
0x2f09   :  { %v6078_v30 = vsel %vm300_vm5, %v6077_v38, -inf }
0x2f0a   :  { %6079 = vmax.xlane.f32.xlu1 %v6078_v30 }
0x2f0d   :  { %v7265_v31 = vpop.eup %7264 }
0x2f0e   :  { %v6579_v32 = vadd.f32 -1.0, %v7265_v31 }
0x2f10   :  { %v5911_v33 = vsel %vm5906_vm0, %v5902_v21, %v6579_v32 }
0x2f11   :  { %5912 = vst.msk [vmem:[%s8116_s8 + $0x14] sm:$0xf] %vm300_vm5, %v5911_v33 }
0x2f1b   :  { %6324 = vperm.xlu1 %7133, %v6245_v27  }
0x2f93   :  { %v6080_v34 = vpop.xlane.xlu1 %6079 }
0x2f94   :  { %v6081_v35 = vsub.f32 %v6077_v38, %v6080_v34 }
0x2f96   :  { %v6082_v49 = vmul.f32 1.442695, %v6081_v35 }
0x2f97   :  { %v6325_v48 = vpop.permute.xlu1 %6324 }
0x2f98   :  { %7266 = vpow2.f32 %v6082_v49 }
0x2fa5   :  { %v7267_v6 = vpop.eup %7266 }
0x2fa6   :  { %v6084_v36 = vsel %vm300_vm5, %v7267_v6, 0.0 }
0x2fa7   :  { %6085 = vadd.xlane.f32.xlu0 %v6084_v36 }
0x3030   :  { %v6086_v24 = vpop.xlane.xlu0 %6085 }
0x3031   :  { %7268 = vrcp.f32 %v6086_v24 }
0x303e   :  { %v7269_v39 = vpop.eup %7268 }
0x303f   :  { %v6088_v45 = vmul.f32 %v7269_v39, %v7267_v6 }
0x3041   :  { %7110 = vmatmul.mubr.msk.f32.vlgmr.msra.gmra.mxu0 %vm35_vm1, %v6088_v45 }
0x3042   :  { %7118 = vmatpush3.xpose.msk.msra.mxu0 %vm35_vm1, %v6173_v59  ;;  %7119 = vmatprep.mubr.msk.f32.mxu0 %vm7281_vm2, %v7280_v3 }
0x3045   :  { %7120 = vmatmul.mubr.msk.f32.vlgmr.msra.gmra.mxu0 %vm35_vm1, %v6172_v56 }
0x3101   :  { %v6160_v42 = vpop.f32.mrf.mxu0 }
0x3102   :  { %v6165_v37 = vmin.f32 %v6160_v42, 0.0  ;;  %vm6164_vm2 = vcmp.gt.f32.partialorder %v6160_v42, 0.0 }
0x3103   :  { %v7111_v43 = vpop.f32.mrf.mxu0 }
0x3104   :  { %v6166_v44 = vmul.f32 1.442695, %v6165_v37 }
0x3105   :  { %v6318_v46 = vpop.f32.mrf.mxu0 }
0x3106   :  { %7270 = vpow2.f32 %v6166_v44  ;;  %v6330_v47 = vrot.slane %v6318_v46, %v7388_v18 }
0x3107   :  { %v7121_v50 = vpop.f32.mrf.mxu0 }
0x3108   :  { %v6331_v51 = vadd.f32 %v6330_v47, %v6325_v48 }
0x310a   :  { %v6333_v9 = vmul.f32 0.2, %v6331_v51  ;;  %vm6332_vm8 = vcmp.gt.f32.partialorder %v6331_v51, 0.0 }
0x310c   :  { %v6334_v3 = vsel %vm6332_vm8, %v6331_v51, %v6333_v9 }
0x310d   :  { %v6335_v52 = vadd.f32 %v8048_v2, %v6334_v3 }
0x310f   :  { %v6336_v57 = vsel %vm300_vm5, %v6335_v52, -inf }
0x3110   :  { %6337 = vmax.xlane.f32.xlu1 %v6336_v57 }
0x3113   :  { %v7271_v58 = vpop.eup %7270 }
0x3114   :  { %v6586_v60 = vadd.f32 -1.0, %v7271_v58 }
0x3116   :  { %v6169_v61 = vsel %vm6164_vm2, %v6160_v42, %v6586_v60 }
0x3117   :  { %6170 = vst.msk [vmem:[%s8116_s8 + $0x18] sm:$0xf] %vm300_vm5, %v6169_v61 }
0x3199   :  { %v6338_v18 = vpop.xlane.xlu1 %6337 }
0x319a   :  { %v6339_v62 = vsub.f32 %v6335_v52, %v6338_v18 }
0x319c   :  { %v6340_v63 = vmul.f32 1.442695, %v6339_v62 }
0x319e   :  { %7272 = vpow2.f32 %v6340_v63 }
0x31ab   :  { %v7273_v0 = vpop.eup %7272 }
0x31ac   :  { %v6342_v5 = vsel %vm300_vm5, %v7273_v0, 0.0 }
0x31ad   :  { %6343 = vadd.xlane.f32.xlu0 %v6342_v5 }
0x3236   :  { %v6344_v2 = vpop.xlane.xlu0 %6343 }
0x3237   :  { %7274 = vrcp.f32 %v6344_v2 }
0x3244   :  { %v7275_v7 = vpop.eup %7274 }
0x3245   :  { %v6346_v8 = vmul.f32 %v7275_v7, %v7273_v0 }
0x3247   :  { %7125 = vmatmul.mubr.msk.f32.vlgmr.msra.gmra.mxu1 %vm35_vm1, %v6346_v8 }
0x3307   :  { %v6418_v10 = vpop.f32.mrf.mxu1 }
0x3308   :  { %v6423_v12 = vmin.f32 %v6418_v10, 0.0  ;;  %vm6422_vm9 = vcmp.gt.f32.partialorder %v6418_v10, 0.0 }
0x3309   :  { %v7126_v13 = vpop.f32.mrf.mxu1 }
0x330a   :  { %v6424_v15 = vmul.f32 1.442695, %v6423_v12 }
0x330c   :  { %7276 = vpow2.f32 %v6424_v15 }
0x3319   :  { %v7277_v14 = vpop.eup %7276 }
0x331a   :  { %v6593_v16 = vadd.f32 -1.0, %v7277_v14 }
0x331c   :  { %v6427_v11 = vsel %vm6422_vm9, %v6418_v10, %v6593_v16 }
0x331d   :  { %6428 = vst.msk [vmem:[%s8116_s8 + $0x1c] sm:$0xf] %vm300_vm5, %v6427_v11 }

</bundles_post_ra>
